<compile_context>
chip_gen: v7x
topology: tpu7x:2x2x1
jax: 0.10.0
libtpu: 0.0.40
codegen_flags: <defaults>
</compile_context>

<pallas_src>
import jax
import jax.numpy as jnp
from jax.experimental import pallas as pl
from jax.experimental.pallas import tpu as pltpu

_BN_EPS = 1e-5


def _round_up(x, m):
    return (x + m - 1) // m * m


def _is_v7x():
    try:
        kind = jax.devices()[0].device_kind.lower()
    except Exception:
        return False
    return "v7" in kind


def _pick_tn(T, N, C, H, is_v7, vmem_limit):
    """Pick the N-tile: one big tile on single-TC chips, >=2 tiles on v7x."""
    # Per N-row VMEM cost of one resident tile (f32 unless noted):
    #   x block (dbl-buffered) + out block (dbl-buffered) + gx scratch + y (bf16)
    per_row = T * (2 * 2 * C * 4 + 3 * H * 4 + H * 2)
    budget = int(vmem_limit * 0.6)
    cap = max(8, budget // max(per_row, 1))
    tn = min(N, cap)
    if is_v7 and N >= 16:
        # give both v7x TensorCores work
        tn = min(tn, _round_up(pl.cdiv(N, 2), 8))
    tn = max(8, (tn // 8) * 8)
    return min(tn, N)


# --------------------------------------------------------------------------
# Fully fused kernel: input projection + GRU recurrence + conv/BN/ReLU/residual
# --------------------------------------------------------------------------
def _tgru_fused_kernel(x_ref, w_ih_ref, b_ih_ref, w_hh_ref, b_hh_ref,
                       h0_ref, w_c_ref, scale_ref, shift_ref,
                       out_ref, ht_ref,
                       gx_ref, y_ref):
    T, tn, C = x_ref.shape
    H = h0_ref.shape[1]

    x_flat = x_ref[...].reshape(T * tn, C)                       # (T*tn, C) f32

    # ---- prologue: all three input gates, all timesteps, one MXU matmul ----
    gx = jnp.dot(x_flat.astype(jnp.bfloat16), w_ih_ref[...],
                 preferred_element_type=jnp.float32) + b_ih_ref[...]
    gx_ref[...] = gx.reshape(T, tn, 3 * H)

    w_hh = w_hh_ref[...]                                         # (H, 3H) bf16
    b_hh = b_hh_ref[...]                                         # (1, 3H) f32

    # ---- GRU recurrence (sequential in T, rows of N are independent) -------
    def step(t, h):
        gh = jnp.dot(h.astype(jnp.bfloat16), w_hh,
                     preferred_element_type=jnp.float32) + b_hh  # (tn, 3H)
        g = gx_ref[t]                                            # (tn, 3H)
        # joint 2H-wide sigmoid keeps the EUP lane-dense when H == 64
        rz = jax.nn.sigmoid(g[:, :2 * H] + gh[:, :2 * H])
        r = rz[:, :H]
        z = rz[:, H:]
        n = jnp.tanh(g[:, 2 * H:] + r * gh[:, 2 * H:])
        h_new = (1.0 - z) * n + z * h
        y_ref[t] = h_new.astype(jnp.bfloat16)
        return h_new

    unroll = True if T <= 16 else 4
    ht_ref[...] = jax.lax.fori_loop(0, T, step, h0_ref[...], unroll=unroll)

    # ---- epilogue: conv1x1 + BN(eval) + ReLU + residual, one MXU matmul ----
    y_flat = y_ref[...].reshape(T * tn, H)                       # bf16
    acc = jnp.dot(y_flat, w_c_ref[...], preferred_element_type=jnp.float32)
    acc = acc * scale_ref[...] + shift_ref[...]
    out_ref[...] = (jnp.maximum(acc, 0.0) + x_flat).reshape(T, tn, C)


def _tgru_fused(x_tnc, h0, pp):
    """x_tnc:(T,N,C) f32, h0:(N,H) f32 -> out:(T,N,C) f32, h_T:(N,H) f32."""
    T, N, C = x_tnc.shape
    H = h0.shape[1]
    H3 = 3 * H

    is_v7 = _is_v7x()
    vmem_limit = (32 if is_v7 else 64) * 1024 * 1024
    tn = _pick_tn(T, N, C, H, is_v7, vmem_limit)

    out, ht = pl.pallas_call(
        _tgru_fused_kernel,
        out_shape=(jax.ShapeDtypeStruct((T, N, C), jnp.float32),
                   jax.ShapeDtypeStruct((N, H), jnp.float32)),
        grid=(pl.cdiv(N, tn),),
        in_specs=[
            pl.BlockSpec((T, tn, C), lambda i: (0, i, 0)),   # x
            pl.BlockSpec((C, H3), lambda i: (0, 0)),         # w_ih^T
            pl.BlockSpec((1, H3), lambda i: (0, 0)),         # b_ih
            pl.BlockSpec((H, H3), lambda i: (0, 0)),         # w_hh^T
            pl.BlockSpec((1, H3), lambda i: (0, 0)),         # b_hh
            pl.BlockSpec((tn, H), lambda i: (i, 0)),         # h0
            pl.BlockSpec((H, C), lambda i: (0, 0)),          # conv weight
            pl.BlockSpec((1, C), lambda i: (0, 0)),          # BN scale
            pl.BlockSpec((1, C), lambda i: (0, 0)),          # BN shift
        ],
        out_specs=(pl.BlockSpec((T, tn, C), lambda i: (0, i, 0)),
                   pl.BlockSpec((tn, H), lambda i: (i, 0))),
        scratch_shapes=[pltpu.VMEM((T, tn, H3), jnp.float32),   # gx
                        pltpu.VMEM((T, tn, H), jnp.bfloat16)],  # y
        compiler_params=pltpu.CompilerParams(
            dimension_semantics=("parallel",),
            vmem_limit_bytes=vmem_limit),
    )(x_tnc, pp["w_ih_t"], pp["b_ih"], pp["w_hh_t"], pp["b_hh"],
      h0, pp["w_c"], pp["scale"], pp["shift"])
    return out, ht


# --------------------------------------------------------------------------
# One-time parameter prep (hoisted out of the hot path)
# --------------------------------------------------------------------------
def prepare_params(params):
    H = params["gru_w_hh"].shape[1]
    Cout = params["conv_w"].shape[0]
    scale = params["bn_gamma"] / jnp.sqrt(params["bn_var"] + _BN_EPS)
    shift = (params["conv_b"] - params["bn_mean"]) * scale + params["bn_beta"]
    return {
        "w_ih_t": params["gru_w_ih"].T.astype(jnp.bfloat16),              # (C, 3H)
        "b_ih": params["gru_b_ih"].reshape(1, -1).astype(jnp.float32),    # (1, 3H)
        "w_hh_t": params["gru_w_hh"].T.astype(jnp.bfloat16),              # (H, 3H)
        "b_hh": params["gru_b_hh"].reshape(1, -1).astype(jnp.float32),    # (1, 3H)
        "w_c": params["conv_w"].reshape(Cout, H).T.astype(jnp.bfloat16),  # (H, Cout)
        "scale": scale.reshape(1, -1).astype(jnp.float32),                # (1, Cout)
        "shift": shift.reshape(1, -1).astype(jnp.float32),                # (1, Cout)
    }


# --------------------------------------------------------------------------
# TGRUBlock2 forward
# --------------------------------------------------------------------------
def tgru_block2_forward(prepped, x, rnn_state=None):
    B, C, T, Fd = x.shape
    H = prepped["w_hh_t"].shape[0]
    N = B * Fd

    # (B, C, T, F) -> (T, B, F, C) -> (T, N, C)   [single input-side transpose]
    x_tnc = jnp.transpose(x, (2, 0, 3, 1)).reshape(T, N, C).astype(jnp.float32)

    if rnn_state is None:
        h0 = jnp.zeros((N, H), jnp.float32)
    else:
        h0 = rnn_state[0].astype(jnp.float32)

    # pad N up to a sublane multiple (8) if needed
    N_pad = _round_up(N, 8)
    if N_pad != N:
        x_tnc = jnp.pad(x_tnc, ((0, 0), (0, N_pad - N), (0, 0)))
        h0 = jnp.pad(h0, ((0, N_pad - N), (0, 0)))

    out_tnc, h_t = _tgru_fused(x_tnc, h0, prepped)

    if N_pad != N:
        out_tnc = out_tnc[:, :N]
        h_t = h_t[:N]

    # (T, N, C) -> (T, B, F, C) -> (B, C, T, F)   [single output-side transpose]
    out = out_tnc.reshape(T, B, Fd, C).transpose(1, 3, 0, 2)
    return out, h_t[None]


# --------------------------------------------------------------------------
# Deterministic synthetic parameters (PyTorch layouts)
# --------------------------------------------------------------------------
def init_params(key, in_channels, hidden, out_channels):
    ks = jax.random.split(key, 6)

    def nrm(k, shape, s=0.05):
        return jax.random.normal(k, shape, jnp.float32) * s

    return {
        "gru_w_ih": nrm(ks[0], (3 * hidden, in_channels)),
        "gru_w_hh": nrm(ks[1], (3 * hidden, hidden)),
        "gru_b_ih": nrm(ks[2], (3 * hidden,), 0.01),
        "gru_b_hh": nrm(ks[3], (3 * hidden,), 0.01),
        "conv_w": nrm(ks[4], (out_channels, hidden, 1, 1)),
        "conv_b": nrm(ks[5], (out_channels,), 0.01),
        "bn_gamma": jnp.ones((out_channels,), jnp.float32),
        "bn_beta": jnp.zeros((out_channels,), jnp.float32),
        "bn_mean": jnp.zeros((out_channels,), jnp.float32),
        "bn_var": jnp.ones((out_channels,), jnp.float32),
    }


# --------------------------------------------------------------------------
if __name__ == "__main__":
    key = jax.random.PRNGKey(0)
    pkey, xkey = jax.random.split(key)

    # TGRUBlock2(64, 64, 64) as used in mpANC, at small spatial/temporal sizes.
    B, C, T, Fd, H = 2, 64, 8, 16, 64
    params = init_params(pkey, C, H, C)
    prepped = prepare_params(params)          # one-time weight prep (cold path)

    x = jax.random.normal(xkey, (B, C, T, Fd), jnp.float32)
    rnn_state = jnp.zeros((1, B * Fd, H), jnp.float32)

    fwd = jax.jit(tgru_block2_forward)
    out, h_t = fwd(prepped, x, rnn_state)
    out, h_t = jax.block_until_ready((out, h_t))
    assert out.shape == (B, C, T, Fd), out.shape
    assert h_t.shape == (1, B * Fd, H), h_t.shape
    print("KERNEL_OK")
</pallas_src>

<mosaic_0001>
module attributes {stable_mosaic.version = 11 : i64} {
  func.func @_tgru_fused_kernel(%arg0: i32, %arg1: memref<8x32x64xf32, #tpu.memory_space<vmem>>, %arg2: memref<64x192xbf16, #tpu.memory_space<vmem>>, %arg3: memref<1x192xf32, #tpu.memory_space<vmem>>, %arg4: memref<64x192xbf16, #tpu.memory_space<vmem>>, %arg5: memref<1x192xf32, #tpu.memory_space<vmem>>, %arg6: memref<32x64xf32, #tpu.memory_space<vmem>>, %arg7: memref<64x64xbf16, #tpu.memory_space<vmem>>, %arg8: memref<1x64xf32, #tpu.memory_space<vmem>>, %arg9: memref<1x64xf32, #tpu.memory_space<vmem>>, %arg10: memref<8x32x64xf32, #tpu.memory_space<vmem>>, %arg11: memref<32x64xf32, #tpu.memory_space<vmem>>, %arg12: memref<8x32x192xf32, #tpu.memory_space<vmem>>, %arg13: memref<8x32x64xbf16, #tpu.memory_space<vmem>>) attributes {dimension_semantics = [#tpu.dimension_semantics<parallel>], iteration_bounds = array<i64: 1>, scalar_prefetch = 0 : i64, scratch_operands = 2 : i64, tpu.core_type = #tpu.core_type<tc>, window_params = [{transform_indices = @transform_0, window_bounds = array<i64: 8, 32, 64>}, {pipeline_mode = #tpu.pipeline_mode<synchronous>, transform_indices = @transform_1, window_bounds = array<i64: 64, 192>}, {pipeline_mode = #tpu.pipeline_mode<synchronous>, transform_indices = @transform_2, window_bounds = array<i64: 1, 192>}, {pipeline_mode = #tpu.pipeline_mode<synchronous>, transform_indices = @transform_3, window_bounds = array<i64: 64, 192>}, {pipeline_mode = #tpu.pipeline_mode<synchronous>, transform_indices = @transform_4, window_bounds = array<i64: 1, 192>}, {transform_indices = @transform_5, window_bounds = array<i64: 32, 64>}, {pipeline_mode = #tpu.pipeline_mode<synchronous>, transform_indices = @transform_6, window_bounds = array<i64: 64, 64>}, {pipeline_mode = #tpu.pipeline_mode<synchronous>, transform_indices = @transform_7, window_bounds = array<i64: 1, 64>}, {pipeline_mode = #tpu.pipeline_mode<synchronous>, transform_indices = @transform_8, window_bounds = array<i64: 1, 64>}, {transform_indices = @transform_9, window_bounds = array<i64: 8, 32, 64>}, {transform_indices = @transform_10, window_bounds = array<i64: 32, 64>}]} {
    %c0 = arith.constant 0 : index
    %c0_0 = arith.constant 0 : index
    %c0_1 = arith.constant 0 : index
    %0 = vector.load %arg1[%c0, %c0_0, %c0_1] : memref<8x32x64xf32, #tpu.memory_space<vmem>>, vector<8x32x64xf32>
    %1 = vector.shape_cast %0 : vector<8x32x64xf32> to vector<256x64xf32>
    %2 = arith.truncf %1 : vector<256x64xf32> to vector<256x64xbf16>
    %c0_2 = arith.constant 0 : index
    %c0_3 = arith.constant 0 : index
    %3 = vector.load %arg2[%c0_2, %c0_3] : memref<64x192xbf16, #tpu.memory_space<vmem>>, vector<64x192xbf16>
    %cst = arith.constant dense<0.000000e+00> : vector<256x192xf32>
    %4 = tpu.matmul %2, %3, %cst {dimension_numbers = #tpu.dot_dimension_numbers<[1], [0], [0], [1], [0, 0, 1, 1], [], []>} : vector<256x64xbf16>, vector<64x192xbf16>, vector<256x192xf32> -> vector<256x192xf32>
    %c0_4 = arith.constant 0 : index
    %c0_5 = arith.constant 0 : index
    %5 = vector.load %arg3[%c0_4, %c0_5] : memref<1x192xf32, #tpu.memory_space<vmem>>, vector<1x192xf32>
    %6 = vector.broadcast %5 : vector<1x192xf32> to vector<256x192xf32>
    %7 = arith.addf %4, %6 : vector<256x192xf32>
    %8 = vector.shape_cast %7 : vector<256x192xf32> to vector<8x32x192xf32>
    %c0_6 = arith.constant 0 : index
    %c0_7 = arith.constant 0 : index
    %c0_8 = arith.constant 0 : index
    %9 = vector.load %arg12[%c0_6, %c0_7, %c0_8] : memref<8x32x192xf32, #tpu.memory_space<vmem>>, vector<8x32x192xf32>
    tpu.vector_store %arg12[%c0_6, %c0_7, %c0_8], %8 {strides = array<i32>} : memref<8x32x192xf32, #tpu.memory_space<vmem>>, vector<8x32x192xf32>,
    %c0_9 = arith.constant 0 : index
    %c0_10 = arith.constant 0 : index
    %10 = vector.load %arg4[%c0_9, %c0_10] : memref<64x192xbf16, #tpu.memory_space<vmem>>, vector<64x192xbf16>
    %c0_11 = arith.constant 0 : index
    %c0_12 = arith.constant 0 : index
    %11 = vector.load %arg5[%c0_11, %c0_12] : memref<1x192xf32, #tpu.memory_space<vmem>>, vector<1x192xf32>
    %c0_13 = arith.constant 0 : index
    %c0_14 = arith.constant 0 : index
    %12 = vector.load %arg6[%c0_13, %c0_14] : memref<32x64xf32, #tpu.memory_space<vmem>>, vector<32x64xf32>
    %c0_i32 = arith.constant 0 : i32
    %13 = arith.truncf %12 : vector<32x64xf32> to vector<32x64xbf16>
    %cst_15 = arith.constant dense<0.000000e+00> : vector<32x192xf32>
    %14 = tpu.matmul %13, %10, %cst_15 {dimension_numbers = #tpu.dot_dimension_numbers<[1], [0], [0], [1], [0, 0, 1, 1], [], []>} : vector<32x64xbf16>, vector<64x192xbf16>, vector<32x192xf32> -> vector<32x192xf32>
    %15 = vector.broadcast %11 : vector<1x192xf32> to vector<32x192xf32>
    %16 = arith.addf %14, %15 : vector<32x192xf32>
    %17 = arith.index_cast %c0_i32 : i32 to index
    %c0_16 = arith.constant 0 : index
    %c0_17 = arith.constant 0 : index
    %18 = vector.load %arg12[%17, %c0_16, %c0_17] : memref<8x32x192xf32, #tpu.memory_space<vmem>>, vector<1x32x192xf32>
    %19 = vector.shape_cast %18 : vector<1x32x192xf32> to vector<32x192xf32>
    %20 = vector.extract_strided_slice %19 {offsets = [0, 0], sizes = [32, 128], strides = [1, 1]} : vector<32x192xf32> to vector<32x128xf32>
    %21 = vector.extract_strided_slice %16 {offsets = [0, 0], sizes = [32, 128], strides = [1, 1]} : vector<32x192xf32> to vector<32x128xf32>
    %22 = arith.addf %20, %21 : vector<32x128xf32>
    %23 = arith.negf %22 : vector<32x128xf32>
    %24 = math.exp %23 : vector<32x128xf32>
    %cst_18 = arith.constant 1.000000e+00 : f32
    %25 = vector.broadcast %cst_18 : f32 to vector<32x128xf32>
    %26 = arith.addf %25, %24 : vector<32x128xf32>
    %27 = arith.divf %25, %26 : vector<32x128xf32>
    %28 = vector.extract_strided_slice %27 {offsets = [0, 0], sizes = [32, 64], strides = [1, 1]} : vector<32x128xf32> to vector<32x64xf32>
    %29 = vector.extract_strided_slice %27 {offsets = [0, 64], sizes = [32, 64], strides = [1, 1]} : vector<32x128xf32> to vector<32x64xf32>
    %30 = vector.extract_strided_slice %19 {offsets = [0, 128], sizes = [32, 64], strides = [1, 1]} : vector<32x192xf32> to vector<32x64xf32>
    %31 = vector.extract_strided_slice %16 {offsets = [0, 128], sizes = [32, 64], strides = [1, 1]} : vector<32x192xf32> to vector<32x64xf32>
    %32 = arith.mulf %28, %31 : vector<32x64xf32>
    %33 = arith.addf %30, %32 : vector<32x64xf32>
    %34 = math.tanh %33 : vector<32x64xf32>
    %cst_19 = arith.constant 1.000000e+00 : f32
    %35 = vector.broadcast %cst_19 : f32 to vector<32x64xf32>
    %36 = arith.subf %35, %29 : vector<32x64xf32>
    %37 = arith.mulf %36, %34 : vector<32x64xf32>
    %38 = arith.mulf %29, %12 : vector<32x64xf32>
    %39 = arith.addf %37, %38 : vector<32x64xf32>
    %40 = arith.truncf %39 : vector<32x64xf32> to vector<32x64xbf16>
    %41 = arith.index_cast %c0_i32 : i32 to index
    %c0_20 = arith.constant 0 : index
    %c0_21 = arith.constant 0 : index
    %42 = vector.load %arg13[%41, %c0_20, %c0_21] : memref<8x32x64xbf16, #tpu.memory_space<vmem>>, vector<1x32x64xbf16>
    %43 = vector.shape_cast %42 : vector<1x32x64xbf16> to vector<32x64xbf16>
    %44 = vector.shape_cast %40 : vector<32x64xbf16> to vector<1x32x64xbf16>
    tpu.vector_store %arg13[%41, %c0_20, %c0_21], %44 {strides = array<i32>} : memref<8x32x64xbf16, #tpu.memory_space<vmem>>, vector<1x32x64xbf16>,
    %c1_i32 = arith.constant 1 : i32
    %45 = arith.truncf %39 : vector<32x64xf32> to vector<32x64xbf16>
    %cst_22 = arith.constant dense<0.000000e+00> : vector<32x192xf32>
    %46 = tpu.matmul %45, %10, %cst_22 {dimension_numbers = #tpu.dot_dimension_numbers<[1], [0], [0], [1], [0, 0, 1, 1], [], []>} : vector<32x64xbf16>, vector<64x192xbf16>, vector<32x192xf32> -> vector<32x192xf32>
    %47 = vector.broadcast %11 : vector<1x192xf32> to vector<32x192xf32>
    %48 = arith.addf %46, %47 : vector<32x192xf32>
    %49 = arith.index_cast %c1_i32 : i32 to index
    %c0_23 = arith.constant 0 : index
    %c0_24 = arith.constant 0 : index
    %50 = vector.load %arg12[%49, %c0_23, %c0_24] : memref<8x32x192xf32, #tpu.memory_space<vmem>>, vector<1x32x192xf32>
    %51 = vector.shape_cast %50 : vector<1x32x192xf32> to vector<32x192xf32>
    %52 = vector.extract_strided_slice %51 {offsets = [0, 0], sizes = [32, 128], strides = [1, 1]} : vector<32x192xf32> to vector<32x128xf32>
    %53 = vector.extract_strided_slice %48 {offsets = [0, 0], sizes = [32, 128], strides = [1, 1]} : vector<32x192xf32> to vector<32x128xf32>
    %54 = arith.addf %52, %53 : vector<32x128xf32>
    %55 = arith.negf %54 : vector<32x128xf32>
    %56 = math.exp %55 : vector<32x128xf32>
    %cst_25 = arith.constant 1.000000e+00 : f32
    %57 = vector.broadcast %cst_25 : f32 to vector<32x128xf32>
    %58 = arith.addf %57, %56 : vector<32x128xf32>
    %59 = arith.divf %57, %58 : vector<32x128xf32>
    %60 = vector.extract_strided_slice %59 {offsets = [0, 0], sizes = [32, 64], strides = [1, 1]} : vector<32x128xf32> to vector<32x64xf32>
    %61 = vector.extract_strided_slice %59 {offsets = [0, 64], sizes = [32, 64], strides = [1, 1]} : vector<32x128xf32> to vector<32x64xf32>
    %62 = vector.extract_strided_slice %51 {offsets = [0, 128], sizes = [32, 64], strides = [1, 1]} : vector<32x192xf32> to vector<32x64xf32>
    %63 = vector.extract_strided_slice %48 {offsets = [0, 128], sizes = [32, 64], strides = [1, 1]} : vector<32x192xf32> to vector<32x64xf32>
    %64 = arith.mulf %60, %63 : vector<32x64xf32>
    %65 = arith.addf %62, %64 : vector<32x64xf32>
    %66 = math.tanh %65 : vector<32x64xf32>
    %cst_26 = arith.constant 1.000000e+00 : f32
    %67 = vector.broadcast %cst_26 : f32 to vector<32x64xf32>
    %68 = arith.subf %67, %61 : vector<32x64xf32>
    %69 = arith.mulf %68, %66 : vector<32x64xf32>
    %70 = arith.mulf %61, %39 : vector<32x64xf32>
    %71 = arith.addf %69, %70 : vector<32x64xf32>
    %72 = arith.truncf %71 : vector<32x64xf32> to vector<32x64xbf16>
    %73 = arith.index_cast %c1_i32 : i32 to index
    %c0_27 = arith.constant 0 : index
    %c0_28 = arith.constant 0 : index
    %74 = vector.load %arg13[%73, %c0_27, %c0_28] : memref<8x32x64xbf16, #tpu.memory_space<vmem>>, vector<1x32x64xbf16>
    %75 = vector.shape_cast %74 : vector<1x32x64xbf16> to vector<32x64xbf16>
    %76 = vector.shape_cast %72 : vector<32x64xbf16> to vector<1x32x64xbf16>
    tpu.vector_store %arg13[%73, %c0_27, %c0_28], %76 {strides = array<i32>} : memref<8x32x64xbf16, #tpu.memory_space<vmem>>, vector<1x32x64xbf16>,
    %c2_i32 = arith.constant 2 : i32
    %77 = arith.truncf %71 : vector<32x64xf32> to vector<32x64xbf16>
    %cst_29 = arith.constant dense<0.000000e+00> : vector<32x192xf32>
    %78 = tpu.matmul %77, %10, %cst_29 {dimension_numbers = #tpu.dot_dimension_numbers<[1], [0], [0], [1], [0, 0, 1, 1], [], []>} : vector<32x64xbf16>, vector<64x192xbf16>, vector<32x192xf32> -> vector<32x192xf32>
    %79 = vector.broadcast %11 : vector<1x192xf32> to vector<32x192xf32>
    %80 = arith.addf %78, %79 : vector<32x192xf32>
    %81 = arith.index_cast %c2_i32 : i32 to index
    %c0_30 = arith.constant 0 : index
    %c0_31 = arith.constant 0 : index
    %82 = vector.load %arg12[%81, %c0_30, %c0_31] : memref<8x32x192xf32, #tpu.memory_space<vmem>>, vector<1x32x192xf32>
    %83 = vector.shape_cast %82 : vector<1x32x192xf32> to vector<32x192xf32>
    %84 = vector.extract_strided_slice %83 {offsets = [0, 0], sizes = [32, 128], strides = [1, 1]} : vector<32x192xf32> to vector<32x128xf32>
    %85 = vector.extract_strided_slice %80 {offsets = [0, 0], sizes = [32, 128], strides = [1, 1]} : vector<32x192xf32> to vector<32x128xf32>
    %86 = arith.addf %84, %85 : vector<32x128xf32>
    %87 = arith.negf %86 : vector<32x128xf32>
    %88 = math.exp %87 : vector<32x128xf32>
    %cst_32 = arith.constant 1.000000e+00 : f32
    %89 = vector.broadcast %cst_32 : f32 to vector<32x128xf32>
    %90 = arith.addf %89, %88 : vector<32x128xf32>
    %91 = arith.divf %89, %90 : vector<32x128xf32>
    %92 = vector.extract_strided_slice %91 {offsets = [0, 0], sizes = [32, 64], strides = [1, 1]} : vector<32x128xf32> to vector<32x64xf32>
    %93 = vector.extract_strided_slice %91 {offsets = [0, 64], sizes = [32, 64], strides = [1, 1]} : vector<32x128xf32> to vector<32x64xf32>
    %94 = vector.extract_strided_slice %83 {offsets = [0, 128], sizes = [32, 64], strides = [1, 1]} : vector<32x192xf32> to vector<32x64xf32>
    %95 = vector.extract_strided_slice %80 {offsets = [0, 128], sizes = [32, 64], strides = [1, 1]} : vector<32x192xf32> to vector<32x64xf32>
    %96 = arith.mulf %92, %95 : vector<32x64xf32>
    %97 = arith.addf %94, %96 : vector<32x64xf32>
    %98 = math.tanh %97 : vector<32x64xf32>
    %cst_33 = arith.constant 1.000000e+00 : f32
    %99 = vector.broadcast %cst_33 : f32 to vector<32x64xf32>
    %100 = arith.subf %99, %93 : vector<32x64xf32>
    %101 = arith.mulf %100, %98 : vector<32x64xf32>
    %102 = arith.mulf %93, %71 : vector<32x64xf32>
    %103 = arith.addf %101, %102 : vector<32x64xf32>
    %104 = arith.truncf %103 : vector<32x64xf32> to vector<32x64xbf16>
    %105 = arith.index_cast %c2_i32 : i32 to index
    %c0_34 = arith.constant 0 : index
    %c0_35 = arith.constant 0 : index
    %106 = vector.load %arg13[%105, %c0_34, %c0_35] : memref<8x32x64xbf16, #tpu.memory_space<vmem>>, vector<1x32x64xbf16>
    %107 = vector.shape_cast %106 : vector<1x32x64xbf16> to vector<32x64xbf16>
    %108 = vector.shape_cast %104 : vector<32x64xbf16> to vector<1x32x64xbf16>
    tpu.vector_store %arg13[%105, %c0_34, %c0_35], %108 {strides = array<i32>} : memref<8x32x64xbf16, #tpu.memory_space<vmem>>, vector<1x32x64xbf16>,
    %c3_i32 = arith.constant 3 : i32
    %109 = arith.truncf %103 : vector<32x64xf32> to vector<32x64xbf16>
    %cst_36 = arith.constant dense<0.000000e+00> : vector<32x192xf32>
    %110 = tpu.matmul %109, %10, %cst_36 {dimension_numbers = #tpu.dot_dimension_numbers<[1], [0], [0], [1], [0, 0, 1, 1], [], []>} : vector<32x64xbf16>, vector<64x192xbf16>, vector<32x192xf32> -> vector<32x192xf32>
    %111 = vector.broadcast %11 : vector<1x192xf32> to vector<32x192xf32>
    %112 = arith.addf %110, %111 : vector<32x192xf32>
    %113 = arith.index_cast %c3_i32 : i32 to index
    %c0_37 = arith.constant 0 : index
    %c0_38 = arith.constant 0 : index
    %114 = vector.load %arg12[%113, %c0_37, %c0_38] : memref<8x32x192xf32, #tpu.memory_space<vmem>>, vector<1x32x192xf32>
    %115 = vector.shape_cast %114 : vector<1x32x192xf32> to vector<32x192xf32>
    %116 = vector.extract_strided_slice %115 {offsets = [0, 0], sizes = [32, 128], strides = [1, 1]} : vector<32x192xf32> to vector<32x128xf32>
    %117 = vector.extract_strided_slice %112 {offsets = [0, 0], sizes = [32, 128], strides = [1, 1]} : vector<32x192xf32> to vector<32x128xf32>
    %118 = arith.addf %116, %117 : vector<32x128xf32>
    %119 = arith.negf %118 : vector<32x128xf32>
    %120 = math.exp %119 : vector<32x128xf32>
    %cst_39 = arith.constant 1.000000e+00 : f32
    %121 = vector.broadcast %cst_39 : f32 to vector<32x128xf32>
    %122 = arith.addf %121, %120 : vector<32x128xf32>
    %123 = arith.divf %121, %122 : vector<32x128xf32>
    %124 = vector.extract_strided_slice %123 {offsets = [0, 0], sizes = [32, 64], strides = [1, 1]} : vector<32x128xf32> to vector<32x64xf32>
    %125 = vector.extract_strided_slice %123 {offsets = [0, 64], sizes = [32, 64], strides = [1, 1]} : vector<32x128xf32> to vector<32x64xf32>
    %126 = vector.extract_strided_slice %115 {offsets = [0, 128], sizes = [32, 64], strides = [1, 1]} : vector<32x192xf32> to vector<32x64xf32>
    %127 = vector.extract_strided_slice %112 {offsets = [0, 128], sizes = [32, 64], strides = [1, 1]} : vector<32x192xf32> to vector<32x64xf32>
    %128 = arith.mulf %124, %127 : vector<32x64xf32>
    %129 = arith.addf %126, %128 : vector<32x64xf32>
    %130 = math.tanh %129 : vector<32x64xf32>
    %cst_40 = arith.constant 1.000000e+00 : f32
    %131 = vector.broadcast %cst_40 : f32 to vector<32x64xf32>
    %132 = arith.subf %131, %125 : vector<32x64xf32>
    %133 = arith.mulf %132, %130 : vector<32x64xf32>
    %134 = arith.mulf %125, %103 : vector<32x64xf32>
    %135 = arith.addf %133, %134 : vector<32x64xf32>
    %136 = arith.truncf %135 : vector<32x64xf32> to vector<32x64xbf16>
    %137 = arith.index_cast %c3_i32 : i32 to index
    %c0_41 = arith.constant 0 : index
    %c0_42 = arith.constant 0 : index
    %138 = vector.load %arg13[%137, %c0_41, %c0_42] : memref<8x32x64xbf16, #tpu.memory_space<vmem>>, vector<1x32x64xbf16>
    %139 = vector.shape_cast %138 : vector<1x32x64xbf16> to vector<32x64xbf16>
    %140 = vector.shape_cast %136 : vector<32x64xbf16> to vector<1x32x64xbf16>
    tpu.vector_store %arg13[%137, %c0_41, %c0_42], %140 {strides = array<i32>} : memref<8x32x64xbf16, #tpu.memory_space<vmem>>, vector<1x32x64xbf16>,
    %c4_i32 = arith.constant 4 : i32
    %141 = arith.truncf %135 : vector<32x64xf32> to vector<32x64xbf16>
    %cst_43 = arith.constant dense<0.000000e+00> : vector<32x192xf32>
    %142 = tpu.matmul %141, %10, %cst_43 {dimension_numbers = #tpu.dot_dimension_numbers<[1], [0], [0], [1], [0, 0, 1, 1], [], []>} : vector<32x64xbf16>, vector<64x192xbf16>, vector<32x192xf32> -> vector<32x192xf32>
    %143 = vector.broadcast %11 : vector<1x192xf32> to vector<32x192xf32>
    %144 = arith.addf %142, %143 : vector<32x192xf32>
    %145 = arith.index_cast %c4_i32 : i32 to index
    %c0_44 = arith.constant 0 : index
    %c0_45 = arith.constant 0 : index
    %146 = vector.load %arg12[%145, %c0_44, %c0_45] : memref<8x32x192xf32, #tpu.memory_space<vmem>>, vector<1x32x192xf32>
    %147 = vector.shape_cast %146 : vector<1x32x192xf32> to vector<32x192xf32>
    %148 = vector.extract_strided_slice %147 {offsets = [0, 0], sizes = [32, 128], strides = [1, 1]} : vector<32x192xf32> to vector<32x128xf32>
    %149 = vector.extract_strided_slice %144 {offsets = [0, 0], sizes = [32, 128], strides = [1, 1]} : vector<32x192xf32> to vector<32x128xf32>
    %150 = arith.addf %148, %149 : vector<32x128xf32>
    %151 = arith.negf %150 : vector<32x128xf32>
    %152 = math.exp %151 : vector<32x128xf32>
    %cst_46 = arith.constant 1.000000e+00 : f32
    %153 = vector.broadcast %cst_46 : f32 to vector<32x128xf32>
    %154 = arith.addf %153, %152 : vector<32x128xf32>
    %155 = arith.divf %153, %154 : vector<32x128xf32>
    %156 = vector.extract_strided_slice %155 {offsets = [0, 0], sizes = [32, 64], strides = [1, 1]} : vector<32x128xf32> to vector<32x64xf32>
    %157 = vector.extract_strided_slice %155 {offsets = [0, 64], sizes = [32, 64], strides = [1, 1]} : vector<32x128xf32> to vector<32x64xf32>
    %158 = vector.extract_strided_slice %147 {offsets = [0, 128], sizes = [32, 64], strides = [1, 1]} : vector<32x192xf32> to vector<32x64xf32>
    %159 = vector.extract_strided_slice %144 {offsets = [0, 128], sizes = [32, 64], strides = [1, 1]} : vector<32x192xf32> to vector<32x64xf32>
    %160 = arith.mulf %156, %159 : vector<32x64xf32>
    %161 = arith.addf %158, %160 : vector<32x64xf32>
    %162 = math.tanh %161 : vector<32x64xf32>
    %cst_47 = arith.constant 1.000000e+00 : f32
    %163 = vector.broadcast %cst_47 : f32 to vector<32x64xf32>
    %164 = arith.subf %163, %157 : vector<32x64xf32>
    %165 = arith.mulf %164, %162 : vector<32x64xf32>
    %166 = arith.mulf %157, %135 : vector<32x64xf32>
    %167 = arith.addf %165, %166 : vector<32x64xf32>
    %168 = arith.truncf %167 : vector<32x64xf32> to vector<32x64xbf16>
    %169 = arith.index_cast %c4_i32 : i32 to index
    %c0_48 = arith.constant 0 : index
    %c0_49 = arith.constant 0 : index
    %170 = vector.load %arg13[%169, %c0_48, %c0_49] : memref<8x32x64xbf16, #tpu.memory_space<vmem>>, vector<1x32x64xbf16>
    %171 = vector.shape_cast %170 : vector<1x32x64xbf16> to vector<32x64xbf16>
    %172 = vector.shape_cast %168 : vector<32x64xbf16> to vector<1x32x64xbf16>
    tpu.vector_store %arg13[%169, %c0_48, %c0_49], %172 {strides = array<i32>} : memref<8x32x64xbf16, #tpu.memory_space<vmem>>, vector<1x32x64xbf16>,
    %c5_i32 = arith.constant 5 : i32
    %173 = arith.truncf %167 : vector<32x64xf32> to vector<32x64xbf16>
    %cst_50 = arith.constant dense<0.000000e+00> : vector<32x192xf32>
    %174 = tpu.matmul %173, %10, %cst_50 {dimension_numbers = #tpu.dot_dimension_numbers<[1], [0], [0], [1], [0, 0, 1, 1], [], []>} : vector<32x64xbf16>, vector<64x192xbf16>, vector<32x192xf32> -> vector<32x192xf32>
    %175 = vector.broadcast %11 : vector<1x192xf32> to vector<32x192xf32>
    %176 = arith.addf %174, %175 : vector<32x192xf32>
    %177 = arith.index_cast %c5_i32 : i32 to index
    %c0_51 = arith.constant 0 : index
    %c0_52 = arith.constant 0 : index
    %178 = vector.load %arg12[%177, %c0_51, %c0_52] : memref<8x32x192xf32, #tpu.memory_space<vmem>>, vector<1x32x192xf32>
    %179 = vector.shape_cast %178 : vector<1x32x192xf32> to vector<32x192xf32>
    %180 = vector.extract_strided_slice %179 {offsets = [0, 0], sizes = [32, 128], strides = [1, 1]} : vector<32x192xf32> to vector<32x128xf32>
    %181 = vector.extract_strided_slice %176 {offsets = [0, 0], sizes = [32, 128], strides = [1, 1]} : vector<32x192xf32> to vector<32x128xf32>
    %182 = arith.addf %180, %181 : vector<32x128xf32>
    %183 = arith.negf %182 : vector<32x128xf32>
    %184 = math.exp %183 : vector<32x128xf32>
    %cst_53 = arith.constant 1.000000e+00 : f32
    %185 = vector.broadcast %cst_53 : f32 to vector<32x128xf32>
    %186 = arith.addf %185, %184 : vector<32x128xf32>
    %187 = arith.divf %185, %186 : vector<32x128xf32>
    %188 = vector.extract_strided_slice %187 {offsets = [0, 0], sizes = [32, 64], strides = [1, 1]} : vector<32x128xf32> to vector<32x64xf32>
    %189 = vector.extract_strided_slice %187 {offsets = [0, 64], sizes = [32, 64], strides = [1, 1]} : vector<32x128xf32> to vector<32x64xf32>
    %190 = vector.extract_strided_slice %179 {offsets = [0, 128], sizes = [32, 64], strides = [1, 1]} : vector<32x192xf32> to vector<32x64xf32>
    %191 = vector.extract_strided_slice %176 {offsets = [0, 128], sizes = [32, 64], strides = [1, 1]} : vector<32x192xf32> to vector<32x64xf32>
    %192 = arith.mulf %188, %191 : vector<32x64xf32>
    %193 = arith.addf %190, %192 : vector<32x64xf32>
    %194 = math.tanh %193 : vector<32x64xf32>
    %cst_54 = arith.constant 1.000000e+00 : f32
    %195 = vector.broadcast %cst_54 : f32 to vector<32x64xf32>
    %196 = arith.subf %195, %189 : vector<32x64xf32>
    %197 = arith.mulf %196, %194 : vector<32x64xf32>
    %198 = arith.mulf %189, %167 : vector<32x64xf32>
    %199 = arith.addf %197, %198 : vector<32x64xf32>
    %200 = arith.truncf %199 : vector<32x64xf32> to vector<32x64xbf16>
    %201 = arith.index_cast %c5_i32 : i32 to index
    %c0_55 = arith.constant 0 : index
    %c0_56 = arith.constant 0 : index
    %202 = vector.load %arg13[%201, %c0_55, %c0_56] : memref<8x32x64xbf16, #tpu.memory_space<vmem>>, vector<1x32x64xbf16>
    %203 = vector.shape_cast %202 : vector<1x32x64xbf16> to vector<32x64xbf16>
    %204 = vector.shape_cast %200 : vector<32x64xbf16> to vector<1x32x64xbf16>
    tpu.vector_store %arg13[%201, %c0_55, %c0_56], %204 {strides = array<i32>} : memref<8x32x64xbf16, #tpu.memory_space<vmem>>, vector<1x32x64xbf16>,
    %c6_i32 = arith.constant 6 : i32
    %205 = arith.truncf %199 : vector<32x64xf32> to vector<32x64xbf16>
    %cst_57 = arith.constant dense<0.000000e+00> : vector<32x192xf32>
    %206 = tpu.matmul %205, %10, %cst_57 {dimension_numbers = #tpu.dot_dimension_numbers<[1], [0], [0], [1], [0, 0, 1, 1], [], []>} : vector<32x64xbf16>, vector<64x192xbf16>, vector<32x192xf32> -> vector<32x192xf32>
    %207 = vector.broadcast %11 : vector<1x192xf32> to vector<32x192xf32>
    %208 = arith.addf %206, %207 : vector<32x192xf32>
    %209 = arith.index_cast %c6_i32 : i32 to index
    %c0_58 = arith.constant 0 : index
    %c0_59 = arith.constant 0 : index
    %210 = vector.load %arg12[%209, %c0_58, %c0_59] : memref<8x32x192xf32, #tpu.memory_space<vmem>>, vector<1x32x192xf32>
    %211 = vector.shape_cast %210 : vector<1x32x192xf32> to vector<32x192xf32>
    %212 = vector.extract_strided_slice %211 {offsets = [0, 0], sizes = [32, 128], strides = [1, 1]} : vector<32x192xf32> to vector<32x128xf32>
    %213 = vector.extract_strided_slice %208 {offsets = [0, 0], sizes = [32, 128], strides = [1, 1]} : vector<32x192xf32> to vector<32x128xf32>
    %214 = arith.addf %212, %213 : vector<32x128xf32>
    %215 = arith.negf %214 : vector<32x128xf32>
    %216 = math.exp %215 : vector<32x128xf32>
    %cst_60 = arith.constant 1.000000e+00 : f32
    %217 = vector.broadcast %cst_60 : f32 to vector<32x128xf32>
    %218 = arith.addf %217, %216 : vector<32x128xf32>
    %219 = arith.divf %217, %218 : vector<32x128xf32>
    %220 = vector.extract_strided_slice %219 {offsets = [0, 0], sizes = [32, 64], strides = [1, 1]} : vector<32x128xf32> to vector<32x64xf32>
    %221 = vector.extract_strided_slice %219 {offsets = [0, 64], sizes = [32, 64], strides = [1, 1]} : vector<32x128xf32> to vector<32x64xf32>
    %222 = vector.extract_strided_slice %211 {offsets = [0, 128], sizes = [32, 64], strides = [1, 1]} : vector<32x192xf32> to vector<32x64xf32>
    %223 = vector.extract_strided_slice %208 {offsets = [0, 128], sizes = [32, 64], strides = [1, 1]} : vector<32x192xf32> to vector<32x64xf32>
    %224 = arith.mulf %220, %223 : vector<32x64xf32>
    %225 = arith.addf %222, %224 : vector<32x64xf32>
    %226 = math.tanh %225 : vector<32x64xf32>
    %cst_61 = arith.constant 1.000000e+00 : f32
    %227 = vector.broadcast %cst_61 : f32 to vector<32x64xf32>
    %228 = arith.subf %227, %221 : vector<32x64xf32>
    %229 = arith.mulf %228, %226 : vector<32x64xf32>
    %230 = arith.mulf %221, %199 : vector<32x64xf32>
    %231 = arith.addf %229, %230 : vector<32x64xf32>
    %232 = arith.truncf %231 : vector<32x64xf32> to vector<32x64xbf16>
    %233 = arith.index_cast %c6_i32 : i32 to index
    %c0_62 = arith.constant 0 : index
    %c0_63 = arith.constant 0 : index
    %234 = vector.load %arg13[%233, %c0_62, %c0_63] : memref<8x32x64xbf16, #tpu.memory_space<vmem>>, vector<1x32x64xbf16>
    %235 = vector.shape_cast %234 : vector<1x32x64xbf16> to vector<32x64xbf16>
    %236 = vector.shape_cast %232 : vector<32x64xbf16> to vector<1x32x64xbf16>
    tpu.vector_store %arg13[%233, %c0_62, %c0_63], %236 {strides = array<i32>} : memref<8x32x64xbf16, #tpu.memory_space<vmem>>, vector<1x32x64xbf16>,
    %c7_i32 = arith.constant 7 : i32
    %237 = arith.truncf %231 : vector<32x64xf32> to vector<32x64xbf16>
    %cst_64 = arith.constant dense<0.000000e+00> : vector<32x192xf32>
    %238 = tpu.matmul %237, %10, %cst_64 {dimension_numbers = #tpu.dot_dimension_numbers<[1], [0], [0], [1], [0, 0, 1, 1], [], []>} : vector<32x64xbf16>, vector<64x192xbf16>, vector<32x192xf32> -> vector<32x192xf32>
    %239 = vector.broadcast %11 : vector<1x192xf32> to vector<32x192xf32>
    %240 = arith.addf %238, %239 : vector<32x192xf32>
    %241 = arith.index_cast %c7_i32 : i32 to index
    %c0_65 = arith.constant 0 : index
    %c0_66 = arith.constant 0 : index
    %242 = vector.load %arg12[%241, %c0_65, %c0_66] : memref<8x32x192xf32, #tpu.memory_space<vmem>>, vector<1x32x192xf32>
    %243 = vector.shape_cast %242 : vector<1x32x192xf32> to vector<32x192xf32>
    %244 = vector.extract_strided_slice %243 {offsets = [0, 0], sizes = [32, 128], strides = [1, 1]} : vector<32x192xf32> to vector<32x128xf32>
    %245 = vector.extract_strided_slice %240 {offsets = [0, 0], sizes = [32, 128], strides = [1, 1]} : vector<32x192xf32> to vector<32x128xf32>
    %246 = arith.addf %244, %245 : vector<32x128xf32>
    %247 = arith.negf %246 : vector<32x128xf32>
    %248 = math.exp %247 : vector<32x128xf32>
    %cst_67 = arith.constant 1.000000e+00 : f32
    %249 = vector.broadcast %cst_67 : f32 to vector<32x128xf32>
    %250 = arith.addf %249, %248 : vector<32x128xf32>
    %251 = arith.divf %249, %250 : vector<32x128xf32>
    %252 = vector.extract_strided_slice %251 {offsets = [0, 0], sizes = [32, 64], strides = [1, 1]} : vector<32x128xf32> to vector<32x64xf32>
    %253 = vector.extract_strided_slice %251 {offsets = [0, 64], sizes = [32, 64], strides = [1, 1]} : vector<32x128xf32> to vector<32x64xf32>
    %254 = vector.extract_strided_slice %243 {offsets = [0, 128], sizes = [32, 64], strides = [1, 1]} : vector<32x192xf32> to vector<32x64xf32>
    %255 = vector.extract_strided_slice %240 {offsets = [0, 128], sizes = [32, 64], strides = [1, 1]} : vector<32x192xf32> to vector<32x64xf32>
    %256 = arith.mulf %252, %255 : vector<32x64xf32>
    %257 = arith.addf %254, %256 : vector<32x64xf32>
    %258 = math.tanh %257 : vector<32x64xf32>
    %cst_68 = arith.constant 1.000000e+00 : f32
    %259 = vector.broadcast %cst_68 : f32 to vector<32x64xf32>
    %260 = arith.subf %259, %253 : vector<32x64xf32>
    %261 = arith.mulf %260, %258 : vector<32x64xf32>
    %262 = arith.mulf %253, %231 : vector<32x64xf32>
    %263 = arith.addf %261, %262 : vector<32x64xf32>
    %264 = arith.truncf %263 : vector<32x64xf32> to vector<32x64xbf16>
    %265 = arith.index_cast %c7_i32 : i32 to index
    %c0_69 = arith.constant 0 : index
    %c0_70 = arith.constant 0 : index
    %266 = vector.load %arg13[%265, %c0_69, %c0_70] : memref<8x32x64xbf16, #tpu.memory_space<vmem>>, vector<1x32x64xbf16>
    %267 = vector.shape_cast %266 : vector<1x32x64xbf16> to vector<32x64xbf16>
    %268 = vector.shape_cast %264 : vector<32x64xbf16> to vector<1x32x64xbf16>
    tpu.vector_store %arg13[%265, %c0_69, %c0_70], %268 {strides = array<i32>} : memref<8x32x64xbf16, #tpu.memory_space<vmem>>, vector<1x32x64xbf16>,
    %c8_i32 = arith.constant 8 : i32
    %c0_71 = arith.constant 0 : index
    %c0_72 = arith.constant 0 : index
    %269 = vector.load %arg11[%c0_71, %c0_72] : memref<32x64xf32, #tpu.memory_space<vmem>>, vector<32x64xf32>
    tpu.vector_store %arg11[%c0_71, %c0_72], %263 {strides = array<i32>} : memref<32x64xf32, #tpu.memory_space<vmem>>, vector<32x64xf32>,
    %c0_73 = arith.constant 0 : index
    %c0_74 = arith.constant 0 : index
    %c0_75 = arith.constant 0 : index
    %270 = vector.load %arg13[%c0_73, %c0_74, %c0_75] : memref<8x32x64xbf16, #tpu.memory_space<vmem>>, vector<8x32x64xbf16>
    %271 = vector.shape_cast %270 : vector<8x32x64xbf16> to vector<256x64xbf16>
    %c0_76 = arith.constant 0 : index
    %c0_77 = arith.constant 0 : index
    %272 = vector.load %arg7[%c0_76, %c0_77] : memref<64x64xbf16, #tpu.memory_space<vmem>>, vector<64x64xbf16>
    %cst_78 = arith.constant dense<0.000000e+00> : vector<256x64xf32>
    %273 = tpu.matmul %271, %272, %cst_78 {dimension_numbers = #tpu.dot_dimension_numbers<[1], [0], [0], [1], [0, 0, 1, 1], [], []>} : vector<256x64xbf16>, vector<64x64xbf16>, vector<256x64xf32> -> vector<256x64xf32>
    %c0_79 = arith.constant 0 : index
    %c0_80 = arith.constant 0 : index
    %274 = vector.load %arg8[%c0_79, %c0_80] : memref<1x64xf32, #tpu.memory_space<vmem>>, vector<1x64xf32>
    %275 = vector.broadcast %274 : vector<1x64xf32> to vector<256x64xf32>
    %276 = arith.mulf %273, %275 : vector<256x64xf32>
    %c0_81 = arith.constant 0 : index
    %c0_82 = arith.constant 0 : index
    %277 = vector.load %arg9[%c0_81, %c0_82] : memref<1x64xf32, #tpu.memory_space<vmem>>, vector<1x64xf32>
    %278 = vector.broadcast %277 : vector<1x64xf32> to vector<256x64xf32>
    %279 = arith.addf %276, %278 : vector<256x64xf32>
    %cst_83 = arith.constant 0.000000e+00 : f32
    %280 = vector.broadcast %cst_83 : f32 to vector<256x64xf32>
    %281 = arith.maximumf %279, %280 : vector<256x64xf32>
    %282 = arith.addf %281, %1 : vector<256x64xf32>
    %283 = vector.shape_cast %282 : vector<256x64xf32> to vector<8x32x64xf32>
    %c0_84 = arith.constant 0 : index
    %c0_85 = arith.constant 0 : index
    %c0_86 = arith.constant 0 : index
    %284 = vector.load %arg10[%c0_84, %c0_85, %c0_86] : memref<8x32x64xf32, #tpu.memory_space<vmem>>, vector<8x32x64xf32>
    tpu.vector_store %arg10[%c0_84, %c0_85, %c0_86], %283 {strides = array<i32>} : memref<8x32x64xf32, #tpu.memory_space<vmem>>, vector<8x32x64xf32>,
    return
  }
  func.func @transform_0(%arg0: i32) -> (i32, i32, i32) {
    %c0_i32 = arith.constant 0 : i32
    %c0_i32_0 = arith.constant 0 : i32
    %c0_i32_1 = arith.constant 0 : i32
    return %c0_i32, %arg0, %c0_i32_0 : i32, i32, i32
  }
  func.func @transform_1(%arg0: i32) -> (i32, i32) {
    %c0_i32 = arith.constant 0 : i32
    %c0_i32_0 = arith.constant 0 : i32
    %c0_i32_1 = arith.constant 0 : i32
    return %c0_i32, %c0_i32_0 : i32, i32
  }
  func.func @transform_2(%arg0: i32) -> (i32, i32) {
    %c0_i32 = arith.constant 0 : i32
    %c0_i32_0 = arith.constant 0 : i32
    %c0_i32_1 = arith.constant 0 : i32
    return %c0_i32, %c0_i32_0 : i32, i32
  }
  func.func @transform_3(%arg0: i32) -> (i32, i32) {
    %c0_i32 = arith.constant 0 : i32
    %c0_i32_0 = arith.constant 0 : i32
    %c0_i32_1 = arith.constant 0 : i32
    return %c0_i32, %c0_i32_0 : i32, i32
  }
  func.func @transform_4(%arg0: i32) -> (i32, i32) {
    %c0_i32 = arith.constant 0 : i32
    %c0_i32_0 = arith.constant 0 : i32
    %c0_i32_1 = arith.constant 0 : i32
    return %c0_i32, %c0_i32_0 : i32, i32
  }
  func.func @transform_5(%arg0: i32) -> (i32, i32) {
    %c0_i32 = arith.constant 0 : i32
    %c0_i32_0 = arith.constant 0 : i32
    return %arg0, %c0_i32 : i32, i32
  }
  func.func @transform_6(%arg0: i32) -> (i32, i32) {
    %c0_i32 = arith.constant 0 : i32
    %c0_i32_0 = arith.constant 0 : i32
    %c0_i32_1 = arith.constant 0 : i32
    return %c0_i32, %c0_i32_0 : i32, i32
  }
  func.func @transform_7(%arg0: i32) -> (i32, i32) {
    %c0_i32 = arith.constant 0 : i32
    %c0_i32_0 = arith.constant 0 : i32
    %c0_i32_1 = arith.constant 0 : i32
    return %c0_i32, %c0_i32_0 : i32, i32
  }
  func.func @transform_8(%arg0: i32) -> (i32, i32) {
    %c0_i32 = arith.constant 0 : i32
    %c0_i32_0 = arith.constant 0 : i32
    %c0_i32_1 = arith.constant 0 : i32
    return %c0_i32, %c0_i32_0 : i32, i32
  }
  func.func @transform_9(%arg0: i32) -> (i32, i32, i32) {
    %c0_i32 = arith.constant 0 : i32
    %c0_i32_0 = arith.constant 0 : i32
    %c0_i32_1 = arith.constant 0 : i32
    return %c0_i32, %arg0, %c0_i32_0 : i32, i32, i32
  }
  func.func @transform_10(%arg0: i32) -> (i32, i32) {
    %c0_i32 = arith.constant 0 : i32
    %c0_i32_0 = arith.constant 0 : i32
    return %arg0, %c0_i32 : i32, i32
  }
}

</mosaic_0001>

<bundles_post_ra>
// kernel: tgru_block2_forward.1
= control target key start
LH: loop header
LB: loop body
LE: loop exit
PB: predicated region body
PF: predicated region fallthrough
CT: control target
= control target key end

     0   :  { %16 = vsyncpa [#allocation5], 0  ;;  %s4077_s0 = inlined_call_operand.hbm [shape: f32[8,32,64], index: 0, kind: input, shape index: {}]   ;;  %s4078_s1 = inlined_call_operand.hbm [shape: bf16[64,192], index: 1, kind: input, shape index: {}]   ;;  %s4079_s2 = inlined_call_operand.hbm [shape: f32[1,192], index: 2, kind: input, shape index: {}]   ;;  %s4080_s3 = inlined_call_operand.hbm [shape: bf16[64,192], index: 3, kind: input, shape index: {}]   ;;  %s4081_s4 = inlined_call_operand.hbm [shape: f32[1,192], index: 4, kind: input, shape index: {}]   ;;  %s4082_s5 = inlined_call_operand.hbm [shape: f32[32,64], index: 5, kind: input, shape index: {}]   ;;  %s4083_s6 = inlined_call_operand.hbm [shape: bf16[64,64], index: 6, kind: input, shape index: {}]   ;;  %s4084_s7 = inlined_call_operand.hbm [shape: f32[1,64], index: 7, kind: input, shape index: {}]   ;;  %s4085_s8 = inlined_call_operand.hbm [shape: f32[1,64], index: 8, kind: input, shape index: {}]   ;;  %s4086_s9 = inlined_call_operand.hbm [shape: f32[8,32,64], index: 9, kind: output, shape index: {0}]   ;;  %s4087_s10 = inlined_call_operand.hbm [shape: f32[32,64], index: 10, kind: output, shape index: {1}]  }
   0x1   :  { %17 = vsyncpa [#allocation8], 0 }
   0x2   :  { %18 = vsyncpa [#allocation11], 0 }
   0x3   :  { %19 = vsyncpa [#allocation14], 0 }
   0x4   :  { %20 = vsyncpa [#allocation17], 0 }
   0x5   :  { %21 = vsyncpa [#allocation6], 0 }
   0x6   :  { %22 = vsyncpa [#allocation21], 0  ;;  %s3065_s13 = smov [#allocation7]   ;;  %s3066_s15 = smov [#allocation10]  }
   0x7   :  { %s40_s14 = sshll.u32 %s3065_s13, 4  ;;  %s62_s16 = sshll.u32 %s3066_s15, 4  ;;  %s41_s14 = int_to_ptr.vmem [resolvable:$true] %s40_s14  ;;  %s3136_s16 = int_to_ptr.vmem [resolvable:$true] %s62_s16 }
   0x8   :  { %s2809_s19 = scalar_lea.hbm %s4078_s1, 1024 }
   0x9   :  { %p2810_p0 = scmp.ne.s32.totalorder %s4078_s1, %s2809_s19  ;;  %p2813_p1 = scmp.lt.u32.totalorder %s2809_s19, %s4078_s1 }
   0xb   :  { %p2815_p2 = pnand %p2813_p1, %p2810_p0 }
   0xd   :  { %2818 = shalt.err (!%p2815_p2)
}
   0xe   :  { %s2819_s24 = scalar_lea.vmem %s41_s14, 1024  ;;  %p2824_p4 = scmp.lt.s32.totalorder %s41_s14, %s41_s14 }
   0xf   :  { %p2820_p3 = scmp.ne.s32.totalorder %s41_s14, %s2819_s24  ;;  %p2825_p5 = scmp.lt.s32.totalorder %s2819_s24, %s2819_s24 }
  0x11   :  { %p2826_p6 = por %p2825_p5, %p2824_p4 }
  0x13   :  { %p2827_p7 = pnand %p2826_p6, %p2820_p3 }
  0x15   :  { %2830 = shalt.err (!%p2827_p7)
}
  0x16   :  { %s3067_s25 = smov 128   ;;  %s3068_s26 = smov 8  }
  0x17   :  { %46 = dma.hbm_to_vmem [thread:$0]  %s4078_s1, 1024, %s41_s14, [#allocation8], %s3067_s25, %s3067_s25, %s3068_s26  }
  0x18   :  { %s2831_s11 = scalar_lea.hbm %s4080_s3, 1024 }
  0x19   :  { %p2832_p8 = scmp.ne.s32.totalorder %s4080_s3, %s2831_s11  ;;  %p2835_p9 = scmp.lt.u32.totalorder %s2831_s11, %s4080_s3 }
  0x1b   :  { %p2837_p10 = pnand %p2835_p9, %p2832_p8 }
  0x1d   :  { %2840 = shalt.err (!%p2837_p10)
}
  0x1e   :  { %s2841_s18 = scalar_lea.vmem %s3136_s16, 1024  ;;  %p2846_p12 = scmp.lt.s32.totalorder %s3136_s16, %s3136_s16 }
  0x1f   :  { %p2842_p11 = scmp.ne.s32.totalorder %s3136_s16, %s2841_s18  ;;  %p2847_p13 = scmp.lt.s32.totalorder %s2841_s18, %s2841_s18 }
  0x21   :  { %p2848_p0 = por %p2847_p13, %p2846_p12 }
  0x23   :  { %p2849_p1 = pnand %p2848_p0, %p2842_p11 }
  0x25   :  { %2852 = shalt.err (!%p2849_p1)
}
  0x26   :  { %68 = dma.hbm_to_vmem [thread:$0]  %s4080_s3, 1024, %s3136_s16, [#allocation11], %s3067_s25, %s3067_s25, %s3068_s26  }
  0x27   :  { %s3069_s19 = smov [#allocation13]   ;;  %s3070_s21 = smov [#allocation16]  }
  0x28   :  { %s84_s20 = sshll.u32 %s3069_s19, 4  ;;  %s109_s22 = sshll.u32 %s3070_s21, 4  ;;  %s85_s20 = int_to_ptr.vmem [resolvable:$true] %s84_s20  ;;  %s110_s22 = int_to_ptr.vmem [resolvable:$true] %s109_s22 }
  0x29   :  { %s2853_s27 = scalar_lea.hbm %s4082_s5, 512 }
  0x2a   :  { %p2854_p2 = scmp.ne.s32.totalorder %s4082_s5, %s2853_s27  ;;  %p2857_p3 = scmp.lt.u32.totalorder %s2853_s27, %s4082_s5 }
  0x2c   :  { %p2859_p4 = pnand %p2857_p3, %p2854_p2 }
  0x2e   :  { %2862 = shalt.err (!%p2859_p4)
}
  0x2f   :  { %s2863_s3 = scalar_lea.vmem %s85_s20, 512  ;;  %p2868_p6 = scmp.lt.s32.totalorder %s85_s20, %s85_s20 }
  0x30   :  { %p2864_p5 = scmp.ne.s32.totalorder %s85_s20, %s2863_s3  ;;  %p2869_p7 = scmp.lt.s32.totalorder %s2863_s3, %s2863_s3 }
  0x32   :  { %p2870_p8 = por %p2869_p7, %p2868_p6 }
  0x34   :  { %p2871_p9 = pnand %p2870_p8, %p2864_p5 }
  0x36   :  { %2874 = shalt.err (!%p2871_p9)
}
  0x37   :  { %90 = dma.hbm_to_vmem [thread:$0]  %s4082_s5, 512, %s85_s20, [#allocation14], %s3067_s25, %s3067_s25, %s3068_s26  }
  0x38   :  { %s2875_s17 = scalar_lea.hbm %s4084_s7, 16 }
  0x39   :  { %p2876_p10 = scmp.ne.s32.totalorder %s4084_s7, %s2875_s17  ;;  %p2879_p11 = scmp.lt.u32.totalorder %s2875_s17, %s4084_s7 }
  0x3b   :  { %p2881_p12 = pnand %p2879_p11, %p2876_p10 }
  0x3d   :  { %2884 = shalt.err (!%p2881_p12)
}
  0x3e   :  { %s2885_s21 = scalar_lea.vmem %s110_s22, 16  ;;  %s2889_s23 = scalar_lea.vmem %s110_s22, 32 }
  0x3f   :  { %p2886_p13 = scmp.ne.s32.totalorder %s110_s22, %s2885_s21  ;;  %p2890_p0 = scmp.lt.s32.totalorder %s110_s22, %s110_s22 }
  0x40   :  { %p2891_p1 = scmp.lt.s32.totalorder %s2889_s23, %s2885_s21 }
  0x42   :  { %p2892_p2 = por %p2891_p1, %p2890_p0 }
  0x44   :  { %p2893_p3 = pnand %p2892_p2, %p2886_p13 }
  0x46   :  { %2896 = shalt.err (!%p2893_p3)
}
  0x47   :  { %112 = dma.hbm_to_vmem [thread:$0]  %s4084_s7, 16, %s110_s22, [#allocation17]  }
  0x48   :  { %s3071_s24 = smov [#allocation4]   ;;  %s3072_s28 = smov [#allocation9]  }
  0x49   :  { %s28_s27 = sshll.u32 %s3071_s24, 4  ;;  %s53_s29 = sshll.u32 %s3072_s28, 4  ;;  %s29_s27 = int_to_ptr.vmem [resolvable:$true] %s28_s27  ;;  %s54_s29 = int_to_ptr.vmem [resolvable:$true] %s53_s29 }
  0x4a   :  { %s2897_s3 = scalar_lea.hbm %s4077_s0, 4096 }
  0x4b   :  { %p2898_p4 = scmp.ne.s32.totalorder %s4077_s0, %s2897_s3  ;;  %p2901_p5 = scmp.lt.u32.totalorder %s2897_s3, %s4077_s0 }
  0x4d   :  { %p2903_p6 = pnand %p2901_p5, %p2898_p4 }
  0x4f   :  { %2906 = shalt.err (!%p2903_p6)
}
  0x50   :  { %s2907_s7 = scalar_lea.vmem %s29_s27, 4096  ;;  %p2912_p8 = scmp.lt.s32.totalorder %s29_s27, %s29_s27 }
  0x51   :  { %p2908_p7 = scmp.ne.s32.totalorder %s29_s27, %s2907_s7  ;;  %p2913_p9 = scmp.lt.s32.totalorder %s2907_s7, %s2907_s7 }
  0x53   :  { %p2914_p10 = por %p2913_p9, %p2912_p8 }
  0x55   :  { %p2915_p11 = pnand %p2914_p10, %p2908_p7 }
  0x57   :  { %2918 = shalt.err (!%p2915_p11)
}
  0x58   :  { %34 = dma.hbm_to_vmem [thread:$0]  %s4077_s0, 4096, %s29_s27, [#allocation5], %s3067_s25, %s3067_s25, %s3068_s26  }
  0x59   :  { %s2919_s14 = scalar_lea.hbm %s4079_s2, 32 }
  0x5a   :  { %p2920_p12 = scmp.ne.s32.totalorder %s4079_s2, %s2919_s14  ;;  %p2923_p13 = scmp.lt.u32.totalorder %s2919_s14, %s4079_s2 }
  0x5c   :  { %p2925_p0 = pnand %p2923_p13, %p2920_p12 }
  0x5e   :  { %2928 = shalt.err (!%p2925_p0)
}
  0x5f   :  { %s2929_s20 = scalar_lea.vmem %s54_s29, 32  ;;  %p2934_p2 = scmp.lt.s32.totalorder %s54_s29, %s54_s29 }
  0x60   :  { %p2930_p1 = scmp.ne.s32.totalorder %s54_s29, %s2929_s20  ;;  %p2935_p3 = scmp.lt.s32.totalorder %s2929_s20, %s2929_s20 }
  0x62   :  { %p2936_p4 = por %p2935_p3, %p2934_p2 }
  0x64   :  { %p2937_p5 = pnand %p2936_p4, %p2930_p1 }
  0x66   :  { %2940 = shalt.err (!%p2937_p5)
}
  0x67   :  { %56 = dma.hbm_to_vmem [thread:$0]  %s4079_s2, 32, %s54_s29, [#allocation8]  }
  0x68   :  { %s3073_s27 = smov [#allocation12]   ;;  %s3074_s30 = smov [#allocation15]  }
  0x69   :  { %s75_s28 = sshll.u32 %s3073_s27, 4  ;;  %s96_s11 = sshll.u32 %s3074_s30, 4  ;;  %s76_s28 = int_to_ptr.vmem [resolvable:$true] %s75_s28  ;;  %s3227_s11 = int_to_ptr.vmem [resolvable:$true] %s96_s11 }
  0x6a   :  { %s2941_s12 = scalar_lea.hbm %s4081_s4, 32 }
  0x6b   :  { %p2942_p6 = scmp.ne.s32.totalorder %s4081_s4, %s2941_s12  ;;  %p2945_p7 = scmp.lt.u32.totalorder %s2941_s12, %s4081_s4 }
  0x6d   :  { %p2947_p8 = pnand %p2945_p7, %p2942_p6 }
  0x6f   :  { %2950 = shalt.err (!%p2947_p8)
}
  0x70   :  { %s2951_s2 = scalar_lea.vmem %s76_s28, 32  ;;  %p2956_p10 = scmp.lt.s32.totalorder %s76_s28, %s76_s28 }
  0x71   :  { %p2952_p9 = scmp.ne.s32.totalorder %s76_s28, %s2951_s2  ;;  %p2957_p11 = scmp.lt.s32.totalorder %s2951_s2, %s2951_s2 }
  0x73   :  { %p2958_p12 = por %p2957_p11, %p2956_p10 }
  0x75   :  { %p2959_p13 = pnand %p2958_p12, %p2952_p9 }
  0x77   :  { %2962 = shalt.err (!%p2959_p13)
}
  0x78   :  { %78 = dma.hbm_to_vmem [thread:$0]  %s4081_s4, 32, %s76_s28, [#allocation11]  }
  0x79   :  { %s2963_s14 = scalar_lea.hbm %s4083_s6, 512 }
  0x7a   :  { %p2964_p0 = scmp.ne.s32.totalorder %s4083_s6, %s2963_s14  ;;  %p2967_p1 = scmp.lt.u32.totalorder %s2963_s14, %s4083_s6 }
  0x7c   :  { %p2969_p2 = pnand %p2967_p1, %p2964_p0 }
  0x7e   :  { %2972 = shalt.err (!%p2969_p2)
}
  0x7f   :  { %s2973_s20 = scalar_lea.vmem %s3227_s11, 512  ;;  %p2978_p4 = scmp.lt.s32.totalorder %s3227_s11, %s3227_s11 }
  0x80   :  { %p2974_p3 = scmp.ne.s32.totalorder %s3227_s11, %s2973_s20  ;;  %p2979_p5 = scmp.lt.s32.totalorder %s2973_s20, %s2973_s20 }
  0x82   :  { %p2980_p6 = por %p2979_p5, %p2978_p4 }
  0x84   :  { %p2981_p7 = pnand %p2980_p6, %p2974_p3 }
  0x86   :  { %2984 = shalt.err (!%p2981_p7)
}
  0x87   :  { %s3075_s4 = smov 64   ;;  %s3076_s0 = smov 4  }
  0x88   :  { %102 = dma.hbm_to_vmem [thread:$0]  %s4083_s6, 512, %s3227_s11, [#allocation14], %s3075_s4, %s3075_s4, %s3076_s0  }
  0x89   :  { %s3077_s28 = smov [#allocation18]   ;;  %s2985_s12 = scalar_lea.hbm %s4085_s8, 16 }
  0x8a   :  { %s119_s30 = sshll.u32 %s3077_s28, 4  ;;  %p2986_p8 = scmp.ne.s32.totalorder %s4085_s8, %s2985_s12  ;;  %s120_s30 = int_to_ptr.vmem [resolvable:$true] %s119_s30 }
  0x8b   :  { %p2989_p9 = scmp.lt.u32.totalorder %s2985_s12, %s4085_s8 }
  0x8d   :  { %p2991_p10 = pnand %p2989_p9, %p2986_p8 }
  0x8f   :  { %2994 = shalt.err (!%p2991_p10)
}
  0x90   :  { %s2995_s2 = scalar_lea.vmem %s120_s30, 16  ;;  %s2999_s6 = scalar_lea.vmem %s120_s30, 32 }
  0x91   :  { %p2996_p11 = scmp.ne.s32.totalorder %s120_s30, %s2995_s2  ;;  %p3000_p12 = scmp.lt.s32.totalorder %s120_s30, %s120_s30 }
  0x92   :  { %p3001_p13 = scmp.lt.s32.totalorder %s2999_s6, %s2995_s2 }
  0x94   :  { %p3002_p0 = por %p3001_p13, %p3000_p12 }
  0x96   :  { %p3003_p1 = pnand %p3002_p0, %p2996_p11 }
  0x98   :  { %3006 = shalt.err (!%p3003_p1)
}
  0x99   :  { %122 = dma.hbm_to_vmem [thread:$0]  %s4085_s8, 16, %s120_s30, [#allocation17]  }
  0x9a   :  { %3051 = dma.done.wait [#allocation5], 4096  }
  0x9b   :  { %3052 = vsyncadd [#allocation5], 4294963200 }
  0x9c   :  { %3053 = dma.done.wait [#allocation8], 1056  }
  0x9d   :  { %3054 = vsyncadd [#allocation8], 4294966240 }
  0x9e   :  { %3055 = dma.done.wait [#allocation11], 1056  }
  0x9f   :  { %3056 = vsyncadd [#allocation11], 4294966240 }
  0xa0   :  { %3057 = dma.done.wait [#allocation14], 1024  }
  0xa1   :  { %3058 = vsyncadd [#allocation14], 4294966272 }
  0xa2   :  { %3059 = dma.done.wait [#allocation17], 32  }
  0xa3   :  { %3060 = vsyncadd [#allocation17], 4294967264  ;;  %v3078_v0 = vmov 0   ;;  %v2543_v1 = vld [vmem:[#allocation7 + $0x4] ss:$8 sps:$4 sm:$0xff]   ;;  %vm259_vm0 = vcmask 523264   ;;  %v209_v41 = vlaneseq }
  0xa4   :  { %460 = vmatprep.mubr.bf16.mxu1 %v3078_v0  ;;  %340 = vmatprep.mubr.bf16.mxu0 %v3078_v0  ;;  %v2545_v2 = vld [vmem:[#allocation7] ss:$8 sps:$4 sm:$0xff]   ;;  %v2546_v3 = vld [vmem:[#allocation7 + $0x14] ss:$8 sps:$4 sm:$0xff]   ;;  %v2548_v4 = vld [vmem:[#allocation7 + $0x10] ss:$8 sps:$4 sm:$0xff]  }
  0xa5   :  { %2519 = vmatprep.subr.bf16.mxu1 %v2543_v1  ;;  %308 = vmatprep.subr.bf16.mxu0 %v2543_v1  ;;  %v2549_v5 = vld [vmem:[#allocation7 + $0x24] ss:$8 sps:$4 sm:$0xff]   ;;  %v2551_v6 = vld [vmem:[#allocation7 + $0x20] ss:$8 sps:$4 sm:$0xff]   ;;  %v2552_v7 = vld [vmem:[#allocation7 + $0x34] ss:$8 sps:$4 sm:$0xff]  }
  0xa6   :  { %2523 = vmatpush1.bf16.msra.mxu1 %v2545_v2  ;;  %309 = vmatpush1.bf16.msra.mxu0 %v2545_v2  ;;  %v2554_v8 = vld [vmem:[#allocation7 + $0x30] ss:$8 sps:$4 sm:$0xff]   ;;  %v175_v9 = vld [vmem:[#allocation4 + $0xc0] sm:$0xff]  ;;  %v176_v10 = vld [vmem:[#allocation4 + $0xc8] sm:$0xff]  ;;  %v3340_v42 = vshrl.u32 %v209_v41, 7  ;;  %s3079_s8 = smov [#allocation20]  }
  0xa7   :  { %2520 = vmatprep.subr.bf16.mxu1 %v2546_v3  ;;  %310 = vmatprep.subr.bf16.mxu0 %v2546_v3  ;;  %v3274_v11 = vld [vmem:[#allocation4] sm:$0xff]  ;;  %v152_v12 = vld [vmem:[#allocation4 + $0x8] sm:$0xff]  ;;  %v195_v14 = vpack.c.bf16 %v176_v10, %v175_v9  ;;  %v177_v19 = vld [vmem:[#allocation4 + $0xd0] sm:$0xff]  ;;  %s2337_s17 = sshll.u32 %s3079_s8, 4  ;;  %s2338_s17 = int_to_ptr.vmem [resolvable:$true] %s2337_s17 }
  0xa8   :  { %v3276_v13 = vld [vmem:[#allocation10 + $0x4] ss:$8 sps:$4 sm:$0xff]   ;;  %v183_v15 = vpack.c.bf16 %v152_v12, %v3274_v11  ;;  %v3279_v16 = vld [vmem:[#allocation10] ss:$8 sps:$4 sm:$0xff]   ;;  %v3282_v18 = vld [vmem:[#allocation10 + $0x14] ss:$8 sps:$4 sm:$0xff]   ;;  %p3012_p3 = scmp.lt.s32.totalorder %s2338_s17, %s2338_s17 }
  0xa9   :  { %v574_v17 = vld [vmem:[#allocation13] sm:$0xff]  ;;  %v178_v20 = vld [vmem:[#allocation4 + $0xd8] sm:$0xff]  ;;  %v3291_v22 = vld [vmem:[#allocation4 + $0x10] sm:$0xff]  ;;  %v211_v43 = vsub.s32 0, %v3340_v42  ;;  %v215_v45 = vsub.s32 1, %v3340_v42  ;;  %s3007_s18 = scalar_lea.vmem %s2338_s17, 512 }
  0xaa   :  { %2524 = vmatpush1.bf16.msra.mxu1 %v2548_v4  ;;  %311 = vmatpush1.bf16.msra.mxu0 %v2548_v4  ;;  %v3289_v21 = vld [vmem:[#allocation10 + $0x10] ss:$8 sps:$4 sm:$0xff]   ;;  %v3296_v24 = vld [vmem:[#allocation10 + $0x24] ss:$8 sps:$4 sm:$0xff]   ;;  %v196_v26 = vpack.c.bf16 %v178_v20, %v177_v19  ;;  %v3303_v28 = vld [vmem:[#allocation10 + $0x20] ss:$8 sps:$4 sm:$0xff]   ;;  %p3008_p2 = scmp.ne.s32.totalorder %s2338_s17, %s3007_s18  ;;  %p3013_p4 = scmp.lt.s32.totalorder %s3007_s18, %s3007_s18 }
  0xab   :  { %2521 = vmatprep.subr.bf16.mxu1 %v2549_v5  ;;  %312 = vmatprep.subr.bf16.mxu0 %v2549_v5  ;;  %v3293_v23 = vld [vmem:[#allocation4 + $0x18] sm:$0xff]  ;;  %v575_v25 = vld [vmem:[#allocation13 + $0x8] sm:$0xff]  ;;  %v179_v30 = vld [vmem:[#allocation4 + $0xe0] sm:$0xff] }
  0xac   :  { %766 = vrot.lane.b32.xlu1 %v574_v17, %s3075_s4  ;;  %v184_v27 = vpack.c.bf16 %v3293_v23, %v3291_v22  ;;  %v3306_v29 = vld [vmem:[#allocation10 + $0x34] ss:$8 sps:$4 sm:$0xff]   ;;  %v180_v31 = vld [vmem:[#allocation4 + $0xe8] sm:$0xff]  ;;  %v3312_v32 = vld [vmem:[#allocation10 + $0x30] ss:$8 sps:$4 sm:$0xff]   ;;  %v578_v37 = vpack.c.bf16 %v575_v25, %v574_v17  ;;  %p3014_p5 = por %p3013_p4, %p3012_p3 }
  0xad   :  { %v197_v33 = vpack.c.bf16 %v180_v31, %v179_v30  ;;  %v181_v34 = vld [vmem:[#allocation4 + $0xf0] sm:$0xff]  ;;  %v182_v35 = vld [vmem:[#allocation4 + $0xf8] sm:$0xff]  ;;  %v207_v44 = vld [vmem:[#allocation9] sm:$0x3] }
  0xae   :  { %2525 = vmatpush1.bf16.msra.mxu1 %v2551_v6  ;;  %313 = vmatpush1.bf16.msra.mxu0 %v2551_v6  ;;  %v198_v36 = vpack.c.bf16 %v182_v35, %v181_v34  ;;  %v3324_v38 = vld [vmem:[#allocation13 + $0x10] sm:$0xff]  ;;  %v3326_v39 = vld [vmem:[#allocation13 + $0x18] sm:$0xff]  ;;  %v3346_v46 = vrot.slane %v207_v44, %v211_v43  ;;  %v3350_v47 = vrot.slane %v207_v44, %v215_v45  ;;  %p3015_p6 = pnand %p3014_p5, %p3008_p2 }
  0xaf   :  { %2522 = vmatprep.subr.bf16.mxu1 %v2552_v7  ;;  %314 = vmatprep.subr.bf16.mxu0 %v2552_v7  ;;  %v579_v40 = vpack.c.bf16 %v3326_v39, %v3324_v38 }
  0xb0   :  { %768 = vrot.lane.b32.xlu1 %v575_v25, %s3075_s4 }
  0xb2   :  { %2526 = vmatpush1.bf16.msra.mxu1 %v2554_v8  ;;  %315 = vmatpush1.bf16.msra.mxu0 %v2554_v8 }
  0xb3   :  { %637 = vmatprep.subr.bf16.mxu1 %v3276_v13 }
  0xb5   :  { %2377 = vmatmul.mubr.msk.bf16.vlgmr.msra.gmra.mrb[0].mxu1 %vm259_vm0, %v195_v14  ;;  %2365 = vmatmul.mubr.msk.bf16.vlgmr.msra.gmra.mrb[0].mxu0 %vm259_vm0, %v183_v15 }
  0xb6   :  { %638 = vmatpush1.bf16.msra.mxu1 %v3279_v16  ;;  %470 = vmatprep.mubr.bf16.mxu1 %v3078_v0 }
  0xb7   :  { %639 = vmatprep.subr.bf16.mxu1 %v3282_v18  ;;  %350 = vmatprep.mubr.bf16.mxu0 %v3078_v0 }
  0xba   :  { %640 = vmatpush1.bf16.msra.mxu1 %v3289_v21 }
  0xbb   :  { %641 = vmatprep.subr.bf16.mxu1 %v3296_v24 }
  0xbd   :  { %2378 = vmatmul.mubr.msk.bf16.gmra.mrb[4].mxu1 %vm259_vm0, %v196_v26  ;;  %2366 = vmatmul.mubr.msk.bf16.gmra.mrb[4].mxu0 %vm259_vm0, %v184_v27 }
  0xbe   :  { %480 = vmatprep.mubr.bf16.mxu1 %v3078_v0  ;;  %642 = vmatpush1.bf16.msra.mxu1 %v3303_v28 }
  0xbf   :  { %643 = vmatprep.subr.bf16.mxu1 %v3306_v29  ;;  %360 = vmatprep.mubr.bf16.mxu0 %v3078_v0 }
  0xc2   :  { %644 = vmatpush1.bf16.msra.mxu1 %v3312_v32 }
  0xc3   :  { %804 = vmatprep.subr.bf16.mxu1 %v3276_v13 }
  0xc5   :  { %2379 = vmatmul.mubr.msk.bf16.gmra.mrb[8].mxu1 %vm259_vm0, %v197_v33 }
  0xc6   :  { %490 = vmatprep.mubr.bf16.mxu1 %v3078_v0 }
  0xcd   :  { %2380 = vmatmul.mubr.msk.bf16.gmra.mrb[12].mxu1 %vm259_vm0, %v198_v36 }
  0xce   :  { %669 = vmatprep.mubr.bf16.mxu1 %v3078_v0 }
  0xd5   :  { %2389 = vmatmul.mubr.msk.bf16.vlgmr.msra.gmra.mrb[16].mxu1 %vm259_vm0, %v578_v37 }
  0xd6   :  { %679 = vmatprep.mubr.bf16.mxu1 %v3078_v0  ;;  %805 = vmatpush1.bf16.msra.mxu1 %v3279_v16 }
  0xd7   :  { %806 = vmatprep.subr.bf16.mxu1 %v3282_v18 }
  0xda   :  { %807 = vmatpush1.bf16.msra.mxu1 %v3289_v21 }
  0xdb   :  { %808 = vmatprep.subr.bf16.mxu1 %v3296_v24 }
  0xdd   :  { %2390 = vmatmul.mubr.msk.bf16.gmra.mrb[20].mxu1 %vm259_vm0, %v579_v40 }
  0xde   :  { %809 = vmatpush1.bf16.msra.mxu1 %v3303_v28  ;;  %836 = vmatprep.mubr.bf16.mxu1 %v3078_v0 }
  0xdf   :  { %810 = vmatprep.subr.bf16.mxu1 %v3306_v29 }
  0xe2   :  { %811 = vmatpush1.bf16.msra.mxu1 %v3312_v32 }
  0xe3   :  { %957 = vmatprep.subr.bf16.mxu1 %v3276_v13 }
 0x188   :  { %v462_v48 = vpop.f32.mrb[0].mxu1  ;;  %v342_v49 = vpop.f32.mrb[0].mxu0 }
 0x189   :  { %v463_v50 = vadd.f32 %v462_v48, %v3346_v46  ;;  %v464_v51 = vpop.f32.mrb[1].mxu1  ;;  %v3354_v52 = vadd.f32 %v342_v49, %v3346_v46  ;;  %v344_v53 = vpop.f32.mrb[1].mxu0  ;;  %v573_v48 = vld [vmem:[#allocation12] sm:$0x3] }
 0x18a   :  { %v465_v54 = vadd.f32 %v464_v51, %v3350_v47  ;;  %v466_v55 = vpop.f32.mrb[2].mxu1  ;;  %v345_v56 = vadd.f32 %v344_v53, %v3350_v47  ;;  %v346_v57 = vpop.f32.mrb[2].mxu0  ;;  %v3393_v53 = vrot.slane %v573_v48, %v211_v43 }
 0x18b   :  { %549 = vst [vmem:[#allocation2 + $0x180] sm:$0xff] %v463_v50  ;;  %v467_v58 = vadd.f32 %v466_v55, %v3346_v46  ;;  %v468_v59 = vpop.f32.mrb[3].mxu1  ;;  %v3360_v60 = vadd.f32 %v346_v57, %v3346_v46  ;;  %v348_v61 = vpop.f32.mrb[3].mxu0 }
 0x18c   :  { %550 = vst.msk [vmem:[#allocation2 + $0x188] sm:$0xff] %vm259_vm0, %v465_v54  ;;  %v469_v62 = vadd.f32 %v468_v59, %v3350_v47  ;;  %502 = vst.msk [vmem:[#allocation2 + $0x8] sm:$0xff] %vm259_vm0, %v345_v56  ;;  %v349_v63 = vadd.f32 %v348_v61, %v3350_v47 }
 0x18d   :  { %551 = vst [vmem:[#allocation2 + $0x190] sm:$0xff] %v467_v58 }
 0x18e   :  { %552 = vst.msk [vmem:[#allocation2 + $0x198] sm:$0xff] %vm259_vm0, %v469_v62  ;;  %504 = vst.msk [vmem:[#allocation2 + $0x18] sm:$0xff] %vm259_vm0, %v349_v63 }
 0x190   :  { %v472_v1 = vpop.f32.mrb[4].mxu1  ;;  %v352_v2 = vpop.f32.mrb[4].mxu0 }
 0x191   :  { %v473_v3 = vadd.f32 %v472_v1, %v3346_v46  ;;  %v474_v4 = vpop.f32.mrb[5].mxu1  ;;  %v353_v5 = vadd.f32 %v352_v2, %v3346_v46  ;;  %v354_v6 = vpop.f32.mrb[5].mxu0 }
 0x192   :  { %v475_v7 = vadd.f32 %v474_v4, %v3350_v47  ;;  %v476_v8 = vpop.f32.mrb[6].mxu1  ;;  %v355_v9 = vadd.f32 %v354_v6, %v3350_v47  ;;  %v356_v10 = vpop.f32.mrb[6].mxu0 }
 0x193   :  { %553 = vst [vmem:[#allocation2 + $0x1a0] sm:$0xff] %v473_v3  ;;  %v477_v12 = vadd.f32 %v476_v8, %v3346_v46  ;;  %v478_v14 = vpop.f32.mrb[7].mxu1  ;;  %v357_v15 = vadd.f32 %v356_v10, %v3346_v46  ;;  %v358_v17 = vpop.f32.mrb[7].mxu0 }
 0x194   :  { %554 = vst.msk [vmem:[#allocation2 + $0x1a8] sm:$0xff] %vm259_vm0, %v475_v7  ;;  %v479_v19 = vadd.f32 %v478_v14, %v3350_v47  ;;  %506 = vst.msk [vmem:[#allocation2 + $0x28] sm:$0xff] %vm259_vm0, %v355_v9  ;;  %v359_v20 = vadd.f32 %v358_v17, %v3350_v47 }
 0x195   :  { %555 = vst [vmem:[#allocation2 + $0x1b0] sm:$0xff] %v477_v12 }
 0x196   :  { %556 = vst.msk [vmem:[#allocation2 + $0x1b8] sm:$0xff] %vm259_vm0, %v479_v19  ;;  %508 = vst.msk [vmem:[#allocation2 + $0x38] sm:$0xff] %vm259_vm0, %v359_v20  ;;  %v3404_v20 = vrot.slane %v573_v48, %v215_v45 }
 0x198   :  { %v482_v25 = vpop.f32.mrb[8].mxu1 }
 0x199   :  { %v483_v26 = vadd.f32 %v482_v25, %v3346_v46  ;;  %v484_v27 = vpop.f32.mrb[9].mxu1 }
 0x19a   :  { %v485_v30 = vadd.f32 %v484_v27, %v3350_v47  ;;  %v486_v31 = vpop.f32.mrb[10].mxu1 }
 0x19b   :  { %557 = vst [vmem:[#allocation2 + $0x1c0] sm:$0xff] %v483_v26  ;;  %v487_v33 = vadd.f32 %v486_v31, %v3346_v46  ;;  %v488_v34 = vpop.f32.mrb[11].mxu1 }
 0x19c   :  { %558 = vst.msk [vmem:[#allocation2 + $0x1c8] sm:$0xff] %vm259_vm0, %v485_v30  ;;  %v489_v35 = vadd.f32 %v488_v34, %v3350_v47  ;;  %v691_v34 = vld [vmem:[#allocation2 + $0x8] sm:$0xff] }
 0x19d   :  { %559 = vst [vmem:[#allocation2 + $0x1d0] sm:$0xff] %v487_v33 }
 0x19e   :  { %560 = vst.msk [vmem:[#allocation2 + $0x1d8] sm:$0xff] %vm259_vm0, %v489_v35  ;;  %v693_v35 = vld [vmem:[#allocation2 + $0x18] sm:$0xff] }
 0x1a0   :  { %v492_v36 = vpop.f32.mrb[12].mxu1 }
 0x1a1   :  { %v493_v37 = vadd.f32 %v492_v36, %v3346_v46  ;;  %v494_v40 = vpop.f32.mrb[13].mxu1 }
 0x1a2   :  { %v495_v41 = vadd.f32 %v494_v40, %v3350_v47  ;;  %v496_v44 = vpop.f32.mrb[14].mxu1 }
 0x1a3   :  { %561 = vst [vmem:[#allocation2 + $0x1e0] sm:$0xff] %v493_v37  ;;  %v497_v49 = vadd.f32 %v496_v44, %v3346_v46  ;;  %v498_v50 = vpop.f32.mrb[15].mxu1 }
 0x1a4   :  { %562 = vst.msk [vmem:[#allocation2 + $0x1e8] sm:$0xff] %vm259_vm0, %v495_v41  ;;  %v499_v51 = vadd.f32 %v498_v50, %v3350_v47 }
 0x1a5   :  { %563 = vst [vmem:[#allocation2 + $0x1f0] sm:$0xff] %v497_v49  ;;  %v695_v49 = vld [vmem:[#allocation2 + $0x28] sm:$0xff] }
 0x1a6   :  { %564 = vst.msk [vmem:[#allocation2 + $0x1f8] sm:$0xff] %vm259_vm0, %v499_v51 }
 0x1a8   :  { %v671_v54 = vpop.f32.mrb[16].mxu1 }
 0x1a9   :  { %v672_v55 = vadd.f32 %v671_v54, %v3393_v53  ;;  %v673_v56 = vpop.f32.mrb[17].mxu1  ;;  %v697_v54 = vld [vmem:[#allocation2 + $0x38] sm:$0xff] }
 0x1aa   :  { %v675_v57 = vpop.f32.mrb[18].mxu1 }
 0x1ab   :  { %v698_v58 = vadd.f32 %v672_v55, %v3354_v52  ;;  %v676_v59 = vadd.f32 %v675_v57, %v3393_v53  ;;  %v677_v61 = vpop.f32.mrb[19].mxu1 }
 0x1ac   :  { %v678_v31 = vadd.f32 %v677_v61, %v3404_v20  ;;  %v3426_v61 = vld [vmem:[#allocation4 + $0x28] sm:$0xff] }
 0x1ad   :  { %v2391_v62 = vmul.f32 -1.442695, %v698_v58  ;;  %v699_v63 = vadd.f32 %v676_v59, %v3360_v60  ;;  %v3424_v59 = vld [vmem:[#allocation4 + $0x20] sm:$0xff] }
 0x1af   :  { %2571 = vpow2.f32 %v2391_v62  ;;  %v2392_v1 = vmul.f32 -1.442695, %v699_v63  ;;  %v185_v62 = vpack.c.bf16 %v3426_v61, %v3424_v59 }
 0x1b0   :  { %v681_v2 = vpop.f32.mrb[20].mxu1 }
 0x1b1   :  { %2573 = vpow2.f32 %v2392_v1  ;;  %v682_v43 = vadd.f32 %v681_v2, %v3393_v53  ;;  %v683_v3 = vpop.f32.mrb[21].mxu1  ;;  %2367 = vmatmul.mubr.msk.bf16.gmra.mrb[8].mxu0 %vm259_vm0, %v185_v62  ;;  %v3434_v1 = vld [vmem:[#allocation4 + $0x30] sm:$0xff]  ;;  %v3436_v2 = vld [vmem:[#allocation4 + $0x38] sm:$0xff] }
 0x1b2   :  { %v685_v4 = vpop.f32.mrb[22].mxu1  ;;  %v684_v37 = vadd.f32 %v683_v3, %v3404_v20  ;;  %370 = vmatprep.mubr.bf16.mxu0 %v3078_v0  ;;  %v159_v3 = vld [vmem:[#allocation4 + $0x40] sm:$0xff] }
 0x1b3   :  { %v700_v6 = vadd.f32 %v682_v43, %v353_v5  ;;  %v686_v7 = vadd.f32 %v685_v4, %v3393_v53  ;;  %v687_v8 = vpop.f32.mrb[23].mxu1  ;;  %v186_v43 = vpack.c.bf16 %v3436_v2, %v3434_v1  ;;  %v160_v4 = vld [vmem:[#allocation4 + $0x48] sm:$0xff] }
 0x1b4   :  { %v688_v44 = vadd.f32 %v687_v8, %v3404_v20  ;;  %v162_v8 = vld [vmem:[#allocation4 + $0x58] sm:$0xff] }
 0x1b5   :  { %v2393_v9 = vmul.f32 -1.442695, %v700_v6  ;;  %v701_v52 = vadd.f32 %v686_v7, %v357_v15  ;;  %v674_v15 = vadd.f32 %v673_v56, %v3404_v20  ;;  %v187_v6 = vpack.c.bf16 %v160_v4, %v159_v3  ;;  %v161_v7 = vld [vmem:[#allocation4 + $0x50] sm:$0xff]  ;;  %v2570_v3 = vld [vmem:[#allocation15 + $0x18] sm:$0xff]  }
 0x1b7   :  { %2575 = vpow2.f32 %v2393_v9  ;;  %v2394_v10 = vmul.f32 -1.442695, %v701_v52  ;;  %v164_v9 = vld [vmem:[#allocation4 + $0x68] sm:$0xff] }
 0x1b9   :  { %v2572_v12 = vpop.eup %2571  ;;  %2577 = vpow2.f32 %v2394_v10  ;;  %2368 = vmatmul.mubr.msk.bf16.gmra.mrb[12].mxu0 %vm259_vm0, %v186_v43  ;;  %v165_v10 = vld [vmem:[#allocation4 + $0x70] sm:$0xff] }
 0x1ba   :  { %v714_v14 = vadd.f32 1.0, %v2572_v12  ;;  %380 = vmatprep.mubr.bf16.mxu0 %v3078_v0  ;;  %v166_v12 = vld [vmem:[#allocation4 + $0x78] sm:$0xff] }
 0x1bb   :  { %v2574_v60 = vpop.eup %2573 }
 0x1bc   :  { %2579 = vrcp.f32 %v714_v14  ;;  %v715_v17 = vadd.f32 1.0, %v2574_v60  ;;  %v190_v14 = vpack.c.bf16 %v166_v12, %v165_v10  ;;  %v167_v60 = vld [vmem:[#allocation4 + $0x80] sm:$0xff] }
 0x1be   :  { %2581 = vrcp.f32 %v715_v17  ;;  %v168_v17 = vld [vmem:[#allocation4 + $0x88] sm:$0xff] }
 0x1c1   :  { %v2576_v19 = vpop.eup %2575  ;;  %2369 = vmatmul.mubr.msk.bf16.gmra.mrb[16].mxu0 %vm259_vm0, %v187_v6 }
 0x1c2   :  { %v716_v5 = vadd.f32 1.0, %v2576_v19  ;;  %390 = vmatprep.mubr.bf16.mxu0 %v3078_v0  ;;  %v191_v19 = vpack.c.bf16 %v168_v17, %v167_v60 }
 0x1c3   :  { %v2578_v25 = vpop.eup %2577 }
 0x1c4   :  { %2583 = vrcp.f32 %v716_v5  ;;  %v717_v26 = vadd.f32 1.0, %v2578_v25  ;;  %v169_v5 = vld [vmem:[#allocation4 + $0x90] sm:$0xff]  ;;  %v170_v25 = vld [vmem:[#allocation4 + $0x98] sm:$0xff] }
 0x1c6   :  { %v3407_v27 = vpop.eup %2579  ;;  %2585 = vrcp.f32 %v717_v26  ;;  %v192_v26 = vpack.c.bf16 %v170_v25, %v169_v5 }
 0x1c7   :  { %v726_v30 = vmul.f32 %v3407_v27, %v674_v15  ;;  %v171_v15 = vld [vmem:[#allocation4 + $0xa0] sm:$0xff] }
 0x1c8   :  { %v3411_v33 = vpop.eup %2581 }
 0x1c9   :  { %v727_v42 = vmul.f32 %v3411_v33, %v678_v31  ;;  %v730_v45 = vadd.f32 %v726_v30, %v691_v34  ;;  %v172_v30 = vld [vmem:[#allocation4 + $0xa8] sm:$0xff]  ;;  %v767_v34 = vpop.permute.xlu1 %766 }
 0x1ca   :  { %v193_v31 = vpack.c.bf16 %v172_v30, %v171_v15 }
 0x1cb   :  { %v731_v36 = vadd.f32 %v727_v42, %v693_v35  ;;  %2587 = vtanh.f32 %v730_v45  ;;  %v2567_v42 = vld [vmem:[#allocation15] sm:$0xff]   ;;  %v2568_v45 = vld [vmem:[#allocation15 + $0x8] sm:$0xff]  }
 0x1cc   :  { %v173_v35 = vld [vmem:[#allocation4 + $0xb0] sm:$0xff]  ;;  %2479 = vmatprep.subr.bf16.mxu0 %v2567_v42 }
 0x1cd   :  { %2589 = vtanh.f32 %v731_v36  ;;  %v174_v36 = vld [vmem:[#allocation4 + $0xb8] sm:$0xff]  ;;  %2480 = vmatpush3.bf16.msra.mxu0 %v2567_v42 }
 0x1ce   :  { %v3415_v40 = vpop.eup %2583  ;;  %2481 = vmatprep.subr.bf16.mxu0 %v2568_v45 }
 0x1cf   :  { %v728_v41 = vmul.f32 %v3415_v40, %v684_v37 }
 0x1d0   :  { %v3419_v48 = vpop.eup %2585 }
 0x1d1   :  { %v732_v50 = vadd.f32 %v728_v41, %v695_v49  ;;  %v729_v51 = vmul.f32 %v3419_v48, %v688_v44  ;;  %v194_v41 = vpack.c.bf16 %v174_v36, %v173_v35  ;;  %v738_v44 = vsub.f32 1.0, %v3407_v27  ;;  %v769_v49 = vpop.permute.xlu1 %768  ;;  %2482 = vmatpush3.bf16.msra.mxu0 %v2568_v45 }
 0x1d3   :  { %2591 = vtanh.f32 %v732_v50  ;;  %v733_v55 = vadd.f32 %v729_v51, %v697_v54  ;;  %v739_v51 = vsub.f32 1.0, %v3411_v33 }
 0x1d5   :  { %v2588_v56 = vpop.eup %2587  ;;  %2593 = vtanh.f32 %v733_v55  ;;  %v778_v55 = vmul.f32 %v3407_v27, %v767_v34 }
 0x1d6   :  { %746 = vrot.lane.b32.xlu0 %v2588_v56, %s3075_s4  ;;  %v779_v56 = vmul.f32 %v3411_v33, %v769_v49  ;;  %v740_v33 = vsub.f32 1.0, %v3415_v40 }
 0x1d7   :  { %v2590_v57 = vpop.eup %2589 }
 0x1da   :  { %748 = vrot.lane.b32.xlu0 %v2590_v57, %s3075_s4 }
 0x1dd   :  { %v2592_v58 = vpop.eup %2591 }
 0x1de   :  { %750 = vrot.lane.b32.xlu0 %v2592_v58, %s3075_s4  ;;  %v2569_v58 = vld [vmem:[#allocation15 + $0x10] sm:$0xff]  }
 0x1df   :  { %v2594_v63 = vpop.eup %2593  ;;  %2483 = vmatprep.subr.bf16.mxu0 %v2569_v58 }
 0x1e0   :  { %752 = vrot.lane.b32.xlu1 %v2594_v63, %s3075_s4  ;;  %2484 = vmatpush3.bf16.msra.mxu0 %v2569_v58 }
 0x1e1   :  { %2485 = vmatprep.subr.bf16.mxu0 %v2570_v3 }
 0x1e2   :  { %770 = vrot.lane.b32.xlu0 %v3324_v38, %s3075_s4  ;;  %v188_v38 = vpack.c.bf16 %v162_v8, %v161_v7  ;;  %v741_v7 = vsub.f32 1.0, %v3419_v48 }
 0x1e4   :  { %772 = vrot.lane.b32.xlu1 %v3326_v39, %s3075_s4  ;;  %2370 = vmatmul.mubr.msk.bf16.gmra.mrb[20].mxu0 %vm259_vm0, %v188_v38  ;;  %v163_v39 = vld [vmem:[#allocation4 + $0x60] sm:$0xff] }
 0x1e5   :  { %400 = vmatprep.mubr.bf16.mxu0 %v3078_v0  ;;  %v189_v52 = vpack.c.bf16 %v164_v9, %v163_v39  ;;  %2486 = vmatpush3.bf16.msra.mxu0 %v2570_v3 }
 0x1ec   :  { %2371 = vmatmul.mubr.msk.bf16.gmra.mrb[24].mxu0 %vm259_vm0, %v189_v52 }
 0x1ed   :  { %410 = vmatprep.mubr.bf16.mxu0 %v3078_v0 }
 0x1f4   :  { %2372 = vmatmul.mubr.msk.bf16.gmra.mrb[28].mxu0 %vm259_vm0, %v190_v14 }
 0x1f5   :  { %420 = vmatprep.mubr.bf16.mxu0 %v3078_v0 }
 0x1fc   :  { %2373 = vmatmul.mubr.msk.bf16.gmra.mrb[32].mxu0 %vm259_vm0, %v191_v19 }
 0x1fd   :  { %430 = vmatprep.mubr.bf16.mxu0 %v3078_v0 }
 0x204   :  { %2374 = vmatmul.mubr.msk.bf16.gmra.mrb[36].mxu0 %vm259_vm0, %v192_v26 }
 0x205   :  { %440 = vmatprep.mubr.bf16.mxu0 %v3078_v0 }
 0x20c   :  { %2375 = vmatmul.mubr.msk.bf16.gmra.mrb[40].mxu0 %vm259_vm0, %v193_v31 }
 0x20d   :  { %450 = vmatprep.mubr.bf16.mxu0 %v3078_v0 }
 0x214   :  { %2376 = vmatmul.mubr.msk.bf16.gmra.mrb[44].mxu0 %vm259_vm0, %v194_v41 }
 0x248   :  { %v747_v37 = vpop.permute.xlu0 %746 }
 0x249   :  { %v758_v50 = vmul.f32 %v747_v37, %v738_v44 }
 0x24b   :  { %v3465_v62 = vadd.f32 %v778_v55, %v758_v50 }
 0x24c   :  { %v749_v54 = vpop.permute.xlu0 %748 }
 0x24d   :  { %v759_v57 = vmul.f32 %v749_v54, %v739_v51 }
 0x24f   :  { %v3467_v63 = vadd.f32 %v779_v56, %v759_v57 }
 0x250   :  { %v751_v43 = vpop.permute.xlu0 %750 }
 0x251   :  { %v786_v4 = vpack.c.bf16 %v3467_v63, %v3465_v62  ;;  %v760_v39 = vmul.f32 %v751_v43, %v740_v33 }
 0x252   :  { %v753_v6 = vpop.permute.xlu1 %752 }
 0x253   :  { %790 = vrot.lane.b32.xlu0 %v786_v4, %s3075_s4  ;;  %v761_v9 = vmul.f32 %v753_v6, %v741_v7 }
 0x254   :  { %v771_v27 = vpop.permute.xlu0 %770 }
 0x255   :  { %v780_v8 = vmul.f32 %v3415_v40, %v771_v27 }
 0x256   :  { %v773_v38 = vpop.permute.xlu1 %772 }
 0x257   :  { %v781_v52 = vmul.f32 %v3419_v48, %v773_v38  ;;  %v3476_v10 = vadd.f32 %v780_v8, %v760_v39 }
 0x259   :  { %v3478_v12 = vadd.f32 %v781_v52, %v761_v9 }
 0x25b   :  { %v787_v14 = vpack.c.bf16 %v3478_v12, %v3476_v10 }
 0x25d   :  { %792 = vrot.lane.b32.xlu1 %v787_v14, %s3075_s4 }
 0x284   :  { %v362_v60 = vpop.f32.mrb[8].mxu0 }
 0x285   :  { %v3484_v17 = vadd.f32 %v362_v60, %v3346_v46  ;;  %v364_v40 = vpop.f32.mrb[9].mxu0 }
 0x286   :  { %v365_v19 = vadd.f32 %v364_v40, %v3350_v47  ;;  %v366_v5 = vpop.f32.mrb[10].mxu0 }
 0x287   :  { %v3488_v25 = vadd.f32 %v366_v5, %v3346_v46  ;;  %v368_v48 = vpop.f32.mrb[11].mxu0 }
 0x288   :  { %510 = vst.msk [vmem:[#allocation2 + $0x48] sm:$0xff] %vm259_vm0, %v365_v19  ;;  %v369_v26 = vadd.f32 %v368_v48, %v3350_v47 }
 0x28a   :  { %512 = vst.msk [vmem:[#allocation2 + $0x58] sm:$0xff] %vm259_vm0, %v369_v26 }
 0x28c   :  { %v372_v15 = vpop.f32.mrb[12].mxu0 }
 0x28d   :  { %v3494_v30 = vadd.f32 %v372_v15, %v3346_v46  ;;  %v374_v31 = vpop.f32.mrb[13].mxu0 }
 0x28e   :  { %v375_v34 = vadd.f32 %v374_v31, %v3350_v47  ;;  %v376_v42 = vpop.f32.mrb[14].mxu0 }
 0x28f   :  { %v3498_v45 = vadd.f32 %v376_v42, %v3346_v46  ;;  %v378_v35 = vpop.f32.mrb[15].mxu0 }
 0x290   :  { %514 = vst.msk [vmem:[#allocation2 + $0x68] sm:$0xff] %vm259_vm0, %v375_v34  ;;  %v379_v36 = vadd.f32 %v378_v35, %v3350_v47 }
 0x292   :  { %516 = vst.msk [vmem:[#allocation2 + $0x78] sm:$0xff] %vm259_vm0, %v379_v36 }
 0x294   :  { %v382_v37 = vpop.f32.mrb[16].mxu0 }
 0x295   :  { %v3504_v41 = vadd.f32 %v382_v37, %v3346_v46  ;;  %v384_v44 = vpop.f32.mrb[17].mxu0 }
 0x296   :  { %v385_v50 = vadd.f32 %v384_v44, %v3350_v47  ;;  %v386_v51 = vpop.f32.mrb[18].mxu0 }
 0x297   :  { %v3510_v54 = vadd.f32 %v386_v51, %v3346_v46  ;;  %v388_v55 = vpop.f32.mrb[19].mxu0 }
 0x298   :  { %518 = vst.msk [vmem:[#allocation2 + $0x88] sm:$0xff] %vm259_vm0, %v385_v50  ;;  %v389_v56 = vadd.f32 %v388_v55, %v3350_v47 }
 0x29a   :  { %520 = vst.msk [vmem:[#allocation2 + $0x98] sm:$0xff] %vm259_vm0, %v389_v56 }
 0x2b7   :  { %v392_v57 = vpop.f32.mrb[20].mxu0 }
 0x2b8   :  { %v3520_v58 = vadd.f32 %v392_v57, %v3346_v46  ;;  %v394_v43 = vpop.f32.mrb[21].mxu0 }
 0x2b9   :  { %v395_v4 = vadd.f32 %v394_v43, %v3350_v47  ;;  %v396_v6 = vpop.f32.mrb[22].mxu0 }
 0x2bb   :  { %522 = vst.msk [vmem:[#allocation2 + $0xa8] sm:$0xff] %vm259_vm0, %v395_v4 }
 0x2c5   :  { %v791_v49 = vpop.permute.xlu0 %790 }
 0x2c6   :  { %796 = vst.msk [vmem:[#allocation3] sm:$0xff] %vm259_vm0, %v791_v49  ;;  %2395 = vmatmul.mubr.msk.bf16.vlgmr.msra.gmra.mrb[24].mxu1 %vm259_vm0, %v791_v49 }
 0x2c7   :  { %846 = vmatprep.mubr.bf16.mxu1 %v3078_v0  ;;  %958 = vmatpush1.bf16.msra.mxu1 %v3279_v16  ;;  %v3526_v16 = vadd.f32 %v396_v6, %v3346_v46 }
 0x2c8   :  { %959 = vmatprep.subr.bf16.mxu1 %v3282_v18  ;;  %v398_v18 = vpop.f32.mrb[23].mxu0 }
 0x2cb   :  { %960 = vmatpush1.bf16.msra.mxu1 %v3289_v21  ;;  %v399_v21 = vadd.f32 %v398_v18, %v3350_v47 }
 0x2cc   :  { %961 = vmatprep.subr.bf16.mxu1 %v3296_v24  ;;  %v402_v24 = vpop.f32.mrb[24].mxu0 }
 0x2cd   :  { %v1889_v3 = vld [vmem:[#allocation3] sm:$0xff]  ;;  %524 = vst.msk [vmem:[#allocation2 + $0xb8] sm:$0xff] %vm259_vm0, %v399_v21  ;;  %v3538_v33 = vadd.f32 %v402_v24, %v3346_v46  ;;  %v404_v7 = vpop.f32.mrb[25].mxu0 }
 0x2ce   :  { %2487 = vmatprep.mubr.msk.bf16.mxu0 %vm259_vm0, %v1889_v3  ;;  %v406_v8 = vpop.f32.mrb[26].mxu0 }
 0x2cf   :  { %v793_v27 = vpop.permute.xlu1 %792  ;;  %962 = vmatpush1.bf16.msra.mxu1 %v3303_v28  ;;  %v405_v28 = vadd.f32 %v404_v7, %v3350_v47  ;;  %v3543_v38 = vadd.f32 %v406_v8, %v3346_v46 }
 0x2d0   :  { %797 = vst.msk [vmem:[#allocation3 + $0x8] sm:$0xff] %vm259_vm0, %v793_v27  ;;  %2396 = vmatmul.mubr.msk.bf16.gmra.mrb[28].mxu1 %vm259_vm0, %v793_v27  ;;  %963 = vmatprep.subr.bf16.mxu1 %v3306_v29  ;;  %v408_v29 = vpop.f32.mrb[27].mxu0 }
 0x2d1   :  { %989 = vmatprep.mubr.bf16.mxu1 %v3078_v0  ;;  %526 = vst.msk [vmem:[#allocation2 + $0xc8] sm:$0xff] %vm259_vm0, %v405_v28  ;;  %v409_v9 = vadd.f32 %v408_v29, %v3350_v47 }
 0x2d3   :  { %964 = vmatpush1.bf16.msra.mxu1 %v3312_v32  ;;  %528 = vst.msk [vmem:[#allocation2 + $0xd8] sm:$0xff] %vm259_vm0, %v409_v9  ;;  %v412_v32 = vpop.f32.mrb[28].mxu0 }
 0x2d4   :  { %1110 = vmatprep.subr.bf16.mxu1 %v3276_v13  ;;  %v3550_v52 = vadd.f32 %v412_v32, %v3346_v46  ;;  %v414_v13 = vpop.f32.mrb[29].mxu0 }
 0x2d5   :  { %v415_v14 = vadd.f32 %v414_v13, %v3350_v47  ;;  %v416_v60 = vpop.f32.mrb[30].mxu0 }
 0x2d6   :  { %v3554_v40 = vadd.f32 %v416_v60, %v3346_v46  ;;  %v418_v19 = vpop.f32.mrb[31].mxu0 }
 0x2d7   :  { %v1890_v39 = vld [vmem:[#allocation3 + $0x8] sm:$0xff]  ;;  %530 = vst.msk [vmem:[#allocation2 + $0xe8] sm:$0xff] %vm259_vm0, %v415_v14  ;;  %v422_v5 = vpop.f32.mrb[32].mxu0  ;;  %v419_v57 = vadd.f32 %v418_v19, %v3350_v47 }
 0x2d8   :  { %2488 = vmatmul.mubr.msk.bf16.vlgmr.msra.gmra.mrb[48].mxu0 %vm259_vm0, %v1890_v39  ;;  %v424_v48 = vpop.f32.mrb[33].mxu0  ;;  %v3560_v43 = vadd.f32 %v422_v5, %v3346_v46 }
 0x2d9   :  { %v426_v26 = vpop.f32.mrb[34].mxu0  ;;  %532 = vst.msk [vmem:[#allocation2 + $0xf8] sm:$0xff] %vm259_vm0, %v419_v57  ;;  %v425_v3 = vadd.f32 %v424_v48, %v3350_v47 }
 0x2da   :  { %v428_v15 = vpop.f32.mrb[35].mxu0  ;;  %v3565_v4 = vadd.f32 %v426_v26, %v3346_v46 }
 0x2db   :  { %v432_v31 = vpop.f32.mrb[36].mxu0  ;;  %534 = vst.msk [vmem:[#allocation2 + $0x108] sm:$0xff] %vm259_vm0, %v425_v3  ;;  %v429_v6 = vadd.f32 %v428_v15, %v3350_v47  ;;  %v3601_v3 = vld [vmem:[#allocation18] ss:$0 sm:$0xff] }
 0x2dc   :  { %v434_v34 = vpop.f32.mrb[37].mxu0  ;;  %v3569_v18 = vadd.f32 %v432_v31, %v3346_v46 }
 0x2dd   :  { %v436_v42 = vpop.f32.mrb[38].mxu0  ;;  %v435_v27 = vadd.f32 %v434_v34, %v3350_v47  ;;  %536 = vst.msk [vmem:[#allocation2 + $0x118] sm:$0xff] %vm259_vm0, %v429_v6 }
 0x2de   :  { %v438_v35 = vpop.f32.mrb[39].mxu0  ;;  %v3573_v21 = vadd.f32 %v436_v42, %v3346_v46 }
 0x2df   :  { %v442_v36 = vpop.f32.mrb[40].mxu0  ;;  %v439_v24 = vadd.f32 %v438_v35, %v3350_v47  ;;  %538 = vst.msk [vmem:[#allocation2 + $0x128] sm:$0xff] %vm259_vm0, %v435_v27 }
 0x2e0   :  { %v444_v37 = vpop.f32.mrb[41].mxu0  ;;  %v443_v7 = vadd.f32 %v442_v36, %v3346_v46 }
 0x2e1   :  { %v446_v44 = vpop.f32.mrb[42].mxu0  ;;  %v445_v28 = vadd.f32 %v444_v37, %v3350_v47  ;;  %540 = vst.msk [vmem:[#allocation2 + $0x138] sm:$0xff] %vm259_vm0, %v439_v24 }
 0x2e2   :  { %v448_v49 = vpop.f32.mrb[43].mxu0  ;;  %541 = vst [vmem:[#allocation2 + $0x140] sm:$0xff] %v443_v7  ;;  %v447_v8 = vadd.f32 %v446_v44, %v3346_v46 }
 0x2e3   :  { %542 = vst.msk [vmem:[#allocation2 + $0x148] sm:$0xff] %vm259_vm0, %v445_v28  ;;  %v449_v29 = vadd.f32 %v448_v49, %v3350_v47 }
 0x2e4   :  { %543 = vst [vmem:[#allocation2 + $0x150] sm:$0xff] %v447_v8 }
 0x2e5   :  { %544 = vst.msk [vmem:[#allocation2 + $0x158] sm:$0xff] %vm259_vm0, %v449_v29 }
 0x2e7   :  { %v452_v50 = vpop.f32.mrb[44].mxu0 }
 0x2e8   :  { %v454_v51 = vpop.f32.mrb[45].mxu0  ;;  %v453_v39 = vadd.f32 %v452_v50, %v3346_v46 }
 0x2e9   :  { %v456_v55 = vpop.f32.mrb[46].mxu0  ;;  %v455_v9 = vadd.f32 %v454_v51, %v3350_v47  ;;  %v3599_v51 = vld [vmem:[#allocation16] ss:$0 sm:$0xff] }
 0x2ea   :  { %v458_v56 = vpop.f32.mrb[47].mxu0  ;;  %v457_v32 = vadd.f32 %v456_v55, %v3346_v46  ;;  %545 = vst [vmem:[#allocation2 + $0x160] sm:$0xff] %v453_v39 }
 0x2eb   :  { %v459_v13 = vadd.f32 %v458_v56, %v3350_v47  ;;  %546 = vst.msk [vmem:[#allocation2 + $0x168] sm:$0xff] %vm259_vm0, %v455_v9 }
 0x2ec   :  { %547 = vst [vmem:[#allocation2 + $0x170] sm:$0xff] %v457_v32 }
 0x2ed   :  { %548 = vst.msk [vmem:[#allocation2 + $0x178] sm:$0xff] %vm259_vm0, %v459_v13 }
 0x399   :  { %v838_v14 = vpop.f32.mrb[24].mxu1 }
 0x39a   :  { %v839_v60 = vadd.f32 %v838_v14, %v3393_v53  ;;  %v840_v19 = vpop.f32.mrb[25].mxu1 }
 0x39b   :  { %v842_v5 = vpop.f32.mrb[26].mxu1 }
 0x39c   :  { %v866_v48 = vadd.f32 %v839_v60, %v3484_v17  ;;  %v843_v26 = vadd.f32 %v842_v5, %v3393_v53  ;;  %v844_v15 = vpop.f32.mrb[27].mxu1 }
 0x39e   :  { %v2397_v31 = vmul.f32 -1.442695, %v866_v48  ;;  %v867_v46 = vadd.f32 %v843_v26, %v3488_v25 }
 0x3a0   :  { %2595 = vpow2.f32 %v2397_v31  ;;  %v2398_v47 = vmul.f32 -1.442695, %v867_v46 }
 0x3a2   :  { %2597 = vpow2.f32 %v2398_v47 }
 0x3a3   :  { %v848_v34 = vpop.f32.mrb[28].mxu1 }
 0x3a4   :  { %v849_v42 = vadd.f32 %v848_v34, %v3393_v53  ;;  %v850_v35 = vpop.f32.mrb[29].mxu1 }
 0x3a5   :  { %v852_v36 = vpop.f32.mrb[30].mxu1 }
 0x3a6   :  { %v868_v37 = vadd.f32 %v849_v42, %v3494_v30  ;;  %v853_v44 = vadd.f32 %v852_v36, %v3393_v53  ;;  %v854_v49 = vpop.f32.mrb[31].mxu1  ;;  %v2763_v42 = vld [vmem:[#allocation4 + $0x8] sm:$0xff] }
 0x3a8   :  { %v2399_v17 = vmul.f32 -1.442695, %v868_v37  ;;  %v869_v50 = vadd.f32 %v853_v44, %v3498_v45  ;;  %v841_v44 = vadd.f32 %v840_v19, %v3404_v20  ;;  %v851_v19 = vadd.f32 %v850_v35, %v3404_v20 }
 0x3aa   :  { %v2596_v55 = vpop.eup %2595  ;;  %2599 = vpow2.f32 %v2399_v17  ;;  %v2400_v25 = vmul.f32 -1.442695, %v869_v50  ;;  %v845_v50 = vadd.f32 %v844_v15, %v3404_v20  ;;  %v865_v15 = vld [vmem:[#allocation2 + $0x78] sm:$0xff] }
 0x3ab   :  { %v882_v56 = vadd.f32 1.0, %v2596_v55  ;;  %v2489_v57 = vpop.f32.mrb[48].mxu0 }
 0x3ac   :  { %v2598_v6 = vpop.eup %2597  ;;  %2601 = vpow2.f32 %v2400_v25  ;;  %v2155_v27 = vmul.f32 %v2489_v57, %v3599_v51  ;;  %v2019_v30 = vpop.f32.mrb[49].mxu0  ;;  %v861_v57 = vld [vmem:[#allocation2 + $0x58] sm:$0xff] }
 0x3ad   :  { %2603 = vrcp.f32 %v882_v56  ;;  %v883_v24 = vadd.f32 1.0, %v2598_v6  ;;  %v2153_v7 = vmul.f32 %v3599_v51, %v2019_v30  ;;  %v2490_v28 = vpop.f32.mrb[50].mxu0 }
 0x3ae   :  { %v2194_v45 = vadd.f32 %v3601_v3, %v2155_v27  ;;  %v2156_v8 = vmul.f32 %v2490_v28, %v3599_v51  ;;  %v2022_v29 = vpop.f32.mrb[51].mxu0  ;;  %v863_v28 = vld [vmem:[#allocation2 + $0x68] sm:$0xff] }
 0x3af   :  { %2605 = vrcp.f32 %v883_v24  ;;  %v2192_v39 = vadd.f32 %v3601_v3, %v2153_v7  ;;  %v2154_v9 = vmul.f32 %v3599_v51, %v2022_v29  ;;  %v855_v24 = vadd.f32 %v854_v49, %v3404_v20 }
 0x3b0   :  { %v2226_v32 = vmax.f32 %v2194_v45, 0.0  ;;  %v2195_v13 = vadd.f32 %v3601_v3, %v2156_v8 }
 0x3b1   :  { %v2224_v14 = vmax.f32 %v2192_v39, 0.0  ;;  %v2193_v60 = vadd.f32 %v3601_v3, %v2154_v9 }
 0x3b2   :  { %v2258_v5 = vadd.f32 %v2226_v32, %v3291_v22  ;;  %v2227_v48 = vmax.f32 %v2195_v13, 0.0 }
 0x3b3   :  { %v2256_v26 = vadd.f32 %v2224_v14, %v3274_v11  ;;  %v2225_v31 = vmax.f32 %v2193_v60, 0.0 }
 0x3b4   :  { %v2600_v46 = vpop.eup %2599  ;;  %2290 = vst.msk [vmem:[#allocation19 + $0x10] sm:$0xff] %vm259_vm0, %v2258_v5  ;;  %v2259_v47 = vadd.f32 %v2227_v48, %v3293_v23  ;;  %v859_v23 = vld [vmem:[#allocation2 + $0x48] sm:$0xff] }
 0x3b5   :  { %v884_v34 = vadd.f32 1.0, %v2600_v46  ;;  %2288 = vst.msk [vmem:[#allocation19] sm:$0xff] %vm259_vm0, %v2256_v26  ;;  %v2257_v36 = vadd.f32 %v2763_v42, %v2225_v31 }
 0x3b6   :  { %v2602_v37 = vpop.eup %2601  ;;  %2291 = vst.msk [vmem:[#allocation19 + $0x18] sm:$0xff] %vm259_vm0, %v2259_v47 }
 0x3b7   :  { %v2604_v22 = vpop.eup %2603  ;;  %2607 = vrcp.f32 %v884_v34  ;;  %v885_v17 = vadd.f32 1.0, %v2602_v37  ;;  %2289 = vst.msk [vmem:[#allocation19 + $0x8] sm:$0xff] %vm259_vm0, %v2257_v36 }
 0x3b8   :  { %v894_v11 = vmul.f32 %v2604_v22, %v841_v44  ;;  %v906_v49 = vsub.f32 1.0, %v2604_v22  ;;  %v930_v48 = vmul.f32 %v2604_v22, %v3465_v62 }
 0x3b9   :  { %v2606_v55 = vpop.eup %2605  ;;  %2609 = vrcp.f32 %v885_v17 }
 0x3ba   :  { %v898_v25 = vadd.f32 %v894_v11, %v859_v23  ;;  %v895_v56 = vmul.f32 %v2606_v55, %v845_v50  ;;  %v907_v60 = vsub.f32 1.0, %v2606_v55  ;;  %v931_v26 = vmul.f32 %v2606_v55, %v3467_v63 }
 0x3bc   :  { %2611 = vtanh.f32 %v898_v25  ;;  %v899_v6 = vadd.f32 %v895_v56, %v861_v57  ;;  %v3653_v25 = vld [vmem:[#allocation10 + $0x10] ss:$8 sps:$4 sm:$0xff]   ;;  %v3656_v56 = vld [vmem:[#allocation10 + $0x24] ss:$8 sps:$4 sm:$0xff]  }
 0x3be   :  { %2613 = vtanh.f32 %v899_v6 }
 0x3c1   :  { %v2608_v27 = vpop.eup %2607 }
 0x3c2   :  { %v896_v30 = vmul.f32 %v2608_v27, %v851_v19  ;;  %v908_v42 = vsub.f32 1.0, %v2608_v27  ;;  %v932_v11 = vmul.f32 %v2608_v27, %v3476_v10  ;;  %v3647_v10 = vld [vmem:[#allocation10] ss:$8 sps:$4 sm:$0xff]   ;;  %v3665_v27 = vld [vmem:[#allocation10 + $0x34] ss:$8 sps:$4 sm:$0xff]  }
 0x3c3   :  { %v2610_v7 = vpop.eup %2609  ;;  %v3660_v19 = vld [vmem:[#allocation10 + $0x20] ss:$8 sps:$4 sm:$0xff]  }
 0x3c4   :  { %v900_v45 = vadd.f32 %v896_v30, %v863_v28  ;;  %v897_v8 = vmul.f32 %v2610_v7, %v855_v24  ;;  %v909_v44 = vsub.f32 1.0, %v2610_v7  ;;  %v933_v62 = vmul.f32 %v2610_v7, %v3478_v12  ;;  %v3650_v12 = vld [vmem:[#allocation10 + $0x14] ss:$8 sps:$4 sm:$0xff]   ;;  %v3669_v30 = vld [vmem:[#allocation10 + $0x30] ss:$8 sps:$4 sm:$0xff]  }
 0x3c5   :  { %v3672_v24 = vld [vmem:[#allocation10 + $0x4] ss:$8 sps:$4 sm:$0xff]  }
 0x3c6   :  { %v2612_v29 = vpop.eup %2611  ;;  %2615 = vtanh.f32 %v900_v45  ;;  %v901_v39 = vadd.f32 %v897_v8, %v865_v15 }
 0x3c7   :  { %914 = vrot.lane.b32.xlu0 %v2612_v29, %s3075_s4 }
 0x3c8   :  { %v2614_v9 = vpop.eup %2613  ;;  %2617 = vtanh.f32 %v901_v39 }
 0x3c9   :  { %916 = vrot.lane.b32.xlu1 %v2614_v9, %s3075_s4 }
 0x3d0   :  { %v2616_v32 = vpop.eup %2615 }
 0x3d1   :  { %918 = vrot.lane.b32.xlu0 %v2616_v32, %s3075_s4 }
 0x3d2   :  { %v2618_v35 = vpop.eup %2617 }
 0x3d3   :  { %920 = vrot.lane.b32.xlu1 %v2618_v35, %s3075_s4 }
 0x439   :  { %v915_v13 = vpop.permute.xlu0 %914 }
 0x43a   :  { %v926_v14 = vmul.f32 %v915_v13, %v906_v49 }
 0x43b   :  { %v917_v5 = vpop.permute.xlu1 %916 }
 0x43c   :  { %v927_v31 = vmul.f32 %v917_v5, %v907_v60  ;;  %v3628_v46 = vadd.f32 %v930_v48, %v926_v14 }
 0x43e   :  { %v3630_v47 = vadd.f32 %v931_v26, %v927_v31 }
 0x440   :  { %v938_v34 = vpack.c.bf16 %v3630_v47, %v3628_v46 }
 0x442   :  { %942 = vrot.lane.b32.xlu0 %v938_v34, %s3075_s4 }
 0x443   :  { %v919_v36 = vpop.permute.xlu0 %918 }
 0x444   :  { %v928_v37 = vmul.f32 %v919_v36, %v908_v42 }
 0x445   :  { %v921_v17 = vpop.permute.xlu1 %920 }
 0x446   :  { %v929_v63 = vmul.f32 %v921_v17, %v909_v44  ;;  %v3637_v22 = vadd.f32 %v932_v11, %v928_v37 }
 0x448   :  { %v3639_v50 = vadd.f32 %v933_v62, %v929_v63 }
 0x44a   :  { %v939_v55 = vpack.c.bf16 %v3639_v50, %v3637_v22 }
 0x44c   :  { %944 = vrot.lane.b32.xlu1 %v939_v55, %s3075_s4 }
 0x4b4   :  { %v943_v23 = vpop.permute.xlu0 %942 }
 0x4b5   :  { %949 = vst.msk [vmem:[#allocation3 + $0x10] sm:$0xff] %vm259_vm0, %v943_v23  ;;  %2401 = vmatmul.mubr.msk.bf16.vlgmr.msra.gmra.mrb[32].mxu1 %vm259_vm0, %v943_v23 }
 0x4b6   :  { %999 = vmatprep.mubr.bf16.mxu1 %v3078_v0  ;;  %1111 = vmatpush1.bf16.msra.mxu1 %v3647_v10 }
 0x4b7   :  { %1112 = vmatprep.subr.bf16.mxu1 %v3650_v12 }
 0x4ba   :  { %1113 = vmatpush1.bf16.msra.mxu1 %v3653_v25 }
 0x4bb   :  { %1114 = vmatprep.subr.bf16.mxu1 %v3656_v56 }
 0x4bc   :  { %v1891_v57 = vld [vmem:[#allocation3 + $0x10] sm:$0xff] }
 0x4bd   :  { %2491 = vmatprep.mubr.msk.bf16.mxu0 %vm259_vm0, %v1891_v57 }
 0x4be   :  { %v945_v6 = vpop.permute.xlu1 %944  ;;  %1115 = vmatpush1.bf16.msra.mxu1 %v3660_v19 }
 0x4bf   :  { %950 = vst.msk [vmem:[#allocation3 + $0x18] sm:$0xff] %vm259_vm0, %v945_v6  ;;  %2402 = vmatmul.mubr.msk.bf16.gmra.mrb[36].mxu1 %vm259_vm0, %v945_v6  ;;  %1116 = vmatprep.subr.bf16.mxu1 %v3665_v27 }
 0x4c0   :  { %1142 = vmatprep.mubr.bf16.mxu1 %v3078_v0 }
 0x4c2   :  { %1117 = vmatpush1.bf16.msra.mxu1 %v3669_v30 }
 0x4c3   :  { %1263 = vmatprep.subr.bf16.mxu1 %v3672_v24 }
 0x4c6   :  { %v1892_v7 = vld [vmem:[#allocation3 + $0x18] sm:$0xff] }
 0x4c7   :  { %2492 = vmatmul.mubr.msk.bf16.gmra.mrb[52].mxu0 %vm259_vm0, %v1892_v7 }
 0x588   :  { %v991_v28 = vpop.f32.mrb[32].mxu1 }
 0x589   :  { %v992_v45 = vadd.f32 %v991_v28, %v3393_v53  ;;  %v993_v8 = vpop.f32.mrb[33].mxu1 }
 0x58a   :  { %v995_v15 = vpop.f32.mrb[34].mxu1 }
 0x58b   :  { %v1019_v29 = vadd.f32 %v992_v45, %v3504_v41  ;;  %v996_v39 = vadd.f32 %v995_v15, %v3393_v53  ;;  %v997_v9 = vpop.f32.mrb[35].mxu1 }
 0x58d   :  { %v2403_v32 = vmul.f32 -1.442695, %v1019_v29  ;;  %v1020_v35 = vadd.f32 %v996_v39, %v3510_v54 }
 0x58f   :  { %2619 = vpow2.f32 %v2403_v32  ;;  %v2404_v49 = vmul.f32 -1.442695, %v1020_v35 }
 0x591   :  { %2621 = vpow2.f32 %v2404_v49 }
 0x592   :  { %v1001_v13 = vpop.f32.mrb[36].mxu1 }
 0x593   :  { %v1002_v14 = vadd.f32 %v1001_v13, %v3393_v53  ;;  %v1003_v60 = vpop.f32.mrb[37].mxu1 }
 0x594   :  { %v1005_v5 = vpop.f32.mrb[38].mxu1 }
 0x595   :  { %v1021_v48 = vadd.f32 %v1002_v14, %v3520_v58  ;;  %v1006_v26 = vadd.f32 %v1005_v5, %v3393_v53  ;;  %v1007_v31 = vpop.f32.mrb[39].mxu1 }
 0x597   :  { %v2405_v41 = vmul.f32 -1.442695, %v1021_v48  ;;  %v1022_v34 = vadd.f32 %v1006_v26, %v3526_v16  ;;  %v994_v26 = vadd.f32 %v993_v8, %v3404_v20  ;;  %v1004_v8 = vadd.f32 %v1003_v60, %v3404_v20 }
 0x599   :  { %v2620_v42 = vpop.eup %2619  ;;  %2623 = vpow2.f32 %v2405_v41  ;;  %v2406_v36 = vmul.f32 -1.442695, %v1022_v34  ;;  %v998_v34 = vadd.f32 %v997_v9, %v3404_v20  ;;  %v1018_v9 = vld [vmem:[#allocation2 + $0xb8] sm:$0xff] }
 0x59a   :  { %v1035_v54 = vadd.f32 1.0, %v2620_v42  ;;  %v2493_v37 = vpop.f32.mrb[52].mxu0 }
 0x59b   :  { %v2622_v44 = vpop.eup %2621  ;;  %2625 = vpow2.f32 %v2406_v36  ;;  %v2159_v17 = vmul.f32 %v2493_v37, %v3599_v51  ;;  %v2035_v11 = vpop.f32.mrb[53].mxu0  ;;  %v1014_v37 = vld [vmem:[#allocation2 + $0x98] sm:$0xff] }
 0x59c   :  { %2627 = vrcp.f32 %v1035_v54  ;;  %v1036_v62 = vadd.f32 1.0, %v2622_v44  ;;  %v2157_v58 = vmul.f32 %v3599_v51, %v2035_v11  ;;  %v2494_v63 = vpop.f32.mrb[54].mxu0  ;;  %v1008_v11 = vadd.f32 %v1007_v31, %v3404_v20 }
 0x59d   :  { %v2198_v55 = vadd.f32 %v3601_v3, %v2159_v17  ;;  %v2160_v23 = vmul.f32 %v2494_v63, %v3599_v51  ;;  %v2038_v16 = vpop.f32.mrb[55].mxu0 }
 0x59e   :  { %2629 = vrcp.f32 %v1036_v62  ;;  %v2196_v57 = vadd.f32 %v3601_v3, %v2157_v58  ;;  %v2158_v6 = vmul.f32 %v3599_v51, %v2038_v16  ;;  %v1016_v58 = vld [vmem:[#allocation2 + $0xa8] sm:$0xff] }
 0x59f   :  { %v2230_v7 = vmax.f32 %v2198_v55, 0.0  ;;  %v2199_v28 = vadd.f32 %v3601_v3, %v2160_v23 }
 0x5a0   :  { %v2228_v45 = vmax.f32 %v2196_v57, 0.0  ;;  %v2197_v15 = vadd.f32 %v3601_v3, %v2158_v6 }
 0x5a1   :  { %v2262_v29 = vadd.f32 %v2230_v7, %v3434_v1  ;;  %v2231_v39 = vmax.f32 %v2199_v28, 0.0 }
 0x5a2   :  { %v2260_v32 = vadd.f32 %v2228_v45, %v3424_v59  ;;  %v2229_v35 = vmax.f32 %v2197_v15, 0.0 }
 0x5a3   :  { %v2624_v49 = vpop.eup %2623  ;;  %2294 = vst.msk [vmem:[#allocation19 + $0x30] sm:$0xff] %vm259_vm0, %v2262_v29  ;;  %v2263_v13 = vadd.f32 %v2231_v39, %v3436_v2  ;;  %v1012_v2 = vld [vmem:[#allocation2 + $0x88] sm:$0xff] }
 0x5a4   :  { %v1037_v14 = vadd.f32 1.0, %v2624_v49  ;;  %2292 = vst.msk [vmem:[#allocation19 + $0x20] sm:$0xff] %vm259_vm0, %v2260_v32  ;;  %v2261_v5 = vadd.f32 %v2229_v35, %v3426_v61 }
 0x5a5   :  { %v2626_v48 = vpop.eup %2625  ;;  %2295 = vst.msk [vmem:[#allocation19 + $0x38] sm:$0xff] %vm259_vm0, %v2263_v13 }
 0x5a6   :  { %v2628_v1 = vpop.eup %2627  ;;  %2631 = vrcp.f32 %v1037_v14  ;;  %v1038_v41 = vadd.f32 1.0, %v2626_v48  ;;  %2293 = vst.msk [vmem:[#allocation19 + $0x28] sm:$0xff] %vm259_vm0, %v2261_v5 }
 0x5a7   :  { %v1047_v59 = vmul.f32 %v2628_v1, %v994_v26  ;;  %v1059_v31 = vsub.f32 1.0, %v2628_v1  ;;  %v1083_v29 = vmul.f32 %v2628_v1, %v3628_v46 }
 0x5a8   :  { %v2630_v42 = vpop.eup %2629  ;;  %2633 = vrcp.f32 %v1038_v41 }
 0x5a9   :  { %v1051_v36 = vadd.f32 %v1047_v59, %v1012_v2  ;;  %v1048_v54 = vmul.f32 %v2630_v42, %v998_v34  ;;  %v1060_v45 = vsub.f32 1.0, %v2630_v42  ;;  %v1084_v39 = vmul.f32 %v2630_v42, %v3630_v47 }
 0x5ab   :  { %2635 = vtanh.f32 %v1051_v36  ;;  %v1052_v61 = vadd.f32 %v1048_v54, %v1014_v37 }
 0x5ad   :  { %2637 = vtanh.f32 %v1052_v61 }
 0x5b0   :  { %v2632_v44 = vpop.eup %2631 }
 0x5b1   :  { %v1049_v17 = vmul.f32 %v2632_v44, %v1004_v8  ;;  %v1061_v14 = vsub.f32 1.0, %v2632_v44  ;;  %v1085_v59 = vmul.f32 %v2632_v44, %v3637_v22 }
 0x5b2   :  { %v2634_v62 = vpop.eup %2633 }
 0x5b3   :  { %v1053_v63 = vadd.f32 %v1049_v17, %v1016_v58  ;;  %v1050_v55 = vmul.f32 %v2634_v62, %v1008_v11  ;;  %v1062_v26 = vsub.f32 1.0, %v2634_v62  ;;  %v1086_v46 = vmul.f32 %v2634_v62, %v3639_v50 }
 0x5b5   :  { %v2636_v23 = vpop.eup %2635  ;;  %2639 = vtanh.f32 %v1053_v63  ;;  %v1054_v16 = vadd.f32 %v1050_v55, %v1018_v9 }
 0x5b6   :  { %1067 = vrot.lane.b32.xlu0 %v2636_v23, %s3075_s4 }
 0x5b7   :  { %v2638_v57 = vpop.eup %2637  ;;  %2641 = vtanh.f32 %v1054_v16 }
 0x5b8   :  { %1069 = vrot.lane.b32.xlu1 %v2638_v57, %s3075_s4 }
 0x5bf   :  { %v2640_v6 = vpop.eup %2639 }
 0x5c0   :  { %1071 = vrot.lane.b32.xlu0 %v2640_v6, %s3075_s4 }
 0x5c1   :  { %v2642_v60 = vpop.eup %2641 }
 0x5c2   :  { %1073 = vrot.lane.b32.xlu1 %v2642_v60, %s3075_s4 }
 0x628   :  { %v1068_v7 = vpop.permute.xlu0 %1067 }
 0x629   :  { %v1079_v28 = vmul.f32 %v1068_v7, %v1059_v31 }
 0x62a   :  { %v1070_v15 = vpop.permute.xlu1 %1069 }
 0x62b   :  { %v1080_v32 = vmul.f32 %v1070_v15, %v1060_v45  ;;  %v3710_v35 = vadd.f32 %v1083_v29, %v1079_v28 }
 0x62d   :  { %v3712_v49 = vadd.f32 %v1084_v39, %v1080_v32 }
 0x62f   :  { %v1091_v13 = vpack.c.bf16 %v3712_v49, %v3710_v35 }
 0x631   :  { %1095 = vrot.lane.b32.xlu0 %v1091_v13, %s3075_s4 }
 0x632   :  { %v1072_v5 = vpop.permute.xlu0 %1071 }
 0x633   :  { %v1081_v48 = vmul.f32 %v1072_v5, %v1061_v14 }
 0x634   :  { %v1074_v41 = vpop.permute.xlu1 %1073 }
 0x635   :  { %v1082_v47 = vmul.f32 %v1074_v41, %v1062_v26  ;;  %v3719_v1 = vadd.f32 %v1085_v59, %v1081_v48 }
 0x637   :  { %v3721_v34 = vadd.f32 %v1086_v46, %v1082_v47 }
 0x639   :  { %v1092_v42 = vpack.c.bf16 %v3721_v34, %v3719_v1 }
 0x63b   :  { %1097 = vrot.lane.b32.xlu1 %v1092_v42, %s3075_s4  ;;  %v2772_v42 = vld [vmem:[#allocation4 + $0x50] sm:$0xff] }
 0x6a3   :  { %v1096_v2 = vpop.permute.xlu0 %1095 }
 0x6a4   :  { %1102 = vst.msk [vmem:[#allocation3 + $0x20] sm:$0xff] %vm259_vm0, %v1096_v2  ;;  %2407 = vmatmul.mubr.msk.bf16.vlgmr.msra.gmra.mrb[40].mxu1 %vm259_vm0, %v1096_v2 }
 0x6a5   :  { %1152 = vmatprep.mubr.bf16.mxu1 %v3078_v0  ;;  %1264 = vmatpush1.bf16.msra.mxu1 %v3647_v10 }
 0x6a6   :  { %1265 = vmatprep.subr.bf16.mxu1 %v3650_v12 }
 0x6a9   :  { %1266 = vmatpush1.bf16.msra.mxu1 %v3653_v25 }
 0x6aa   :  { %1267 = vmatprep.subr.bf16.mxu1 %v3656_v56 }
 0x6ab   :  { %v1893_v22 = vld [vmem:[#allocation3 + $0x20] sm:$0xff] }
 0x6ac   :  { %2495 = vmatprep.mubr.msk.bf16.mxu0 %vm259_vm0, %v1893_v22 }
 0x6ad   :  { %v1098_v50 = vpop.permute.xlu1 %1097  ;;  %1268 = vmatpush1.bf16.msra.mxu1 %v3660_v19 }
 0x6ae   :  { %1103 = vst.msk [vmem:[#allocation3 + $0x28] sm:$0xff] %vm259_vm0, %v1098_v50  ;;  %2408 = vmatmul.mubr.msk.bf16.gmra.mrb[44].mxu1 %vm259_vm0, %v1098_v50  ;;  %1269 = vmatprep.subr.bf16.mxu1 %v3665_v27  ;;  %v2773_v50 = vld [vmem:[#allocation4 + $0x40] sm:$0xff] }
 0x6af   :  { %1295 = vmatprep.mubr.bf16.mxu1 %v3078_v0 }
 0x6b1   :  { %1270 = vmatpush1.bf16.msra.mxu1 %v3669_v30 }
 0x6b2   :  { %1416 = vmatprep.subr.bf16.mxu1 %v3672_v24 }
 0x6b5   :  { %v1894_v36 = vld [vmem:[#allocation3 + $0x28] sm:$0xff] }
 0x6b6   :  { %2496 = vmatmul.mubr.msk.bf16.gmra.mrb[56].mxu0 %vm259_vm0, %v1894_v36 }
 0x777   :  { %v1144_v54 = vpop.f32.mrb[40].mxu1 }
 0x778   :  { %v1145_v37 = vadd.f32 %v1144_v54, %v3393_v53  ;;  %v1146_v61 = vpop.f32.mrb[41].mxu1 }
 0x779   :  { %v1148_v8 = vpop.f32.mrb[42].mxu1 }
 0x77a   :  { %v1172_v44 = vadd.f32 %v1145_v37, %v3538_v33  ;;  %v1149_v17 = vadd.f32 %v1148_v8, %v3393_v53  ;;  %v1150_v11 = vpop.f32.mrb[43].mxu1  ;;  %v2774_v8 = vld [vmem:[#allocation4 + $0x58] sm:$0xff] }
 0x77c   :  { %v2409_v62 = vmul.f32 -1.442695, %v1172_v44  ;;  %v1173_v58 = vadd.f32 %v1149_v17, %v3543_v38 }
 0x77e   :  { %2643 = vpow2.f32 %v2409_v62  ;;  %v2410_v63 = vmul.f32 -1.442695, %v1173_v58  ;;  %v2775_v62 = vld [vmem:[#allocation4 + $0x48] sm:$0xff] }
 0x780   :  { %2645 = vpow2.f32 %v2410_v63 }
 0x781   :  { %v1154_v55 = vpop.f32.mrb[44].mxu1 }
 0x782   :  { %v1155_v9 = vadd.f32 %v1154_v55, %v3393_v53  ;;  %v1156_v23 = vpop.f32.mrb[45].mxu1  ;;  %v1147_v55 = vadd.f32 %v1146_v61, %v3404_v20 }
 0x783   :  { %v1158_v16 = vpop.f32.mrb[46].mxu1  ;;  %v1157_v61 = vadd.f32 %v1156_v23, %v3404_v20 }
 0x784   :  { %v1174_v57 = vadd.f32 %v1155_v9, %v3550_v52  ;;  %v1159_v6 = vadd.f32 %v1158_v16, %v3393_v53  ;;  %v1160_v60 = vpop.f32.mrb[47].mxu1 }
 0x786   :  { %v2411_v33 = vmul.f32 -1.442695, %v1174_v57  ;;  %v1175_v31 = vadd.f32 %v1159_v6, %v3554_v40  ;;  %v1151_v6 = vadd.f32 %v1150_v11, %v3404_v20  ;;  %v1171_v11 = vld [vmem:[#allocation2 + $0xf8] sm:$0xff] }
 0x788   :  { %v2644_v7 = vpop.eup %2643  ;;  %2647 = vpow2.f32 %v2411_v33  ;;  %v2412_v28 = vmul.f32 -1.442695, %v1175_v31  ;;  %v1165_v31 = vld [vmem:[#allocation2 + $0xc8] sm:$0xff] }
 0x789   :  { %v1188_v38 = vadd.f32 1.0, %v2644_v7  ;;  %v2497_v45 = vpop.f32.mrb[56].mxu0 }
 0x78a   :  { %v2646_v15 = vpop.eup %2645  ;;  %2649 = vpow2.f32 %v2412_v28  ;;  %v2163_v29 = vmul.f32 %v2497_v45, %v3599_v51  ;;  %v2051_v39 = vpop.f32.mrb[57].mxu0 }
 0x78b   :  { %2651 = vrcp.f32 %v1188_v38  ;;  %v1189_v32 = vadd.f32 1.0, %v2646_v15  ;;  %v2161_v52 = vmul.f32 %v3599_v51, %v2051_v39  ;;  %v2498_v13 = vpop.f32.mrb[58].mxu0  ;;  %v1167_v38 = vld [vmem:[#allocation2 + $0xd8] sm:$0xff]  ;;  %v1161_v39 = vadd.f32 %v1160_v60, %v3404_v20 }
 0x78c   :  { %v2202_v14 = vadd.f32 %v3601_v3, %v2163_v29  ;;  %v2164_v5 = vmul.f32 %v2498_v13, %v3599_v51  ;;  %v2054_v40 = vpop.f32.mrb[59].mxu0 }
 0x78d   :  { %2653 = vrcp.f32 %v1189_v32  ;;  %v2200_v48 = vadd.f32 %v3601_v3, %v2161_v52  ;;  %v2162_v26 = vmul.f32 %v3599_v51, %v2054_v40  ;;  %v1169_v52 = vld [vmem:[#allocation2 + $0xe8] sm:$0xff] }
 0x78e   :  { %v2234_v41 = vmax.f32 %v2202_v14, 0.0  ;;  %v2203_v59 = vadd.f32 %v3601_v3, %v2164_v5 }
 0x78f   :  { %v2232_v46 = vmax.f32 %v2200_v48, 0.0  ;;  %v2201_v47 = vadd.f32 %v3601_v3, %v2162_v26 }
 0x790   :  { %v2266_v2 = vadd.f32 %v2772_v42, %v2234_v41  ;;  %v2235_v22 = vmax.f32 %v2203_v59, 0.0 }
 0x791   :  { %v2264_v36 = vadd.f32 %v2773_v50, %v2232_v46  ;;  %v2233_v54 = vmax.f32 %v2201_v47, 0.0 }
 0x792   :  { %v2648_v37 = vpop.eup %2647  ;;  %2298 = vst.msk [vmem:[#allocation19 + $0x50] sm:$0xff] %vm259_vm0, %v2266_v2  ;;  %v2267_v44 = vadd.f32 %v2774_v8, %v2235_v22 }
 0x793   :  { %v1190_v17 = vadd.f32 1.0, %v2648_v37  ;;  %2296 = vst.msk [vmem:[#allocation19 + $0x40] sm:$0xff] %vm259_vm0, %v2264_v36  ;;  %v2265_v58 = vadd.f32 %v2775_v62, %v2233_v54 }
 0x794   :  { %v2650_v63 = vpop.eup %2649  ;;  %2299 = vst.msk [vmem:[#allocation19 + $0x58] sm:$0xff] %vm259_vm0, %v2267_v44 }
 0x795   :  { %v2652_v9 = vpop.eup %2651  ;;  %2655 = vrcp.f32 %v1190_v17  ;;  %v1191_v16 = vadd.f32 1.0, %v2650_v63  ;;  %2297 = vst.msk [vmem:[#allocation19 + $0x48] sm:$0xff] %vm259_vm0, %v2265_v58 }
 0x796   :  { %v1200_v57 = vmul.f32 %v2652_v9, %v1147_v55  ;;  %v1212_v60 = vsub.f32 1.0, %v2652_v9  ;;  %v1236_v42 = vmul.f32 %v2652_v9, %v3710_v35 }
 0x797   :  { %v2654_v33 = vpop.eup %2653  ;;  %2657 = vrcp.f32 %v1191_v16 }
 0x798   :  { %v1204_v7 = vadd.f32 %v1200_v57, %v1165_v31  ;;  %v1201_v28 = vmul.f32 %v2654_v33, %v1151_v6  ;;  %v1213_v46 = vsub.f32 1.0, %v2654_v33  ;;  %v1237_v2 = vmul.f32 %v2654_v33, %v3712_v49 }
 0x79a   :  { %2659 = vtanh.f32 %v1204_v7  ;;  %v1205_v45 = vadd.f32 %v1201_v28, %v1167_v38 }
 0x79c   :  { %2661 = vtanh.f32 %v1205_v45 }
 0x79f   :  { %v2656_v15 = vpop.eup %2655 }
 0x7a0   :  { %v1202_v29 = vmul.f32 %v2656_v15, %v1157_v61  ;;  %v1214_v37 = vsub.f32 1.0, %v2656_v15  ;;  %v1238_v58 = vmul.f32 %v2656_v15, %v3719_v1 }
 0x7a1   :  { %v2658_v32 = vpop.eup %2657 }
 0x7a2   :  { %v1206_v13 = vadd.f32 %v1202_v29, %v1169_v52  ;;  %v1203_v14 = vmul.f32 %v2658_v32, %v1161_v39  ;;  %v1215_v17 = vsub.f32 1.0, %v2658_v32  ;;  %v1239_v35 = vmul.f32 %v2658_v32, %v3721_v34 }
 0x7a4   :  { %v2660_v5 = vpop.eup %2659  ;;  %2663 = vtanh.f32 %v1206_v13  ;;  %v1207_v40 = vadd.f32 %v1203_v14, %v1171_v11 }
 0x7a5   :  { %1220 = vrot.lane.b32.xlu0 %v2660_v5, %s3075_s4 }
 0x7a6   :  { %v2662_v48 = vpop.eup %2661  ;;  %2665 = vtanh.f32 %v1207_v40 }
 0x7a7   :  { %1222 = vrot.lane.b32.xlu1 %v2662_v48, %s3075_s4 }
 0x7ae   :  { %v2664_v26 = vpop.eup %2663 }
 0x7af   :  { %1224 = vrot.lane.b32.xlu0 %v2664_v26, %s3075_s4 }
 0x7b0   :  { %v2666_v23 = vpop.eup %2665 }
 0x7b1   :  { %1226 = vrot.lane.b32.xlu1 %v2666_v23, %s3075_s4 }
 0x817   :  { %v1221_v41 = vpop.permute.xlu0 %1220 }
 0x818   :  { %v1232_v59 = vmul.f32 %v1221_v41, %v1212_v60 }
 0x819   :  { %v1223_v47 = vpop.permute.xlu1 %1222 }
 0x81a   :  { %v1233_v22 = vmul.f32 %v1223_v47, %v1213_v46  ;;  %v3772_v50 = vadd.f32 %v1236_v42, %v1232_v59 }
 0x81c   :  { %v3774_v36 = vadd.f32 %v1237_v2, %v1233_v22 }
 0x81e   :  { %v1244_v54 = vpack.c.bf16 %v3774_v36, %v3772_v50 }
 0x820   :  { %1248 = vrot.lane.b32.xlu0 %v1244_v54, %s3075_s4 }
 0x821   :  { %v1225_v8 = vpop.permute.xlu0 %1224 }
 0x822   :  { %v1234_v44 = vmul.f32 %v1225_v8, %v1214_v37 }
 0x823   :  { %v1227_v62 = vpop.permute.xlu1 %1226 }
 0x824   :  { %v1235_v49 = vmul.f32 %v1227_v62, %v1215_v17  ;;  %v3781_v63 = vadd.f32 %v1238_v58, %v1234_v44  ;;  %v2776_v62 = vld [vmem:[#allocation4 + $0x70] sm:$0xff] }
 0x826   :  { %v3783_v55 = vadd.f32 %v1239_v35, %v1235_v49  ;;  %v2777_v49 = vld [vmem:[#allocation4 + $0x60] sm:$0xff] }
 0x828   :  { %v1245_v9 = vpack.c.bf16 %v3783_v55, %v3781_v63 }
 0x82a   :  { %1250 = vrot.lane.b32.xlu1 %v1245_v9, %s3075_s4 }
 0x892   :  { %v1249_v16 = vpop.permute.xlu0 %1248 }
 0x893   :  { %1255 = vst.msk [vmem:[#allocation3 + $0x30] sm:$0xff] %vm259_vm0, %v1249_v16  ;;  %2413 = vmatmul.mubr.msk.bf16.vlgmr.msra.gmra.mrb[48].mxu1 %vm259_vm0, %v1249_v16 }
 0x894   :  { %1305 = vmatprep.mubr.bf16.mxu1 %v3078_v0  ;;  %1417 = vmatpush1.bf16.msra.mxu1 %v3647_v10 }
 0x895   :  { %1418 = vmatprep.subr.bf16.mxu1 %v3650_v12 }
 0x898   :  { %1419 = vmatpush1.bf16.msra.mxu1 %v3653_v25 }
 0x899   :  { %1420 = vmatprep.subr.bf16.mxu1 %v3656_v56 }
 0x89a   :  { %v1895_v1 = vld [vmem:[#allocation3 + $0x30] sm:$0xff] }
 0x89b   :  { %2499 = vmatprep.mubr.msk.bf16.mxu0 %vm259_vm0, %v1895_v1 }
 0x89c   :  { %v1251_v34 = vpop.permute.xlu1 %1250  ;;  %1421 = vmatpush1.bf16.msra.mxu1 %v3660_v19 }
 0x89d   :  { %1256 = vst.msk [vmem:[#allocation3 + $0x38] sm:$0xff] %vm259_vm0, %v1251_v34  ;;  %2414 = vmatmul.mubr.msk.bf16.gmra.mrb[52].mxu1 %vm259_vm0, %v1251_v34  ;;  %1422 = vmatprep.subr.bf16.mxu1 %v3665_v27  ;;  %v2778_v34 = vld [vmem:[#allocation4 + $0x78] sm:$0xff] }
 0x89e   :  { %1448 = vmatprep.mubr.bf16.mxu1 %v3078_v0 }
 0x8a0   :  { %1423 = vmatpush1.bf16.msra.mxu1 %v3669_v30 }
 0x8a1   :  { %1569 = vmatprep.subr.bf16.mxu1 %v3672_v24 }
 0x8a4   :  { %v1896_v57 = vld [vmem:[#allocation3 + $0x38] sm:$0xff] }
 0x8a5   :  { %2500 = vmatmul.mubr.msk.bf16.gmra.mrb[60].mxu0 %vm259_vm0, %v1896_v57 }
 0x966   :  { %v1297_v6 = vpop.f32.mrb[48].mxu1 }
 0x967   :  { %v1298_v33 = vadd.f32 %v1297_v6, %v3393_v53  ;;  %v1299_v31 = vpop.f32.mrb[49].mxu1 }
 0x968   :  { %v1301_v7 = vpop.f32.mrb[50].mxu1 }
 0x969   :  { %v1325_v28 = vadd.f32 %v1298_v33, %v3560_v43  ;;  %v1302_v38 = vadd.f32 %v1301_v7, %v3393_v53  ;;  %v1303_v45 = vpop.f32.mrb[51].mxu1 }
 0x96b   :  { %v2415_v61 = vmul.f32 -1.442695, %v1325_v28  ;;  %v1326_v15 = vadd.f32 %v1302_v38, %v3565_v4  ;;  %v1300_v28 = vadd.f32 %v1299_v31, %v3404_v20 }
 0x96d   :  { %2667 = vpow2.f32 %v2415_v61  ;;  %v2416_v29 = vmul.f32 -1.442695, %v1326_v15  ;;  %v1304_v15 = vadd.f32 %v1303_v45, %v3404_v20  ;;  %v1324_v45 = vld [vmem:[#allocation2 + $0x138] sm:$0xff] }
 0x96f   :  { %2669 = vpow2.f32 %v2416_v29 }
 0x970   :  { %v1307_v39 = vpop.f32.mrb[52].mxu1 }
 0x971   :  { %v1308_v32 = vadd.f32 %v1307_v39, %v3393_v53  ;;  %v1309_v52 = vpop.f32.mrb[53].mxu1  ;;  %v1318_v39 = vld [vmem:[#allocation2 + $0x108] sm:$0xff] }
 0x972   :  { %v1311_v13 = vpop.f32.mrb[54].mxu1  ;;  %v1310_v31 = vadd.f32 %v1309_v52, %v3404_v20 }
 0x973   :  { %v1327_v14 = vadd.f32 %v1308_v32, %v3569_v18  ;;  %v1312_v11 = vadd.f32 %v1311_v13, %v3393_v53  ;;  %v1313_v5 = vpop.f32.mrb[55].mxu1 }
 0x975   :  { %v2417_v43 = vmul.f32 -1.442695, %v1327_v14  ;;  %v1328_v40 = vadd.f32 %v1312_v11, %v3573_v21  ;;  %v1320_v14 = vld [vmem:[#allocation2 + $0x118] sm:$0xff] }
 0x977   :  { %v2668_v48 = vpop.eup %2667  ;;  %2671 = vpow2.f32 %v2417_v43  ;;  %v2418_v26 = vmul.f32 -1.442695, %v1328_v40 }
 0x978   :  { %v1341_v4 = vadd.f32 1.0, %v2668_v48  ;;  %v2501_v23 = vpop.f32.mrb[60].mxu0  ;;  %v1314_v48 = vadd.f32 %v1313_v5, %v3404_v20 }
 0x979   :  { %v2670_v60 = vpop.eup %2669  ;;  %2673 = vpow2.f32 %v2418_v26  ;;  %v2167_v41 = vmul.f32 %v2501_v23, %v3599_v51  ;;  %v2067_v59 = vpop.f32.mrb[61].mxu0 }
 0x97a   :  { %2675 = vrcp.f32 %v1341_v4  ;;  %v1342_v46 = vadd.f32 1.0, %v2670_v60  ;;  %v2165_v18 = vmul.f32 %v3599_v51, %v2067_v59  ;;  %v2502_v47 = vpop.f32.mrb[62].mxu0  ;;  %v1322_v4 = vld [vmem:[#allocation2 + $0x128] sm:$0xff] }
 0x97b   :  { %v2206_v42 = vadd.f32 %v3601_v3, %v2167_v41  ;;  %v2168_v2 = vmul.f32 %v2502_v47, %v3599_v51  ;;  %v2070_v21 = vpop.f32.mrb[63].mxu0 }
 0x97c   :  { %2677 = vrcp.f32 %v1342_v46  ;;  %v2204_v22 = vadd.f32 %v3601_v3, %v2165_v18  ;;  %v2166_v54 = vmul.f32 %v3599_v51, %v2070_v21  ;;  %v2779_v51 = vld [vmem:[#allocation4 + $0x68] sm:$0xff] }
 0x97d   :  { %v2238_v37 = vmax.f32 %v2206_v42, 0.0  ;;  %v2207_v8 = vadd.f32 %v3601_v3, %v2168_v2 }
 0x97e   :  { %v2236_v44 = vmax.f32 %v2204_v22, 0.0  ;;  %v2205_v17 = vadd.f32 %v3601_v3, %v2166_v54 }
 0x97f   :  { %v2270_v58 = vadd.f32 %v2776_v62, %v2238_v37  ;;  %v2239_v35 = vmax.f32 %v2207_v8, 0.0 }
 0x980   :  { %v2268_v9 = vadd.f32 %v2777_v49, %v2236_v44  ;;  %v2237_v16 = vmax.f32 %v2205_v17, 0.0 }
 0x981   :  { %v2672_v1 = vpop.eup %2671  ;;  %2302 = vst.msk [vmem:[#allocation19 + $0x70] sm:$0xff] %vm259_vm0, %v2270_v58  ;;  %v2271_v57 = vadd.f32 %v2778_v34, %v2239_v35 }
 0x982   :  { %v1343_v6 = vadd.f32 1.0, %v2672_v1  ;;  %2300 = vst.msk [vmem:[#allocation19 + $0x60] sm:$0xff] %vm259_vm0, %v2268_v9  ;;  %v2269_v33 = vadd.f32 %v2779_v51, %v2237_v16  ;;  %v2780_v51 = vld [vmem:[#allocation2 + $0x140] sm:$0xff] }
 0x983   :  { %v2674_v7 = vpop.eup %2673  ;;  %2303 = vst.msk [vmem:[#allocation19 + $0x78] sm:$0xff] %vm259_vm0, %v2271_v57 }
 0x984   :  { %v2676_v3 = vpop.eup %2675  ;;  %2679 = vrcp.f32 %v1343_v6  ;;  %v1344_v38 = vadd.f32 1.0, %v2674_v7  ;;  %2301 = vst.msk [vmem:[#allocation19 + $0x68] sm:$0xff] %vm259_vm0, %v2269_v33 }
 0x985   :  { %v1353_v61 = vmul.f32 %v2676_v3, %v1300_v28  ;;  %v1365_v5 = vsub.f32 1.0, %v2676_v3  ;;  %v1389_v22 = vmul.f32 %v2676_v3, %v3772_v50  ;;  %v2781_v3 = vld [vmem:[#allocation2 + $0x150] sm:$0xff] }
 0x986   :  { %v2678_v29 = vpop.eup %2677  ;;  %2681 = vrcp.f32 %v1344_v38 }
 0x987   :  { %v1357_v32 = vadd.f32 %v1353_v61, %v1318_v39  ;;  %v1354_v13 = vmul.f32 %v2678_v29, %v1304_v15  ;;  %v1366_v2 = vsub.f32 1.0, %v2678_v29  ;;  %v1390_v54 = vmul.f32 %v2678_v29, %v3774_v36  ;;  %v2782_v39 = vld [vmem:[#allocation2 + $0x160] sm:$0xff] }
 0x989   :  { %2683 = vtanh.f32 %v1357_v32  ;;  %v1358_v11 = vadd.f32 %v1354_v13, %v1320_v14 }
 0x98b   :  { %2685 = vtanh.f32 %v1358_v11 }
 0x98e   :  { %v2680_v43 = vpop.eup %2679 }
 0x98f   :  { %v1355_v40 = vmul.f32 %v2680_v43, %v1310_v31  ;;  %v1367_v62 = vsub.f32 1.0, %v2680_v43  ;;  %v1391_v16 = vmul.f32 %v2680_v43, %v3781_v63  ;;  %v2783_v31 = vld [vmem:[#allocation2 + $0x170] sm:$0xff] }
 0x990   :  { %v2682_v26 = vpop.eup %2681 }
 0x991   :  { %v1359_v23 = vadd.f32 %v1355_v40, %v1322_v4  ;;  %v1356_v60 = vmul.f32 %v2682_v26, %v1314_v48  ;;  %v1368_v49 = vsub.f32 1.0, %v2682_v26  ;;  %v1392_v50 = vmul.f32 %v2682_v26, %v3783_v55 }
 0x993   :  { %v2684_v41 = vpop.eup %2683  ;;  %2687 = vtanh.f32 %v1359_v23  ;;  %v1360_v59 = vadd.f32 %v1356_v60, %v1324_v45  ;;  %v3878_v60 = vld [vmem:[#allocation16] ss:$0 sm:$0xff] }
 0x994   :  { %1373 = vrot.lane.b32.xlu0 %v2684_v41, %s3075_s4 }
 0x995   :  { %v2686_v46 = vpop.eup %2685  ;;  %2689 = vtanh.f32 %v1360_v59 }
 0x996   :  { %1375 = vrot.lane.b32.xlu1 %v2686_v46, %s3075_s4 }
 0x99d   :  { %v2688_v18 = vpop.eup %2687 }
 0x99e   :  { %1377 = vrot.lane.b32.xlu0 %v2688_v18, %s3075_s4 }
 0x99f   :  { %v2690_v52 = vpop.eup %2689 }
 0x9a0   :  { %1379 = vrot.lane.b32.xlu1 %v2690_v52, %s3075_s4  ;;  %v3882_v52 = vld [vmem:[#allocation18] ss:$0 sm:$0xff] }
 0xa06   :  { %v1374_v47 = vpop.permute.xlu0 %1373 }
 0xa07   :  { %v1385_v42 = vmul.f32 %v1374_v47, %v1365_v5 }
 0xa08   :  { %v1376_v21 = vpop.permute.xlu1 %1375 }
 0xa09   :  { %v1386_v37 = vmul.f32 %v1376_v21, %v1366_v2  ;;  %v3834_v8 = vadd.f32 %v1389_v22, %v1385_v42 }
 0xa0b   :  { %v3836_v44 = vadd.f32 %v1390_v54, %v1386_v37 }
 0xa0d   :  { %v1397_v17 = vpack.c.bf16 %v3836_v44, %v3834_v8 }
 0xa0f   :  { %1401 = vrot.lane.b32.xlu0 %v1397_v17, %s3075_s4 }
 0xa10   :  { %v1378_v58 = vpop.permute.xlu0 %1377 }
 0xa11   :  { %v1387_v35 = vmul.f32 %v1378_v58, %v1367_v62  ;;  %v2786_v62 = vld [vmem:[#allocation4 + $0x90] sm:$0xff] }
 0xa12   :  { %v1380_v9 = vpop.permute.xlu1 %1379 }
 0xa13   :  { %v1388_v36 = vmul.f32 %v1380_v9, %v1368_v49  ;;  %v3843_v1 = vadd.f32 %v1391_v16, %v1387_v35  ;;  %v2787_v49 = vld [vmem:[#allocation4 + $0x80] sm:$0xff] }
 0xa15   :  { %v3845_v34 = vadd.f32 %v1392_v50, %v1388_v36  ;;  %v2788_v36 = vld [vmem:[#allocation4 + $0x98] sm:$0xff] }
 0xa17   :  { %v1398_v57 = vpack.c.bf16 %v3845_v34, %v3843_v1 }
 0xa19   :  { %1403 = vrot.lane.b32.xlu1 %v1398_v57, %s3075_s4 }
 0xa81   :  { %v1402_v6 = vpop.permute.xlu0 %1401 }
 0xa82   :  { %1408 = vst.msk [vmem:[#allocation3 + $0x40] sm:$0xff] %vm259_vm0, %v1402_v6  ;;  %2419 = vmatmul.mubr.msk.bf16.vlgmr.msra.gmra.mrb[56].mxu1 %vm259_vm0, %v1402_v6 }
 0xa83   :  { %1458 = vmatprep.mubr.bf16.mxu1 %v3078_v0  ;;  %1570 = vmatpush1.bf16.msra.mxu1 %v3647_v10 }
 0xa84   :  { %1571 = vmatprep.subr.bf16.mxu1 %v3650_v12 }
 0xa87   :  { %1572 = vmatpush1.bf16.msra.mxu1 %v3653_v25 }
 0xa88   :  { %1573 = vmatprep.subr.bf16.mxu1 %v3656_v56 }
 0xa89   :  { %v1897_v63 = vld [vmem:[#allocation3 + $0x40] sm:$0xff] }
 0xa8a   :  { %2503 = vmatprep.mubr.msk.bf16.mxu0 %vm259_vm0, %v1897_v63  ;;  %v2789_v63 = vld [vmem:[#allocation4 + $0x88] sm:$0xff] }
 0xa8b   :  { %v1404_v55 = vpop.permute.xlu1 %1403  ;;  %1574 = vmatpush1.bf16.msra.mxu1 %v3660_v19 }
 0xa8c   :  { %1409 = vst.msk [vmem:[#allocation3 + $0x48] sm:$0xff] %vm259_vm0, %v1404_v55  ;;  %2420 = vmatmul.mubr.msk.bf16.gmra.mrb[60].mxu1 %vm259_vm0, %v1404_v55  ;;  %1575 = vmatprep.subr.bf16.mxu1 %v3665_v27 }
 0xa8d   :  { %1601 = vmatprep.mubr.bf16.mxu1 %v3078_v0 }
 0xa8f   :  { %1576 = vmatpush1.bf16.msra.mxu1 %v3669_v30 }
 0xa90   :  { %1722 = vmatprep.subr.bf16.mxu1 %v3672_v24 }
 0xa93   :  { %v1898_v10 = vld [vmem:[#allocation3 + $0x48] sm:$0xff] }
 0xa94   :  { %2504 = vmatmul.mubr.msk.bf16.gmra.mrb[64].mxu0 %vm259_vm0, %v1898_v10 }
 0xb55   :  { %v1450_v12 = vpop.f32.mrb[56].mxu1 }
 0xb56   :  { %v1451_v25 = vadd.f32 %v1450_v12, %v3393_v53  ;;  %v3867_v56 = vpop.f32.mrb[57].mxu1 }
 0xb57   :  { %v1454_v19 = vpop.f32.mrb[58].mxu1  ;;  %v1453_v12 = vadd.f32 %v3867_v56, %v3404_v20 }
 0xb58   :  { %v1478_v33 = vadd.f32 %v2780_v51, %v1451_v25  ;;  %v1455_v7 = vadd.f32 %v1454_v19, %v3393_v53  ;;  %v3870_v27 = vpop.f32.mrb[59].mxu1 }
 0xb5a   :  { %v2421_v28 = vmul.f32 -1.442695, %v1478_v33  ;;  %v1479_v30 = vadd.f32 %v2781_v3, %v1455_v7  ;;  %v1457_v33 = vadd.f32 %v3870_v27, %v3404_v20 }
 0xb5c   :  { %2691 = vpow2.f32 %v2421_v28  ;;  %v2422_v24 = vmul.f32 -1.442695, %v1479_v30  ;;  %v1471_v28 = vld [vmem:[#allocation2 + $0x148] sm:$0xff] }
 0xb5e   :  { %2693 = vpow2.f32 %v2422_v24  ;;  %v1473_v24 = vld [vmem:[#allocation2 + $0x158] sm:$0xff] }
 0xb5f   :  { %v1460_v38 = vpop.f32.mrb[60].mxu1 }
 0xb60   :  { %v1461_v61 = vadd.f32 %v1460_v38, %v3393_v53  ;;  %v3873_v15 = vpop.f32.mrb[61].mxu1 }
 0xb61   :  { %v1464_v29 = vpop.f32.mrb[62].mxu1  ;;  %v1463_v56 = vadd.f32 %v3873_v15, %v3404_v20 }
 0xb62   :  { %v1480_v32 = vadd.f32 %v2782_v39, %v1461_v61  ;;  %v1465_v13 = vadd.f32 %v1464_v29, %v3393_v53  ;;  %v3876_v14 = vpop.f32.mrb[63].mxu1 }
 0xb63   :  { %v1467_v39 = vadd.f32 %v3876_v14, %v3404_v20 }
 0xb64   :  { %v2423_v11 = vmul.f32 -1.442695, %v1480_v32  ;;  %v1481_v43 = vadd.f32 %v2783_v31, %v1465_v13  ;;  %v1475_v13 = vld [vmem:[#allocation2 + $0x168] sm:$0xff]  ;;  %v1477_v31 = vld [vmem:[#allocation2 + $0x178] sm:$0xff] }
 0xb66   :  { %v2692_v40 = vpop.eup %2691  ;;  %2695 = vpow2.f32 %v2423_v11  ;;  %v2424_v48 = vmul.f32 -1.442695, %v1481_v43 }
 0xb67   :  { %v1494_v26 = vadd.f32 1.0, %v2692_v40  ;;  %v2505_v4 = vpop.f32.mrb[64].mxu0 }
 0xb68   :  { %v2694_v23 = vpop.eup %2693  ;;  %2697 = vpow2.f32 %v2424_v48  ;;  %v2171_v45 = vmul.f32 %v3878_v60, %v2505_v4  ;;  %v2083_v41 = vpop.f32.mrb[65].mxu0 }
 0xb69   :  { %2699 = vrcp.f32 %v1494_v26  ;;  %v1495_v59 = vadd.f32 1.0, %v2694_v23  ;;  %v2169_v46 = vmul.f32 %v3878_v60, %v2083_v41  ;;  %v2506_v18 = vpop.f32.mrb[66].mxu0 }
 0xb6a   :  { %v2210_v5 = vadd.f32 %v3882_v52, %v2171_v45  ;;  %v2172_v47 = vmul.f32 %v3878_v60, %v2506_v18  ;;  %v2086_v42 = vpop.f32.mrb[67].mxu0 }
 0xb6b   :  { %2701 = vrcp.f32 %v1495_v59  ;;  %v2208_v2 = vadd.f32 %v3882_v52, %v2169_v46  ;;  %v2170_v21 = vmul.f32 %v3878_v60, %v2086_v42 }
 0xb6c   :  { %v2242_v22 = vmax.f32 %v2210_v5, 0.0  ;;  %v2211_v54 = vadd.f32 %v3882_v52, %v2172_v47 }
 0xb6d   :  { %v2240_v37 = vmax.f32 %v2208_v2, 0.0  ;;  %v2209_v17 = vadd.f32 %v3882_v52, %v2170_v21 }
 0xb6e   :  { %v2274_v58 = vadd.f32 %v2786_v62, %v2242_v22  ;;  %v2243_v35 = vmax.f32 %v2211_v54, 0.0 }
 0xb6f   :  { %v2272_v9 = vadd.f32 %v2787_v49, %v2240_v37  ;;  %v2241_v16 = vmax.f32 %v2209_v17, 0.0 }
 0xb70   :  { %v2696_v50 = vpop.eup %2695  ;;  %2306 = vst.msk [vmem:[#allocation19 + $0x90] sm:$0xff] %vm259_vm0, %v2274_v58  ;;  %v2275_v57 = vadd.f32 %v2788_v36, %v2243_v35 }
 0xb71   :  { %v1496_v6 = vadd.f32 1.0, %v2696_v50  ;;  %2304 = vst.msk [vmem:[#allocation19 + $0x80] sm:$0xff] %vm259_vm0, %v2272_v9  ;;  %v2273_v55 = vadd.f32 %v2789_v63, %v2241_v16  ;;  %v2792_v9 = vld [vmem:[#allocation10 + $0x10] ss:$8 sps:$4 sm:$0xff]   ;;  %v2793_v16 = vld [vmem:[#allocation10 + $0x24] ss:$8 sps:$4 sm:$0xff]  }
 0xb72   :  { %v2698_v10 = vpop.eup %2697  ;;  %2307 = vst.msk [vmem:[#allocation19 + $0x98] sm:$0xff] %vm259_vm0, %v2275_v57  ;;  %v2794_v57 = vld [vmem:[#allocation10 + $0x20] ss:$8 sps:$4 sm:$0xff]   ;;  %v2796_v63 = vld [vmem:[#allocation10 + $0x30] ss:$8 sps:$4 sm:$0xff]  }
 0xb73   :  { %v2700_v25 = vpop.eup %2699  ;;  %2703 = vrcp.f32 %v1496_v6  ;;  %v1497_v19 = vadd.f32 1.0, %v2698_v10  ;;  %2305 = vst.msk [vmem:[#allocation19 + $0x88] sm:$0xff] %vm259_vm0, %v2273_v55  ;;  %v2795_v6 = vld [vmem:[#allocation10 + $0x34] ss:$8 sps:$4 sm:$0xff]  }
 0xb74   :  { %v1506_v51 = vmul.f32 %v2700_v25, %v1453_v12  ;;  %v1518_v14 = vsub.f32 1.0, %v2700_v25  ;;  %v1542_v59 = vmul.f32 %v2700_v25, %v3834_v8 }
 0xb75   :  { %v2702_v7 = vpop.eup %2701  ;;  %2705 = vrcp.f32 %v1497_v19  ;;  %v1623_v19 = vld [vmem:[#allocation2 + $0x180] sm:$0xff] }
 0xb76   :  { %v1510_v3 = vadd.f32 %v1506_v51, %v1471_v28  ;;  %v1507_v30 = vmul.f32 %v2702_v7, %v1457_v33  ;;  %v1519_v45 = vsub.f32 1.0, %v2702_v7  ;;  %v1543_v46 = vmul.f32 %v2702_v7, %v3836_v44 }
 0xb78   :  { %2707 = vtanh.f32 %v1510_v3  ;;  %v1511_v38 = vadd.f32 %v1507_v30, %v1473_v24  ;;  %v1625_v3 = vld [vmem:[#allocation2 + $0x190] sm:$0xff] }
 0xb7a   :  { %2709 = vtanh.f32 %v1511_v38 }
 0xb7d   :  { %v2704_v61 = vpop.eup %2703 }
 0xb7e   :  { %v1508_v29 = vmul.f32 %v2704_v61, %v1463_v56  ;;  %v1520_v2 = vsub.f32 1.0, %v2704_v61  ;;  %v1544_v17 = vmul.f32 %v2704_v61, %v3843_v1  ;;  %v2790_v1 = vld [vmem:[#allocation10] ss:$8 sps:$4 sm:$0xff]  }
 0xb7f   :  { %v2706_v32 = vpop.eup %2705 }
 0xb80   :  { %v1512_v27 = vadd.f32 %v1508_v29, %v1475_v13  ;;  %v1509_v11 = vmul.f32 %v2706_v32, %v1467_v39  ;;  %v1521_v54 = vsub.f32 1.0, %v2706_v32  ;;  %v1545_v8 = vmul.f32 %v2706_v32, %v3845_v34  ;;  %v2791_v34 = vld [vmem:[#allocation10 + $0x14] ss:$8 sps:$4 sm:$0xff]  }
 0xb81   :  { %v1627_v39 = vld [vmem:[#allocation2 + $0x1a0] sm:$0xff] }
 0xb82   :  { %v2708_v43 = vpop.eup %2707  ;;  %2711 = vtanh.f32 %v1512_v27  ;;  %v1513_v40 = vadd.f32 %v1509_v11, %v1477_v31  ;;  %v1629_v31 = vld [vmem:[#allocation2 + $0x1b0] sm:$0xff] }
 0xb83   :  { %1526 = vrot.lane.b32.xlu0 %v2708_v43, %s3075_s4 }
 0xb84   :  { %v2710_v48 = vpop.eup %2709  ;;  %2713 = vtanh.f32 %v1513_v40 }
 0xb85   :  { %1528 = vrot.lane.b32.xlu1 %v2710_v48, %s3075_s4 }
 0xb8c   :  { %v2712_v15 = vpop.eup %2711 }
 0xb8d   :  { %1530 = vrot.lane.b32.xlu0 %v2712_v15, %s3075_s4 }
 0xb8e   :  { %v2714_v26 = vpop.eup %2713 }
 0xb8f   :  { %1532 = vrot.lane.b32.xlu1 %v2714_v26, %s3075_s4 }
 0xbf5   :  { %v1527_v4 = vpop.permute.xlu0 %1526 }
 0xbf6   :  { %v1538_v23 = vmul.f32 %v1527_v4, %v1518_v14 }
 0xbf7   :  { %v1529_v41 = vpop.permute.xlu1 %1528 }
 0xbf8   :  { %v1539_v18 = vmul.f32 %v1529_v41, %v1519_v45  ;;  %v3908_v5 = vadd.f32 %v1542_v59, %v1538_v23 }
 0xbfa   :  { %v3910_v47 = vadd.f32 %v1543_v46, %v1539_v18 }
 0xbfc   :  { %v1550_v42 = vpack.c.bf16 %v3910_v47, %v3908_v5 }
 0xbfe   :  { %1554 = vrot.lane.b32.xlu0 %v1550_v42, %s3075_s4 }
 0xbff   :  { %v1531_v21 = vpop.permute.xlu0 %1530 }
 0xc00   :  { %v1540_v22 = vmul.f32 %v1531_v21, %v1520_v2 }
 0xc01   :  { %v1533_v37 = vpop.permute.xlu1 %1532 }
 0xc02   :  { %v1541_v44 = vmul.f32 %v1533_v37, %v1521_v54  ;;  %v3917_v62 = vadd.f32 %v1544_v17, %v1540_v22 }
 0xc04   :  { %v3919_v58 = vadd.f32 %v1545_v8, %v1541_v44  ;;  %v2797_v44 = vld [vmem:[#allocation4 + $0xb0] sm:$0xff] }
 0xc06   :  { %v1551_v35 = vpack.c.bf16 %v3919_v58, %v3917_v62 }
 0xc08   :  { %1556 = vrot.lane.b32.xlu1 %v1551_v35, %s3075_s4 }
 0xc70   :  { %v1555_v49 = vpop.permute.xlu0 %1554 }
 0xc71   :  { %1561 = vst.msk [vmem:[#allocation3 + $0x50] sm:$0xff] %vm259_vm0, %v1555_v49  ;;  %2425 = vmatmul.mubr.msk.bf16.vlgmr.msra.gmra.mrb[64].mxu1 %vm259_vm0, %v1555_v49 }
 0xc72   :  { %1611 = vmatprep.mubr.bf16.mxu1 %v3078_v0  ;;  %1723 = vmatpush1.bf16.msra.mxu1 %v2790_v1  ;;  %v2798_v1 = vld [vmem:[#allocation4 + $0xa0] sm:$0xff] }
 0xc73   :  { %1724 = vmatprep.subr.bf16.mxu1 %v2791_v34 }
 0xc76   :  { %1725 = vmatpush1.bf16.msra.mxu1 %v2792_v9 }
 0xc77   :  { %1726 = vmatprep.subr.bf16.mxu1 %v2793_v16 }
 0xc78   :  { %v1899_v50 = vld [vmem:[#allocation3 + $0x50] sm:$0xff] }
 0xc79   :  { %2507 = vmatprep.mubr.msk.bf16.mxu0 %vm259_vm0, %v1899_v50  ;;  %v2799_v50 = vld [vmem:[#allocation4 + $0xb8] sm:$0xff] }
 0xc7a   :  { %v1557_v36 = vpop.permute.xlu1 %1556  ;;  %1727 = vmatpush1.bf16.msra.mxu1 %v2794_v57 }
 0xc7b   :  { %1562 = vst.msk [vmem:[#allocation3 + $0x58] sm:$0xff] %vm259_vm0, %v1557_v36  ;;  %2426 = vmatmul.mubr.msk.bf16.gmra.mrb[68].mxu1 %vm259_vm0, %v1557_v36  ;;  %1728 = vmatprep.subr.bf16.mxu1 %v2795_v6  ;;  %v2800_v6 = vld [vmem:[#allocation4 + $0xa8] sm:$0xff] }
 0xc7c   :  { %1754 = vmatprep.mubr.bf16.mxu1 %v3078_v0 }
 0xc7e   :  { %1729 = vmatpush1.bf16.msra.mxu1 %v2796_v63 }
 0xc82   :  { %v1900_v55 = vld [vmem:[#allocation3 + $0x58] sm:$0xff] }
 0xc83   :  { %2508 = vmatmul.mubr.msk.bf16.gmra.mrb[68].mxu0 %vm259_vm0, %v1900_v55 }
 0xd44   :  { %v1603_v10 = vpop.f32.mrb[64].mxu1 }
 0xd45   :  { %v1604_v12 = vadd.f32 %v1603_v10, %v3393_v53  ;;  %v1605_v25 = vpop.f32.mrb[65].mxu1 }
 0xd46   :  { %v1607_v51 = vpop.f32.mrb[66].mxu1  ;;  %v1606_v10 = vadd.f32 %v1605_v25, %v3404_v20 }
 0xd47   :  { %v1631_v33 = vadd.f32 %v1623_v19, %v1604_v12  ;;  %v1608_v7 = vadd.f32 %v1607_v51, %v3393_v53  ;;  %v3934_v28 = vpop.f32.mrb[67].mxu1 }
 0xd49   :  { %v2427_v30 = vmul.f32 -1.442695, %v1631_v33  ;;  %v1632_v24 = vadd.f32 %v1625_v3, %v1608_v7  ;;  %v1610_v33 = vadd.f32 %v3934_v28, %v3404_v20  ;;  %v1624_v3 = vld [vmem:[#allocation2 + $0x188] sm:$0xff] }
 0xd4b   :  { %2715 = vpow2.f32 %v2427_v30  ;;  %v2428_v38 = vmul.f32 -1.442695, %v1632_v24 }
 0xd4d   :  { %2717 = vpow2.f32 %v2428_v38  ;;  %v1626_v38 = vld [vmem:[#allocation2 + $0x198] sm:$0xff] }
 0xd4e   :  { %v1613_v56 = vpop.f32.mrb[68].mxu1 }
 0xd4f   :  { %v1614_v61 = vadd.f32 %v1613_v56, %v3393_v53  ;;  %v3937_v29 = vpop.f32.mrb[69].mxu1 }
 0xd50   :  { %v1617_v32 = vpop.f32.mrb[70].mxu1  ;;  %v1616_v25 = vadd.f32 %v3937_v29, %v3404_v20 }
 0xd51   :  { %v1633_v13 = vadd.f32 %v1627_v39, %v1614_v61  ;;  %v1618_v27 = vadd.f32 %v1617_v32, %v3393_v53  ;;  %v1619_v11 = vpop.f32.mrb[71].mxu1 }
 0xd52   :  { %v1620_v32 = vadd.f32 %v1619_v11, %v3404_v20 }
 0xd53   :  { %v2429_v43 = vmul.f32 -1.442695, %v1633_v13  ;;  %v1634_v40 = vadd.f32 %v1629_v31, %v1618_v27  ;;  %v1628_v27 = vld [vmem:[#allocation2 + $0x1a8] sm:$0xff] }
 0xd55   :  { %v2716_v48 = vpop.eup %2715  ;;  %2719 = vpow2.f32 %v2429_v43  ;;  %v2430_v15 = vmul.f32 -1.442695, %v1634_v40  ;;  %v1630_v43 = vld [vmem:[#allocation2 + $0x1b8] sm:$0xff] }
 0xd56   :  { %v1647_v26 = vadd.f32 1.0, %v2716_v48  ;;  %v2509_v14 = vpop.f32.mrb[68].mxu0 }
 0xd57   :  { %v2718_v4 = vpop.eup %2717  ;;  %2721 = vpow2.f32 %v2430_v15  ;;  %v2175_v23 = vmul.f32 %v3878_v60, %v2509_v14  ;;  %v2099_v45 = vpop.f32.mrb[69].mxu0 }
 0xd58   :  { %2723 = vrcp.f32 %v1647_v26  ;;  %v1648_v41 = vadd.f32 1.0, %v2718_v4  ;;  %v2173_v59 = vmul.f32 %v3878_v60, %v2099_v45  ;;  %v2510_v46 = vpop.f32.mrb[70].mxu0 }
 0xd59   :  { %v2214_v18 = vadd.f32 %v3882_v52, %v2175_v23  ;;  %v2176_v42 = vmul.f32 %v3878_v60, %v2510_v46  ;;  %v2102_v2 = vpop.f32.mrb[71].mxu0 }
 0xd5a   :  { %2725 = vrcp.f32 %v1648_v41  ;;  %v2212_v21 = vadd.f32 %v3882_v52, %v2173_v59  ;;  %v2174_v22 = vmul.f32 %v3878_v60, %v2102_v2 }
 0xd5b   :  { %v2246_v54 = vmax.f32 %v2214_v18, 0.0  ;;  %v2215_v37 = vadd.f32 %v3882_v52, %v2176_v42 }
 0xd5c   :  { %v2244_v17 = vmax.f32 %v2212_v21, 0.0  ;;  %v2213_v8 = vadd.f32 %v3882_v52, %v2174_v22 }
 0xd5d   :  { %v2278_v35 = vadd.f32 %v2797_v44, %v2246_v54  ;;  %v2247_v49 = vmax.f32 %v2215_v37, 0.0 }
 0xd5e   :  { %v2276_v34 = vadd.f32 %v2798_v1, %v2244_v17  ;;  %v2245_v9 = vmax.f32 %v2213_v8, 0.0 }
 0xd5f   :  { %v2720_v16 = vpop.eup %2719  ;;  %2310 = vst.msk [vmem:[#allocation19 + $0xb0] sm:$0xff] %vm259_vm0, %v2278_v35  ;;  %v2279_v36 = vadd.f32 %v2799_v50, %v2247_v49 }
 0xd60   :  { %v1649_v57 = vadd.f32 1.0, %v2720_v16  ;;  %2308 = vst.msk [vmem:[#allocation19 + $0xa0] sm:$0xff] %vm259_vm0, %v2276_v34  ;;  %v2277_v63 = vadd.f32 %v2800_v6, %v2245_v9 }
 0xd61   :  { %v2722_v55 = vpop.eup %2721  ;;  %2311 = vst.msk [vmem:[#allocation19 + $0xb8] sm:$0xff] %vm259_vm0, %v2279_v36  ;;  %v1776_v36 = vld [vmem:[#allocation2 + $0x1c0] sm:$0xff] }
 0xd62   :  { %v2724_v12 = vpop.eup %2723  ;;  %2727 = vrcp.f32 %v1649_v57  ;;  %v1650_v19 = vadd.f32 1.0, %v2722_v55  ;;  %2309 = vst.msk [vmem:[#allocation19 + $0xa8] sm:$0xff] %vm259_vm0, %v2277_v63  ;;  %v1778_v55 = vld [vmem:[#allocation2 + $0x1d0] sm:$0xff] }
 0xd63   :  { %v1659_v51 = vmul.f32 %v2724_v12, %v1606_v10  ;;  %v1671_v11 = vsub.f32 1.0, %v2724_v12  ;;  %v1695_v41 = vmul.f32 %v2724_v12, %v3908_v5 }
 0xd64   :  { %v2726_v7 = vpop.eup %2725  ;;  %2729 = vrcp.f32 %v1650_v19 }
 0xd65   :  { %v1663_v30 = vadd.f32 %v1659_v51, %v1624_v3  ;;  %v1660_v24 = vmul.f32 %v2726_v7, %v1610_v33  ;;  %v1672_v23 = vsub.f32 1.0, %v2726_v7  ;;  %v1696_v59 = vmul.f32 %v2726_v7, %v3910_v47  ;;  %v1780_v3 = vld [vmem:[#allocation2 + $0x1e0] sm:$0xff] }
 0xd67   :  { %2731 = vtanh.f32 %v1663_v30  ;;  %v1664_v56 = vadd.f32 %v1660_v24, %v1626_v38 }
 0xd69   :  { %2733 = vtanh.f32 %v1664_v56 }
 0xd6c   :  { %v2728_v61 = vpop.eup %2727 }
 0xd6d   :  { %v1661_v39 = vmul.f32 %v2728_v61, %v1616_v25  ;;  %v1673_v21 = vsub.f32 1.0, %v2728_v61  ;;  %v1697_v8 = vmul.f32 %v2728_v61, %v3917_v62  ;;  %v1782_v25 = vld [vmem:[#allocation2 + $0x1f0] sm:$0xff] }
 0xd6e   :  { %v2730_v13 = vpop.eup %2729 }
 0xd6f   :  { %v1665_v31 = vadd.f32 %v1661_v39, %v1628_v27  ;;  %v1662_v28 = vmul.f32 %v2730_v13, %v1620_v32  ;;  %v1674_v37 = vsub.f32 1.0, %v2730_v13  ;;  %v1698_v5 = vmul.f32 %v2730_v13, %v3919_v58 }
 0xd71   :  { %v2732_v40 = vpop.eup %2731  ;;  %2735 = vtanh.f32 %v1665_v31  ;;  %v1666_v48 = vadd.f32 %v1662_v28, %v1630_v43 }
 0xd72   :  { %1679 = vrot.lane.b32.xlu0 %v2732_v40, %s3075_s4 }
 0xd73   :  { %v2734_v15 = vpop.eup %2733  ;;  %2737 = vtanh.f32 %v1666_v48 }
 0xd74   :  { %1681 = vrot.lane.b32.xlu1 %v2734_v15, %s3075_s4 }
 0xd7b   :  { %v2736_v26 = vpop.eup %2735 }
 0xd7c   :  { %1683 = vrot.lane.b32.xlu0 %v2736_v26, %s3075_s4 }
 0xd7d   :  { %v2738_v29 = vpop.eup %2737 }
 0xd7e   :  { %1685 = vrot.lane.b32.xlu1 %v2738_v29, %s3075_s4 }
 0xde4   :  { %v1680_v14 = vpop.permute.xlu0 %1679 }
 0xde5   :  { %v1691_v4 = vmul.f32 %v1680_v14, %v1671_v11 }
 0xde6   :  { %v1682_v45 = vpop.permute.xlu1 %1681 }
 0xde7   :  { %v1692_v46 = vmul.f32 %v1682_v45, %v1672_v23  ;;  %v3964_v18 = vadd.f32 %v1695_v41, %v1691_v4 }
 0xde9   :  { %v3966_v42 = vadd.f32 %v1696_v59, %v1692_v46  ;;  %v2801_v46 = vld [vmem:[#allocation4 + $0xd0] sm:$0xff] }
 0xdeb   :  { %v1703_v2 = vpack.c.bf16 %v3966_v42, %v3964_v18 }
 0xded   :  { %1707 = vrot.lane.b32.xlu0 %v1703_v2, %s3075_s4 }
 0xdee   :  { %v1684_v22 = vpop.permute.xlu0 %1683 }
 0xdef   :  { %v1693_v54 = vmul.f32 %v1684_v22, %v1673_v21  ;;  %v2802_v22 = vld [vmem:[#allocation4 + $0xc0] sm:$0xff] }
 0xdf0   :  { %v1686_v17 = vpop.permute.xlu1 %1685 }
 0xdf1   :  { %v1694_v47 = vmul.f32 %v1686_v17, %v1674_v37  ;;  %v3973_v44 = vadd.f32 %v1697_v8, %v1693_v54  ;;  %v2803_v8 = vld [vmem:[#allocation4 + $0xd8] sm:$0xff] }
 0xdf3   :  { %v3975_v35 = vadd.f32 %v1698_v5, %v1694_v47 }
 0xdf5   :  { %v1704_v49 = vpack.c.bf16 %v3975_v35, %v3973_v44 }
 0xdf7   :  { %1709 = vrot.lane.b32.xlu1 %v1704_v49, %s3075_s4  ;;  %v2804_v49 = vld [vmem:[#allocation4 + $0xc8] sm:$0xff] }
 0xe5f   :  { %v1708_v1 = vpop.permute.xlu0 %1707 }
 0xe60   :  { %1714 = vst.msk [vmem:[#allocation3 + $0x60] sm:$0xff] %vm259_vm0, %v1708_v1  ;;  %2431 = vmatmul.mubr.msk.bf16.vlgmr.msra.gmra.mrb[72].mxu1 %vm259_vm0, %v1708_v1 }
 0xe61   :  { %1764 = vmatprep.mubr.bf16.mxu1 %v3078_v0 }
 0xe67   :  { %v1901_v62 = vld [vmem:[#allocation3 + $0x60] sm:$0xff] }
 0xe68   :  { %2511 = vmatprep.mubr.msk.bf16.mxu0 %vm259_vm0, %v1901_v62 }
 0xe69   :  { %v1710_v58 = vpop.permute.xlu1 %1709 }
 0xe6a   :  { %1715 = vst.msk [vmem:[#allocation3 + $0x68] sm:$0xff] %vm259_vm0, %v1710_v58  ;;  %2432 = vmatmul.mubr.msk.bf16.gmra.mrb[76].mxu1 %vm259_vm0, %v1710_v58 }
 0xe71   :  { %v1902_v34 = vld [vmem:[#allocation3 + $0x68] sm:$0xff] }
 0xe72   :  { %2512 = vmatmul.mubr.msk.bf16.gmra.mrb[72].mxu0 %vm259_vm0, %v1902_v34 }
 0xf33   :  { %v1756_v9 = vpop.f32.mrb[72].mxu1 }
 0xf34   :  { %v1757_v16 = vadd.f32 %v1756_v9, %v3393_v53  ;;  %v1758_v50 = vpop.f32.mrb[73].mxu1 }
 0xf35   :  { %v1760_v57 = vpop.f32.mrb[74].mxu1  ;;  %v1759_v58 = vadd.f32 %v1758_v50, %v3404_v20 }
 0xf36   :  { %v1784_v6 = vadd.f32 %v1776_v36, %v1757_v16  ;;  %v1761_v0 = vadd.f32 %v1760_v57, %v3393_v53  ;;  %v3989_v63 = vpop.f32.mrb[75].mxu1 }
 0xf37   :  { %v1763_v36 = vadd.f32 %v3989_v63, %v3404_v20 }
 0xf38   :  { %v2433_v10 = vmul.f32 -1.442695, %v1784_v6  ;;  %v1785_v12 = vadd.f32 %v1778_v55, %v1761_v0  ;;  %v1777_v6 = vld [vmem:[#allocation2 + $0x1c8] sm:$0xff] }
 0xf3a   :  { %2739 = vpow2.f32 %v2433_v10  ;;  %v2434_v19 = vmul.f32 -1.442695, %v1785_v12  ;;  %v1779_v10 = vld [vmem:[#allocation2 + $0x1d8] sm:$0xff] }
 0xf3c   :  { %2741 = vpow2.f32 %v2434_v19 }
 0xf3d   :  { %v1766_v51 = vpop.f32.mrb[76].mxu1 }
 0xf3e   :  { %v1767_v33 = vadd.f32 %v1766_v51, %v3393_v53  ;;  %v3992_v7 = vpop.f32.mrb[77].mxu1 }
 0xf3f   :  { %v1770_v30 = vpop.f32.mrb[78].mxu1  ;;  %v1769_v50 = vadd.f32 %v3992_v7, %v3404_v20 }
 0xf40   :  { %v1786_v24 = vadd.f32 %v1780_v3, %v1767_v33  ;;  %v1771_v38 = vadd.f32 %v1770_v30, %v3393_v53  ;;  %v1772_v56 = vpop.f32.mrb[79].mxu1  ;;  %v1781_v30 = vld [vmem:[#allocation2 + $0x1e8] sm:$0xff] }
 0xf41   :  { %v1773_v33 = vadd.f32 %v1772_v56, %v3404_v20 }
 0xf42   :  { %v2435_v61 = vmul.f32 -1.442695, %v1786_v24  ;;  %v1787_v39 = vadd.f32 %v1782_v25, %v1771_v38  ;;  %v1783_v38 = vld [vmem:[#allocation2 + $0x1f8] sm:$0xff] }
 0xf44   :  { %v2740_v32 = vpop.eup %2739  ;;  %2743 = vpow2.f32 %v2435_v61  ;;  %v2436_v13 = vmul.f32 -1.442695, %v1787_v39 }
 0xf45   :  { %v1800_v27 = vadd.f32 1.0, %v2740_v32  ;;  %v2513_v31 = vpop.f32.mrb[72].mxu0 }
 0xf46   :  { %v2742_v28 = vpop.eup %2741  ;;  %2745 = vpow2.f32 %v2436_v13  ;;  %v2179_v43 = vmul.f32 %v3878_v60, %v2513_v31  ;;  %v2115_v40 = vpop.f32.mrb[73].mxu0 }
 0xf47   :  { %2747 = vrcp.f32 %v1800_v27  ;;  %v1801_v48 = vadd.f32 1.0, %v2742_v28  ;;  %v2177_v15 = vmul.f32 %v3878_v60, %v2115_v40  ;;  %v2514_v26 = vpop.f32.mrb[74].mxu0 }
 0xf48   :  { %v2218_v53 = vadd.f32 %v3882_v52, %v2179_v43  ;;  %v2180_v29 = vmul.f32 %v3878_v60, %v2514_v26  ;;  %v2118_v11 = vpop.f32.mrb[75].mxu0 }
 0xf49   :  { %2749 = vrcp.f32 %v1801_v48  ;;  %v2216_v14 = vadd.f32 %v3882_v52, %v2177_v15  ;;  %v2178_v4 = vmul.f32 %v3878_v60, %v2118_v11 }
 0xf4a   :  { %v2250_v23 = vmax.f32 %v2218_v53, 0.0  ;;  %v2219_v45 = vadd.f32 %v3882_v52, %v2180_v29 }
 0xf4b   :  { %v2248_v41 = vmax.f32 %v2216_v14, 0.0  ;;  %v2217_v59 = vadd.f32 %v3882_v52, %v2178_v4 }
 0xf4c   :  { %v2282_v2 = vadd.f32 %v2801_v46, %v2250_v23  ;;  %v2251_v21 = vmax.f32 %v2219_v45, 0.0 }
 0xf4d   :  { %v2280_v54 = vadd.f32 %v2802_v22, %v2248_v41  ;;  %v2249_v37 = vmax.f32 %v2217_v59, 0.0 }
 0xf4e   :  { %v2744_v17 = vpop.eup %2743  ;;  %2314 = vst.msk [vmem:[#allocation19 + $0xd0] sm:$0xff] %vm259_vm0, %v2282_v2  ;;  %v2283_v5 = vadd.f32 %v2803_v8, %v2251_v21 }
 0xf4f   :  { %v1802_v47 = vadd.f32 1.0, %v2744_v17  ;;  %2312 = vst.msk [vmem:[#allocation19 + $0xc0] sm:$0xff] %vm259_vm0, %v2280_v54  ;;  %v2281_v1 = vadd.f32 %v2804_v49, %v2249_v37 }
 0xf50   :  { %v2746_v62 = vpop.eup %2745  ;;  %2315 = vst.msk [vmem:[#allocation19 + $0xd8] sm:$0xff] %vm259_vm0, %v2283_v5 }
 0xf51   :  { %v2748_v34 = vpop.eup %2747  ;;  %2751 = vrcp.f32 %v1802_v47  ;;  %v1803_v9 = vadd.f32 1.0, %v2746_v62  ;;  %2313 = vst.msk [vmem:[#allocation19 + $0xc8] sm:$0xff] %vm259_vm0, %v2281_v1 }
 0xf52   :  { %v1812_v16 = vmul.f32 %v2748_v34, %v1759_v58  ;;  %v1824_v20 = vsub.f32 1.0, %v2748_v34  ;;  %v1848_v28 = vmul.f32 %v2748_v34, %v3964_v18 }
 0xf53   :  { %v2750_v57 = vpop.eup %2749  ;;  %2753 = vrcp.f32 %v1803_v9 }
 0xf54   :  { %v1816_v0 = vadd.f32 %v1812_v16, %v1777_v6  ;;  %v1813_v55 = vmul.f32 %v2750_v57, %v1763_v36  ;;  %v1825_v27 = vsub.f32 1.0, %v2750_v57  ;;  %v1849_v43 = vmul.f32 %v2750_v57, %v3966_v42 }
 0xf56   :  { %2755 = vtanh.f32 %v1816_v0  ;;  %v1817_v12 = vadd.f32 %v1813_v55, %v1779_v10 }
 0xf58   :  { %2757 = vtanh.f32 %v1817_v12 }
 0xf5b   :  { %v2752_v19 = vpop.eup %2751 }
 0xf5c   :  { %v1814_v51 = vmul.f32 %v2752_v19, %v1769_v50  ;;  %v1826_v53 = vsub.f32 1.0, %v2752_v19  ;;  %v1850_v18 = vmul.f32 %v2752_v19, %v3973_v44 }
 0xf5d   :  { %v2754_v3 = vpop.eup %2753 }
 0xf5e   :  { %v1818_v24 = vadd.f32 %v1814_v51, %v1781_v30  ;;  %v1815_v63 = vmul.f32 %v2754_v3, %v1773_v33  ;;  %v1827_v14 = vsub.f32 1.0, %v2754_v3  ;;  %v1851_v23 = vmul.f32 %v2754_v3, %v3975_v35 }
 0xf60   :  { %v2756_v25 = vpop.eup %2755  ;;  %2759 = vtanh.f32 %v1818_v24  ;;  %v1819_v61 = vadd.f32 %v1815_v63, %v1783_v38 }
 0xf61   :  { %1832 = vrot.lane.b32.xlu0 %v2756_v25, %s3075_s4 }
 0xf62   :  { %v2758_v39 = vpop.eup %2757  ;;  %2761 = vtanh.f32 %v1819_v61 }
 0xf63   :  { %1834 = vrot.lane.b32.xlu1 %v2758_v39, %s3075_s4 }
 0xf6a   :  { %v2760_v32 = vpop.eup %2759 }
 0xf6b   :  { %1836 = vrot.lane.b32.xlu0 %v2760_v32, %s3075_s4 }
 0xf6c   :  { %v2762_v7 = vpop.eup %2761 }
 0xf6d   :  { %1838 = vrot.lane.b32.xlu1 %v2762_v7, %s3075_s4 }
 0xfd3   :  { %v1833_v56 = vpop.permute.xlu0 %1832 }
 0xfd4   :  { %v1844_v13 = vmul.f32 %v1833_v56, %v1824_v20 }
 0xfd5   :  { %v1835_v31 = vpop.permute.xlu1 %1834 }
 0xfd6   :  { %v1845_v40 = vmul.f32 %v1835_v31, %v1825_v27  ;;  %v1852_v48 = vadd.f32 %v1848_v28, %v1844_v13 }
 0xfd8   :  { %v1853_v15 = vadd.f32 %v1849_v43, %v1845_v40 }
 0xfda   :  { %v1856_v26 = vpack.c.bf16 %v1853_v15, %v1852_v48 }
 0xfdc   :  { %1860 = vrot.lane.b32.xlu0 %v1856_v26, %s3075_s4 }
 0xfdd   :  { %v1837_v29 = vpop.permute.xlu0 %1836 }
 0xfde   :  { %v1846_v11 = vmul.f32 %v1837_v29, %v1826_v53 }
 0xfdf   :  { %v1839_v4 = vpop.permute.xlu1 %1838 }
 0xfe0   :  { %v1847_v45 = vmul.f32 %v1839_v4, %v1827_v14  ;;  %1873 = vrot.lane.b32.xlu0 %v1852_v48, %s3075_s4  ;;  %v1854_v42 = vadd.f32 %v1850_v18, %v1846_v11 }
 0xfe2   :  { %v1855_v41 = vadd.f32 %v1851_v23, %v1847_v45 }
 0xfe4   :  { %1877 = vrot.lane.b32.xlu0 %v1854_v42, %s3075_s4  ;;  %v1857_v59 = vpack.c.bf16 %v1855_v41, %v1854_v42 }
 0xfe6   :  { %1862 = vrot.lane.b32.xlu1 %v1857_v59, %s3075_s4 }
 0xfea   :  { %1875 = vrot.lane.b32.xlu1 %v1853_v15, %s3075_s4 }
 0xfee   :  { %1879 = vrot.lane.b32.xlu1 %v1855_v41, %s3075_s4 }
0x104e   :  { %v1861_v46 = vpop.permute.xlu0 %1860 }
0x104f   :  { %1867 = vst.msk [vmem:[#allocation3 + $0x70] sm:$0xff] %vm259_vm0, %v1861_v46 }
0x1052   :  { %v1874_v35 = vpop.permute.xlu0 %1873 }
0x1053   :  { %1885 = vst.msk [vmem:[#allocation20] sm:$0xff] %vm259_vm0, %v1874_v35 }
0x1056   :  { %v1878_v2 = vpop.permute.xlu0 %1877  ;;  %v1903_v21 = vld [vmem:[#allocation3 + $0x70] sm:$0xff] }
0x1057   :  { %1887 = vst.msk [vmem:[#allocation20 + $0x10] sm:$0xff] %vm259_vm0, %v1878_v2  ;;  %2515 = vmatprep.mubr.msk.bf16.mxu0 %vm259_vm0, %v1903_v21 }
0x1058   :  { %v1863_v44 = vpop.permute.xlu1 %1862 }
0x1059   :  { %1868 = vst.msk [vmem:[#allocation3 + $0x78] sm:$0xff] %vm259_vm0, %v1863_v44 }
0x105c   :  { %v1876_v22 = vpop.permute.xlu1 %1875 }
0x105d   :  { %1886 = vst.msk [vmem:[#allocation20 + $0x8] sm:$0xff] %vm259_vm0, %v1876_v22 }
0x1060   :  { %v1880_v54 = vpop.permute.xlu1 %1879  ;;  %v1904_v37 = vld [vmem:[#allocation3 + $0x78] sm:$0xff] }
0x1061   :  { %1888 = vst.msk [vmem:[#allocation20 + $0x18] sm:$0xff] %vm259_vm0, %v1880_v54  ;;  %2516 = vmatmul.mubr.msk.bf16.gmra.mrb[76].mxu0 %vm259_vm0, %v1904_v37 }
0x1062   :  { %3018 = shalt.err (!%p3015_p6)
}
0x1063   :  { %s3019_s19 = scalar_lea.hbm %s4087_s10, 512 }
0x1064   :  { %p3020_p7 = scmp.ne.s32.totalorder %s4087_s10, %s3019_s19  ;;  %p3023_p8 = scmp.lt.u32.totalorder %s3019_s19, %s4087_s10 }
0x1066   :  { %p3025_p9 = pnand %p3023_p8, %p3020_p7 }
0x1068   :  { %3028 = shalt.err (!%p3025_p9)
}
0x1069   :  { %2343 = dma.vmem_to_hbm [thread:$0]  %s2338_s17, 512, %s4087_s10, [#allocation21], %s3067_s25, %s3067_s25, %s3068_s26   ;;  %v2805_v0 = vld [vmem:[#allocation4 + $0xf0] sm:$0xff]  ;;  %v2806_v12 = vld [vmem:[#allocation4 + $0xe0] sm:$0xff]  ;;  %v2807_v51 = vld [vmem:[#allocation4 + $0xf8] sm:$0xff] }
0x106a   :  { %s3080_s10 = smov [#allocation19]  }
0x106b   :  { %s2325_s24 = sshll.u32 %s3080_s10, 4  ;;  %s2326_s24 = int_to_ptr.vmem [resolvable:$true] %s2325_s24 }
0x106c   :  { %s3029_s27 = scalar_lea.vmem %s2326_s24, 4096  ;;  %p3034_p11 = scmp.lt.s32.totalorder %s2326_s24, %s2326_s24 }
0x106d   :  { %p3030_p10 = scmp.ne.s32.totalorder %s2326_s24, %s3029_s27  ;;  %p3035_p12 = scmp.lt.s32.totalorder %s3029_s27, %s3029_s27 }
0x106f   :  { %p3036_p13 = por %p3035_p12, %p3034_p11 }
0x1071   :  { %p3037_p0 = pnand %p3036_p13, %p3030_p10 }
0x1134   :  { %v2517_v17 = vpop.f32.mrb[76].mxu0 }
0x1135   :  { %v2183_v8 = vmul.f32 %v3878_v60, %v2517_v17  ;;  %v2131_v5 = vpop.f32.mrb[77].mxu0 }
0x1136   :  { %v2181_v47 = vmul.f32 %v3878_v60, %v2131_v5  ;;  %v2518_v49 = vpop.f32.mrb[78].mxu0 }
0x1137   :  { %v2222_v1 = vadd.f32 %v3882_v52, %v2183_v8  ;;  %v2184_v62 = vmul.f32 %v3878_v60, %v2518_v49  ;;  %v2134_v58 = vpop.f32.mrb[79].mxu0 }
0x1138   :  { %v2220_v34 = vadd.f32 %v3882_v52, %v2181_v47  ;;  %v2182_v9 = vmul.f32 %v3878_v60, %v2134_v58  ;;  %v2808_v60 = vld [vmem:[#allocation4 + $0xe8] sm:$0xff] }
0x1139   :  { %v2254_v16 = vmax.f32 %v2222_v1, 0.0  ;;  %v2223_v36 = vadd.f32 %v3882_v52, %v2184_v62 }
0x113a   :  { %v2252_v57 = vmax.f32 %v2220_v34, 0.0  ;;  %v2221_v6 = vadd.f32 %v3882_v52, %v2182_v9 }
0x113b   :  { %v2286_v55 = vadd.f32 %v2805_v0, %v2254_v16  ;;  %v2255_v10 = vmax.f32 %v2223_v36, 0.0 }
0x113c   :  { %v2284_v50 = vadd.f32 %v2806_v12, %v2252_v57  ;;  %v2253_v19 = vmax.f32 %v2221_v6, 0.0 }
0x113d   :  { %2318 = vst.msk [vmem:[#allocation19 + $0xf0] sm:$0xff] %vm259_vm0, %v2286_v55  ;;  %v2287_v33 = vadd.f32 %v2807_v51, %v2255_v10 }
0x113e   :  { %2316 = vst.msk [vmem:[#allocation19 + $0xe0] sm:$0xff] %vm259_vm0, %v2284_v50  ;;  %v2285_v3 = vadd.f32 %v2808_v60, %v2253_v19 }
0x113f   :  { %2319 = vst.msk [vmem:[#allocation19 + $0xf8] sm:$0xff] %vm259_vm0, %v2287_v33 }
0x1140   :  { %2317 = vst.msk [vmem:[#allocation19 + $0xe8] sm:$0xff] %vm259_vm0, %v2285_v3 }
0x1141   :  { %3040 = shalt.err (!%p3037_p0)
}
0x1142   :  { %s3041_s3 = scalar_lea.hbm %s4086_s9, 4096 }
0x1143   :  { %p3042_p1 = scmp.ne.s32.totalorder %s4086_s9, %s3041_s3  ;;  %p3045_p2 = scmp.lt.u32.totalorder %s3041_s3, %s4086_s9 }
0x1145   :  { %p3047_p3 = pnand %p3045_p2, %p3042_p1 }
0x1147   :  { %3050 = shalt.err (!%p3047_p3)
}
0x1148   :  { %2331 = dma.vmem_to_hbm [thread:$0]  %s2326_s24, 4096, %s4086_s9, [#allocation6], %s3067_s25, %s3067_s25, %s3068_s26  }
0x1149   :  { %3061 = dma.done.wait [#allocation6], 4096  }
0x114a   :  { %3062 = vsyncadd [#allocation6], 4294963200 }
0x114b   :  { %3063 = dma.done.wait [#allocation21], 512  }
0x114c   :  { %3064 = vsyncadd [#allocation21], 4294966784 }
0x114d   :  { %2350 = vsyncpa [#allocation5], 1 }
0x114e   :  { %2351 = vsyncpa [#allocation8], 1 }
0x114f   :  { %2352 = vsyncpa [#allocation11], 1 }
0x1150   :  { %2353 = vsyncpa [#allocation14], 1 }
0x1151   :  { %2354 = vsyncpa [#allocation17], 1 }
0x1152   :  { %2355 = vsyncpa [#allocation6], 1 }
0x1153   :  { %2356 = vsyncpa [#allocation21], 1 }

</bundles_post_ra>
